<compile_context>
chip_gen: v7x
topology: tpu7x:2x2x1
jax: 0.10.0
libtpu: 0.0.40
codegen_flags: <defaults>
</compile_context>

<pallas_src>
import jax
import jax.numpy as jnp
from jax import lax
from jax.experimental import pallas as pl
from jax.experimental.pallas import tpu as pltpu

# ---- model hyper-params (small, lane-friendly versions of the original) ----
N_EMBD = 128          # n_embd_dim
N_HEADS = 4
HEAD_SIZE = N_EMBD // N_HEADS
BLOCK_SIZE = 64       # T (sequence length)
HIDDEN = 4 * N_EMBD
BATCH = 2
LN_EPS = 1e-5


def _layer_norm(h, gamma, beta):
    # single-pass variance: mean(h^2) - mu^2 (both lane-reductions independent)
    mu = jnp.mean(h, axis=-1, keepdims=True)
    ms = jnp.mean(h * h, axis=-1, keepdims=True)
    var = ms - mu * mu
    return (h - mu) * lax.rsqrt(var + LN_EPS) * gamma + beta


def block_kernel(x_ref,
                 g1_ref, be1_ref,
                 wqkv_ref, wo_ref, bo_ref,
                 g2_ref, be2_ref,
                 w1_ref, b1_ref, w2_ref, b2_ref,
                 out_ref):
    bb, T, C = x_ref.shape          # bb = batch elements handled this step
    M = bb * T
    H = N_HEADS
    D = C // H

    # flatten batch into rows: all dense matmuls see M=bb*T rows
    x = x_ref[...].reshape(M, C)

    # ---------------- self-attention branch ----------------
    h = _layer_norm(x, g1_ref[...], be1_ref[...])

    # fused QKV projection: one (M,C) x (C,3C) matmul
    qkv = jnp.dot(h, wqkv_ref[...], preferred_element_type=jnp.float32)
    # note: reference scales by C**-0.5 (C = n_embd_dim, not head_size);
    # fold the scale into q once.
    scale = C ** (-0.5)
    q = qkv[:, :C] * scale
    k = qkv[:, C:2 * C]
    v = qkv[:, 2 * C:]

    row = lax.broadcasted_iota(jnp.int32, (T, T), 0)
    col = lax.broadcasted_iota(jnp.int32, (T, T), 1)
    causal = (row >= col)[None]     # (1, T, T), broadcasts over batch*heads

    # stack (batch, head) pairs along a leading batch dim -> (G, T, D)
    def gather_heads(mat):
        parts = [mat[b * T:(b + 1) * T, hd * D:(hd + 1) * D]
                 for b in range(bb) for hd in range(H)]
        return jnp.stack(parts, axis=0)

    qh = gather_heads(q)
    kh = gather_heads(k)
    vh = gather_heads(v)

    # batched attention: two 3-D dot_generals instead of a per-head loop
    wei = jnp.einsum('gqd,gkd->gqk', qh, kh,
                     preferred_element_type=jnp.float32)        # (G, T, T)
    wei = jnp.where(causal, wei, -jnp.inf)
    wei = wei - jnp.max(wei, axis=-1, keepdims=True)
    p = jnp.exp(wei)
    denom = jnp.sum(p, axis=-1, keepdims=True)
    p = p * pl.reciprocal(denom, approx=False)                  # EUP recip
    oh = jnp.einsum('gqk,gkd->gqd', p, vh,
                    preferred_element_type=jnp.float32)         # (G, T, D)

    # reassemble (M, C): rows per batch, head blocks along lanes
    head_cols = []
    for hd in range(H):
        if bb > 1:
            head_cols.append(
                jnp.concatenate([oh[b * H + hd] for b in range(bb)], axis=0))
        else:
            head_cols.append(oh[hd])
    attn = jnp.concatenate(head_cols, axis=-1)                  # (M, C)

    sa = jnp.dot(attn, wo_ref[...],
                 preferred_element_type=jnp.float32) + bo_ref[...]
    x1 = x + sa

    # ---------------- feed-forward branch ----------------
    h2 = _layer_norm(x1, g2_ref[...], be2_ref[...])
    f = jnp.dot(h2, w1_ref[...], preferred_element_type=jnp.float32) + b1_ref[...]
    f = jnp.maximum(f, 0.0)
    f = jnp.dot(f, w2_ref[...], preferred_element_type=jnp.float32) + b2_ref[...]

    out_ref[...] = (x1 + f).reshape(bb, T, C).astype(out_ref.dtype)


def make_params(key):
    ks = jax.random.split(key, 8)
    s = 0.02
    return dict(
        g1=jnp.ones((1, N_EMBD), jnp.float32),
        be1=jnp.zeros((1, N_EMBD), jnp.float32),
        wq=s * jax.random.normal(ks[0], (N_EMBD, N_EMBD), jnp.float32),
        wk=s * jax.random.normal(ks[1], (N_EMBD, N_EMBD), jnp.float32),
        wv=s * jax.random.normal(ks[2], (N_EMBD, N_EMBD), jnp.float32),
        wo=s * jax.random.normal(ks[3], (N_EMBD, N_EMBD), jnp.float32),
        bo=s * jax.random.normal(ks[4], (1, N_EMBD), jnp.float32),
        g2=jnp.ones((1, N_EMBD), jnp.float32),
        be2=jnp.zeros((1, N_EMBD), jnp.float32),
        w1=s * jax.random.normal(ks[5], (N_EMBD, HIDDEN), jnp.float32),
        b1=s * jax.random.normal(ks[6], (1, HIDDEN), jnp.float32),
        w2=s * jax.random.normal(ks[7], (HIDDEN, N_EMBD), jnp.float32),
        b2=jnp.zeros((1, N_EMBD), jnp.float32),
    )


def _multi_tensorcore_chip():
    """True on chips with >1 TensorCore (v7x, v4/v5p megacore)."""
    try:
        kind = jax.devices()[0].device_kind.lower()
    except Exception:
        return False
    return any(tag in kind for tag in ("v7", "7x", "v4", "v5p"))


@jax.jit
def transformer_block(x, params):
    B, T, C = x.shape

    # fused QKV weight (C, 3C)
    wqkv = jnp.concatenate([params["wq"], params["wk"], params["wv"]], axis=1)
    weights = [params["g1"], params["be1"], wqkv,
               params["wo"], params["bo"],
               params["g2"], params["be2"],
               params["w1"], params["b1"], params["w2"], params["b2"]]

    # v7x (and other multi-TC chips): keep a parallel batch grid so the batch
    # shards across TensorCores.  Single-TC chips (v5e/v6e): fuse the whole
    # batch into one grid step for full MXU rows and no per-step overhead.
    bb = 1 if _multi_tensorcore_chip() else B
    grid = (B // bb,)

    def full_spec(a):
        nd = a.ndim
        return pl.BlockSpec(a.shape, lambda i, _nd=nd: (0,) * _nd)

    in_specs = [pl.BlockSpec((bb, T, C), lambda i: (i, 0, 0))]
    in_specs += [full_spec(a) for a in weights]

    return pl.pallas_call(
        block_kernel,
        out_shape=jax.ShapeDtypeStruct((B, T, C), x.dtype),
        grid_spec=pltpu.PrefetchScalarGridSpec(
            num_scalar_prefetch=0,
            grid=grid,
            in_specs=in_specs,
            out_specs=pl.BlockSpec((bb, T, C), lambda i: (i, 0, 0)),
        ),
        compiler_params=pltpu.CompilerParams(
            dimension_semantics=("parallel",)),
    )(x, *weights)


def reference_block(x, p):
    """Pure-JAX reference mirroring the PyTorch module (eval mode)."""
    def ln(h, g, b):
        mu = jnp.mean(h, axis=-1, keepdims=True)
        var = jnp.mean((h - mu) ** 2, axis=-1, keepdims=True)
        return (h - mu) / jnp.sqrt(var + LN_EPS) * g + b

    B, T, C = x.shape
    h = ln(x, p["g1"], p["be1"])
    q = h @ p["wq"]
    k = h @ p["wk"]
    v = h @ p["wv"]
    qh = q.reshape(B, T, N_HEADS, HEAD_SIZE).transpose(0, 2, 1, 3)
    kh = k.reshape(B, T, N_HEADS, HEAD_SIZE).transpose(0, 2, 1, 3)
    vh = v.reshape(B, T, N_HEADS, HEAD_SIZE).transpose(0, 2, 1, 3)
    wei = jnp.einsum("bhqd,bhkd->bhqk", qh, kh) * C ** (-0.5)
    mask = jnp.tril(jnp.ones((T, T), bool))
    wei = jnp.where(mask, wei, -jnp.inf)
    wei = jax.nn.softmax(wei, axis=-1)
    o = jnp.einsum("bhqk,bhkd->bhqd", wei, vh)
    o = o.transpose(0, 2, 1, 3).reshape(B, T, C)
    sa = o @ p["wo"] + p["bo"]
    x1 = x + sa
    h2 = ln(x1, p["g2"], p["be2"])
    f = jnp.maximum(h2 @ p["w1"] + p["b1"], 0.0) @ p["w2"] + p["b2"]
    return x1 + f


if __name__ == "__main__":
    key = jax.random.PRNGKey(0)
    kx, kp = jax.random.split(key)
    x = jax.random.normal(kx, (BATCH, BLOCK_SIZE, N_EMBD), jnp.float32)
    params = make_params(kp)

    out = jax.block_until_ready(transformer_block(x, params))

    ref = reference_block(x, params)
    assert out.shape == (BATCH, BLOCK_SIZE, N_EMBD)
    max_err = float(jnp.max(jnp.abs(out - ref)))
    assert jnp.allclose(out, ref, atol=1e-4, rtol=1e-4), max_err
    print("KERNEL_OK")
</pallas_src>

<mosaic_0001>
module attributes {stable_mosaic.version = 11 : i64} {
  func.func @block_kernel(%arg0: i32, %arg1: memref<2x64x128xf32, #tpu.memory_space<vmem>>, %arg2: memref<1x128xf32, #tpu.memory_space<vmem>>, %arg3: memref<1x128xf32, #tpu.memory_space<vmem>>, %arg4: memref<128x384xf32, #tpu.memory_space<vmem>>, %arg5: memref<128x128xf32, #tpu.memory_space<vmem>>, %arg6: memref<1x128xf32, #tpu.memory_space<vmem>>, %arg7: memref<1x128xf32, #tpu.memory_space<vmem>>, %arg8: memref<1x128xf32, #tpu.memory_space<vmem>>, %arg9: memref<128x512xf32, #tpu.memory_space<vmem>>, %arg10: memref<1x512xf32, #tpu.memory_space<vmem>>, %arg11: memref<512x128xf32, #tpu.memory_space<vmem>>, %arg12: memref<1x128xf32, #tpu.memory_space<vmem>>, %arg13: memref<2x64x128xf32, #tpu.memory_space<vmem>>) attributes {dimension_semantics = [#tpu.dimension_semantics<parallel>], iteration_bounds = array<i64: 1>, scalar_prefetch = 0 : i64, scratch_operands = 0 : i64, tpu.core_type = #tpu.core_type<tc>, window_params = [{transform_indices = @transform_0, window_bounds = array<i64: 2, 64, 128>}, {pipeline_mode = #tpu.pipeline_mode<synchronous>, transform_indices = @transform_1, window_bounds = array<i64: 1, 128>}, {pipeline_mode = #tpu.pipeline_mode<synchronous>, transform_indices = @transform_2, window_bounds = array<i64: 1, 128>}, {pipeline_mode = #tpu.pipeline_mode<synchronous>, transform_indices = @transform_3, window_bounds = array<i64: 128, 384>}, {pipeline_mode = #tpu.pipeline_mode<synchronous>, transform_indices = @transform_4, window_bounds = array<i64: 128, 128>}, {pipeline_mode = #tpu.pipeline_mode<synchronous>, transform_indices = @transform_5, window_bounds = array<i64: 1, 128>}, {pipeline_mode = #tpu.pipeline_mode<synchronous>, transform_indices = @transform_6, window_bounds = array<i64: 1, 128>}, {pipeline_mode = #tpu.pipeline_mode<synchronous>, transform_indices = @transform_7, window_bounds = array<i64: 1, 128>}, {pipeline_mode = #tpu.pipeline_mode<synchronous>, transform_indices = @transform_8, window_bounds = array<i64: 128, 512>}, {pipeline_mode = #tpu.pipeline_mode<synchronous>, transform_indices = @transform_9, window_bounds = array<i64: 1, 512>}, {pipeline_mode = #tpu.pipeline_mode<synchronous>, transform_indices = @transform_10, window_bounds = array<i64: 512, 128>}, {pipeline_mode = #tpu.pipeline_mode<synchronous>, transform_indices = @transform_11, window_bounds = array<i64: 1, 128>}, {transform_indices = @transform_12, window_bounds = array<i64: 2, 64, 128>}]} {
    %c0 = arith.constant 0 : index
    %c0_0 = arith.constant 0 : index
    %c0_1 = arith.constant 0 : index
    %0 = vector.load %arg1[%c0, %c0_0, %c0_1] : memref<2x64x128xf32, #tpu.memory_space<vmem>>, vector<2x64x128xf32>
    %1 = vector.shape_cast %0 : vector<2x64x128xf32> to vector<128x128xf32>
    %c0_2 = arith.constant 0 : index
    %c0_3 = arith.constant 0 : index
    %2 = vector.load %arg2[%c0_2, %c0_3] : memref<1x128xf32, #tpu.memory_space<vmem>>, vector<1x128xf32>
    %c0_4 = arith.constant 0 : index
    %c0_5 = arith.constant 0 : index
    %3 = vector.load %arg3[%c0_4, %c0_5] : memref<1x128xf32, #tpu.memory_space<vmem>>, vector<1x128xf32>
    %cst = arith.constant dense<0.000000e+00> : vector<128xf32>
    %4 = vector.multi_reduction <add>, %1, %cst [1] : vector<128x128xf32> to vector<128xf32>
    %5 = vector.shape_cast %4 : vector<128xf32> to vector<128x1xf32>
    %cst_6 = arith.constant 1.280000e+02 : f32
    %6 = vector.broadcast %cst_6 : f32 to vector<128x1xf32>
    %7 = arith.divf %5, %6 : vector<128x1xf32>
    %8 = arith.mulf %1, %1 : vector<128x128xf32>
    %cst_7 = arith.constant dense<0.000000e+00> : vector<128xf32>
    %9 = vector.multi_reduction <add>, %8, %cst_7 [1] : vector<128x128xf32> to vector<128xf32>
    %10 = vector.shape_cast %9 : vector<128xf32> to vector<128x1xf32>
    %cst_8 = arith.constant 1.280000e+02 : f32
    %11 = vector.broadcast %cst_8 : f32 to vector<128x1xf32>
    %12 = arith.divf %10, %11 : vector<128x1xf32>
    %13 = arith.mulf %7, %7 : vector<128x1xf32>
    %14 = arith.subf %12, %13 : vector<128x1xf32>
    %15 = vector.broadcast %7 : vector<128x1xf32> to vector<128x128xf32>
    %16 = arith.subf %1, %15 : vector<128x128xf32>
    %cst_9 = arith.constant 9.99999974E-6 : f32
    %17 = vector.broadcast %cst_9 : f32 to vector<128x1xf32>
    %18 = arith.addf %14, %17 : vector<128x1xf32>
    %19 = math.rsqrt %18 : vector<128x1xf32>
    %20 = vector.broadcast %19 : vector<128x1xf32> to vector<128x128xf32>
    %21 = arith.mulf %16, %20 : vector<128x128xf32>
    %22 = vector.broadcast %2 : vector<1x128xf32> to vector<128x128xf32>
    %23 = arith.mulf %21, %22 : vector<128x128xf32>
    %24 = vector.broadcast %3 : vector<1x128xf32> to vector<128x128xf32>
    %25 = arith.addf %23, %24 : vector<128x128xf32>
    %c0_10 = arith.constant 0 : index
    %c0_11 = arith.constant 0 : index
    %26 = vector.load %arg4[%c0_10, %c0_11] : memref<128x384xf32, #tpu.memory_space<vmem>>, vector<128x384xf32>
    %cst_12 = arith.constant dense<0.000000e+00> : vector<128x384xf32>
    %27 = tpu.matmul %25, %26, %cst_12 {dimension_numbers = #tpu.dot_dimension_numbers<[1], [0], [0], [1], [0, 0, 1, 1], [], []>} : vector<128x128xf32>, vector<128x384xf32>, vector<128x384xf32> -> vector<128x384xf32>
    %28 = vector.extract_strided_slice %27 {offsets = [0, 0], sizes = [128, 128], strides = [1, 1]} : vector<128x384xf32> to vector<128x128xf32>
    %cst_13 = arith.constant 0.0883883461 : f32
    %29 = vector.broadcast %cst_13 : f32 to vector<128x128xf32>
    %30 = arith.mulf %28, %29 : vector<128x128xf32>
    %31 = vector.extract_strided_slice %27 {offsets = [0, 128], sizes = [128, 128], strides = [1, 1]} : vector<128x384xf32> to vector<128x128xf32>
    %32 = vector.extract_strided_slice %27 {offsets = [0, 256], sizes = [128, 128], strides = [1, 1]} : vector<128x384xf32> to vector<128x128xf32>
    %33 = tpu.iota {dimensions = array<i32: 0>} : vector<64x64xi32>
    %34 = tpu.iota {dimensions = array<i32: 1>} : vector<64x64xi32>
    %35 = arith.cmpi sge, %33, %34 : vector<64x64xi32>
    %36 = vector.shape_cast %35 : vector<64x64xi1> to vector<1x64x64xi1>
    %37 = vector.extract_strided_slice %30 {offsets = [0, 0], sizes = [64, 32], strides = [1, 1]} : vector<128x128xf32> to vector<64x32xf32>
    %38 = vector.extract_strided_slice %30 {offsets = [0, 32], sizes = [64, 32], strides = [1, 1]} : vector<128x128xf32> to vector<64x32xf32>
    %39 = vector.extract_strided_slice %30 {offsets = [0, 64], sizes = [64, 32], strides = [1, 1]} : vector<128x128xf32> to vector<64x32xf32>
    %40 = vector.extract_strided_slice %30 {offsets = [0, 96], sizes = [64, 32], strides = [1, 1]} : vector<128x128xf32> to vector<64x32xf32>
    %41 = vector.extract_strided_slice %30 {offsets = [64, 0], sizes = [64, 32], strides = [1, 1]} : vector<128x128xf32> to vector<64x32xf32>
    %42 = vector.extract_strided_slice %30 {offsets = [64, 32], sizes = [64, 32], strides = [1, 1]} : vector<128x128xf32> to vector<64x32xf32>
    %43 = vector.extract_strided_slice %30 {offsets = [64, 64], sizes = [64, 32], strides = [1, 1]} : vector<128x128xf32> to vector<64x32xf32>
    %44 = vector.extract_strided_slice %30 {offsets = [64, 96], sizes = [64, 32], strides = [1, 1]} : vector<128x128xf32> to vector<64x32xf32>
    %45 = vector.shape_cast %37 : vector<64x32xf32> to vector<1x64x32xf32>
    %46 = vector.shape_cast %38 : vector<64x32xf32> to vector<1x64x32xf32>
    %47 = vector.shape_cast %39 : vector<64x32xf32> to vector<1x64x32xf32>
    %48 = vector.shape_cast %40 : vector<64x32xf32> to vector<1x64x32xf32>
    %49 = vector.shape_cast %41 : vector<64x32xf32> to vector<1x64x32xf32>
    %50 = vector.shape_cast %42 : vector<64x32xf32> to vector<1x64x32xf32>
    %51 = vector.shape_cast %43 : vector<64x32xf32> to vector<1x64x32xf32>
    %52 = vector.shape_cast %44 : vector<64x32xf32> to vector<1x64x32xf32>
    %53 = tpu.concatenate %45, %46, %47, %48, %49, %50, %51, %52 in 0 : vector<1x64x32xf32>, vector<1x64x32xf32>, vector<1x64x32xf32>, vector<1x64x32xf32>, vector<1x64x32xf32>, vector<1x64x32xf32>, vector<1x64x32xf32>, vector<1x64x32xf32> -> vector<8x64x32xf32>
    %54 = vector.extract_strided_slice %31 {offsets = [0, 0], sizes = [64, 32], strides = [1, 1]} : vector<128x128xf32> to vector<64x32xf32>
    %55 = vector.extract_strided_slice %31 {offsets = [0, 32], sizes = [64, 32], strides = [1, 1]} : vector<128x128xf32> to vector<64x32xf32>
    %56 = vector.extract_strided_slice %31 {offsets = [0, 64], sizes = [64, 32], strides = [1, 1]} : vector<128x128xf32> to vector<64x32xf32>
    %57 = vector.extract_strided_slice %31 {offsets = [0, 96], sizes = [64, 32], strides = [1, 1]} : vector<128x128xf32> to vector<64x32xf32>
    %58 = vector.extract_strided_slice %31 {offsets = [64, 0], sizes = [64, 32], strides = [1, 1]} : vector<128x128xf32> to vector<64x32xf32>
    %59 = vector.extract_strided_slice %31 {offsets = [64, 32], sizes = [64, 32], strides = [1, 1]} : vector<128x128xf32> to vector<64x32xf32>
    %60 = vector.extract_strided_slice %31 {offsets = [64, 64], sizes = [64, 32], strides = [1, 1]} : vector<128x128xf32> to vector<64x32xf32>
    %61 = vector.extract_strided_slice %31 {offsets = [64, 96], sizes = [64, 32], strides = [1, 1]} : vector<128x128xf32> to vector<64x32xf32>
    %62 = vector.shape_cast %54 : vector<64x32xf32> to vector<1x64x32xf32>
    %63 = vector.shape_cast %55 : vector<64x32xf32> to vector<1x64x32xf32>
    %64 = vector.shape_cast %56 : vector<64x32xf32> to vector<1x64x32xf32>
    %65 = vector.shape_cast %57 : vector<64x32xf32> to vector<1x64x32xf32>
    %66 = vector.shape_cast %58 : vector<64x32xf32> to vector<1x64x32xf32>
    %67 = vector.shape_cast %59 : vector<64x32xf32> to vector<1x64x32xf32>
    %68 = vector.shape_cast %60 : vector<64x32xf32> to vector<1x64x32xf32>
    %69 = vector.shape_cast %61 : vector<64x32xf32> to vector<1x64x32xf32>
    %70 = tpu.concatenate %62, %63, %64, %65, %66, %67, %68, %69 in 0 : vector<1x64x32xf32>, vector<1x64x32xf32>, vector<1x64x32xf32>, vector<1x64x32xf32>, vector<1x64x32xf32>, vector<1x64x32xf32>, vector<1x64x32xf32>, vector<1x64x32xf32> -> vector<8x64x32xf32>
    %71 = vector.extract_strided_slice %32 {offsets = [0, 0], sizes = [64, 32], strides = [1, 1]} : vector<128x128xf32> to vector<64x32xf32>
    %72 = vector.extract_strided_slice %32 {offsets = [0, 32], sizes = [64, 32], strides = [1, 1]} : vector<128x128xf32> to vector<64x32xf32>
    %73 = vector.extract_strided_slice %32 {offsets = [0, 64], sizes = [64, 32], strides = [1, 1]} : vector<128x128xf32> to vector<64x32xf32>
    %74 = vector.extract_strided_slice %32 {offsets = [0, 96], sizes = [64, 32], strides = [1, 1]} : vector<128x128xf32> to vector<64x32xf32>
    %75 = vector.extract_strided_slice %32 {offsets = [64, 0], sizes = [64, 32], strides = [1, 1]} : vector<128x128xf32> to vector<64x32xf32>
    %76 = vector.extract_strided_slice %32 {offsets = [64, 32], sizes = [64, 32], strides = [1, 1]} : vector<128x128xf32> to vector<64x32xf32>
    %77 = vector.extract_strided_slice %32 {offsets = [64, 64], sizes = [64, 32], strides = [1, 1]} : vector<128x128xf32> to vector<64x32xf32>
    %78 = vector.extract_strided_slice %32 {offsets = [64, 96], sizes = [64, 32], strides = [1, 1]} : vector<128x128xf32> to vector<64x32xf32>
    %79 = vector.shape_cast %71 : vector<64x32xf32> to vector<1x64x32xf32>
    %80 = vector.shape_cast %72 : vector<64x32xf32> to vector<1x64x32xf32>
    %81 = vector.shape_cast %73 : vector<64x32xf32> to vector<1x64x32xf32>
    %82 = vector.shape_cast %74 : vector<64x32xf32> to vector<1x64x32xf32>
    %83 = vector.shape_cast %75 : vector<64x32xf32> to vector<1x64x32xf32>
    %84 = vector.shape_cast %76 : vector<64x32xf32> to vector<1x64x32xf32>
    %85 = vector.shape_cast %77 : vector<64x32xf32> to vector<1x64x32xf32>
    %86 = vector.shape_cast %78 : vector<64x32xf32> to vector<1x64x32xf32>
    %87 = tpu.concatenate %79, %80, %81, %82, %83, %84, %85, %86 in 0 : vector<1x64x32xf32>, vector<1x64x32xf32>, vector<1x64x32xf32>, vector<1x64x32xf32>, vector<1x64x32xf32>, vector<1x64x32xf32>, vector<1x64x32xf32>, vector<1x64x32xf32> -> vector<8x64x32xf32>
    "tpu.trace_start"() <{level = 10 : i32, message = "gqd,gkd->gqk"}> : () -> ()
    %cst_14 = arith.constant dense<0.000000e+00> : vector<8x64x64xf32>
    %88 = tpu.matmul %53, %70, %cst_14 {dimension_numbers = #tpu.dot_dimension_numbers<[2], [2], [1], [1], [0, 0, 0, 1, 1, 1], [0], [0]>} : vector<8x64x32xf32>, vector<8x64x32xf32>, vector<8x64x64xf32> -> vector<8x64x64xf32>
    %cst_15 = arith.constant 0xFF800000 : f32
    "tpu.trace_stop"() : () -> ()
    %89 = vector.shape_cast %36 : vector<1x64x64xi1> to vector<1x64x64xi1>
    %90 = vector.broadcast %89 : vector<1x64x64xi1> to vector<8x64x64xi1>
    %91 = vector.broadcast %cst_15 : f32 to vector<8x64x64xf32>
    %92 = arith.select %90, %88, %91 : vector<8x64x64xi1>, vector<8x64x64xf32>
    %cst_16 = arith.constant dense<0xFF800000> : vector<8x64xf32>
    %93 = vector.multi_reduction <maximumf>, %92, %cst_16 [2] : vector<8x64x64xf32> to vector<8x64xf32>
    %94 = vector.shape_cast %93 : vector<8x64xf32> to vector<8x64x1xf32>
    %95 = vector.broadcast %94 : vector<8x64x1xf32> to vector<8x64x64xf32>
    %96 = arith.subf %92, %95 : vector<8x64x64xf32>
    %97 = math.exp %96 : vector<8x64x64xf32>
    %cst_17 = arith.constant dense<0.000000e+00> : vector<8x64xf32>
    %98 = vector.multi_reduction <add>, %97, %cst_17 [2] : vector<8x64x64xf32> to vector<8x64xf32>
    %99 = vector.shape_cast %98 : vector<8x64xf32> to vector<8x64x1xf32>
    %100 = tpu.reciprocal %99 : vector<8x64x1xf32> -> vector<8x64x1xf32>
    %101 = vector.broadcast %100 : vector<8x64x1xf32> to vector<8x64x64xf32>
    %102 = arith.mulf %97, %101 : vector<8x64x64xf32>
    "tpu.trace_start"() <{level = 10 : i32, message = "gqk,gkd->gqd"}> : () -> ()
    %cst_18 = arith.constant dense<0.000000e+00> : vector<8x64x32xf32>
    %103 = tpu.matmul %102, %87, %cst_18 {dimension_numbers = #tpu.dot_dimension_numbers<[2], [1], [1], [2], [0, 0, 0, 1, 1, 2], [0], [0]>} : vector<8x64x64xf32>, vector<8x64x32xf32>, vector<8x64x32xf32> -> vector<8x64x32xf32>
    "tpu.trace_stop"() : () -> ()
    %104 = vector.extract_strided_slice %103 {offsets = [0, 0, 0], sizes = [1, 64, 32], strides = [1, 1, 1]} : vector<8x64x32xf32> to vector<1x64x32xf32>
    %105 = vector.shape_cast %104 : vector<1x64x32xf32> to vector<64x32xf32>
    %106 = vector.extract_strided_slice %103 {offsets = [4, 0, 0], sizes = [1, 64, 32], strides = [1, 1, 1]} : vector<8x64x32xf32> to vector<1x64x32xf32>
    %107 = vector.shape_cast %106 : vector<1x64x32xf32> to vector<64x32xf32>
    %108 = tpu.concatenate %105, %107 in 0 : vector<64x32xf32>, vector<64x32xf32> -> vector<128x32xf32>
    %109 = vector.extract_strided_slice %103 {offsets = [1, 0, 0], sizes = [1, 64, 32], strides = [1, 1, 1]} : vector<8x64x32xf32> to vector<1x64x32xf32>
    %110 = vector.shape_cast %109 : vector<1x64x32xf32> to vector<64x32xf32>
    %111 = vector.extract_strided_slice %103 {offsets = [5, 0, 0], sizes = [1, 64, 32], strides = [1, 1, 1]} : vector<8x64x32xf32> to vector<1x64x32xf32>
    %112 = vector.shape_cast %111 : vector<1x64x32xf32> to vector<64x32xf32>
    %113 = tpu.concatenate %110, %112 in 0 : vector<64x32xf32>, vector<64x32xf32> -> vector<128x32xf32>
    %114 = vector.extract_strided_slice %103 {offsets = [2, 0, 0], sizes = [1, 64, 32], strides = [1, 1, 1]} : vector<8x64x32xf32> to vector<1x64x32xf32>
    %115 = vector.shape_cast %114 : vector<1x64x32xf32> to vector<64x32xf32>
    %116 = vector.extract_strided_slice %103 {offsets = [6, 0, 0], sizes = [1, 64, 32], strides = [1, 1, 1]} : vector<8x64x32xf32> to vector<1x64x32xf32>
    %117 = vector.shape_cast %116 : vector<1x64x32xf32> to vector<64x32xf32>
    %118 = tpu.concatenate %115, %117 in 0 : vector<64x32xf32>, vector<64x32xf32> -> vector<128x32xf32>
    %119 = vector.extract_strided_slice %103 {offsets = [3, 0, 0], sizes = [1, 64, 32], strides = [1, 1, 1]} : vector<8x64x32xf32> to vector<1x64x32xf32>
    %120 = vector.shape_cast %119 : vector<1x64x32xf32> to vector<64x32xf32>
    %121 = vector.extract_strided_slice %103 {offsets = [7, 0, 0], sizes = [1, 64, 32], strides = [1, 1, 1]} : vector<8x64x32xf32> to vector<1x64x32xf32>
    %122 = vector.shape_cast %121 : vector<1x64x32xf32> to vector<64x32xf32>
    %123 = tpu.concatenate %120, %122 in 0 : vector<64x32xf32>, vector<64x32xf32> -> vector<128x32xf32>
    %124 = tpu.concatenate %108, %113, %118, %123 in 1 : vector<128x32xf32>, vector<128x32xf32>, vector<128x32xf32>, vector<128x32xf32> -> vector<128x128xf32>
    %c0_19 = arith.constant 0 : index
    %c0_20 = arith.constant 0 : index
    %125 = vector.load %arg5[%c0_19, %c0_20] : memref<128x128xf32, #tpu.memory_space<vmem>>, vector<128x128xf32>
    %cst_21 = arith.constant dense<0.000000e+00> : vector<128x128xf32>
    %126 = tpu.matmul %124, %125, %cst_21 {dimension_numbers = #tpu.dot_dimension_numbers<[1], [0], [0], [1], [0, 0, 1, 1], [], []>} : vector<128x128xf32>, vector<128x128xf32>, vector<128x128xf32> -> vector<128x128xf32>
    %c0_22 = arith.constant 0 : index
    %c0_23 = arith.constant 0 : index
    %127 = vector.load %arg6[%c0_22, %c0_23] : memref<1x128xf32, #tpu.memory_space<vmem>>, vector<1x128xf32>
    %128 = vector.broadcast %127 : vector<1x128xf32> to vector<128x128xf32>
    %129 = arith.addf %126, %128 : vector<128x128xf32>
    %130 = arith.addf %1, %129 : vector<128x128xf32>
    %c0_24 = arith.constant 0 : index
    %c0_25 = arith.constant 0 : index
    %131 = vector.load %arg7[%c0_24, %c0_25] : memref<1x128xf32, #tpu.memory_space<vmem>>, vector<1x128xf32>
    %c0_26 = arith.constant 0 : index
    %c0_27 = arith.constant 0 : index
    %132 = vector.load %arg8[%c0_26, %c0_27] : memref<1x128xf32, #tpu.memory_space<vmem>>, vector<1x128xf32>
    %cst_28 = arith.constant dense<0.000000e+00> : vector<128xf32>
    %133 = vector.multi_reduction <add>, %130, %cst_28 [1] : vector<128x128xf32> to vector<128xf32>
    %134 = vector.shape_cast %133 : vector<128xf32> to vector<128x1xf32>
    %cst_29 = arith.constant 1.280000e+02 : f32
    %135 = vector.broadcast %cst_29 : f32 to vector<128x1xf32>
    %136 = arith.divf %134, %135 : vector<128x1xf32>
    %137 = arith.mulf %130, %130 : vector<128x128xf32>
    %cst_30 = arith.constant dense<0.000000e+00> : vector<128xf32>
    %138 = vector.multi_reduction <add>, %137, %cst_30 [1] : vector<128x128xf32> to vector<128xf32>
    %139 = vector.shape_cast %138 : vector<128xf32> to vector<128x1xf32>
    %cst_31 = arith.constant 1.280000e+02 : f32
    %140 = vector.broadcast %cst_31 : f32 to vector<128x1xf32>
    %141 = arith.divf %139, %140 : vector<128x1xf32>
    %142 = arith.mulf %136, %136 : vector<128x1xf32>
    %143 = arith.subf %141, %142 : vector<128x1xf32>
    %144 = vector.broadcast %136 : vector<128x1xf32> to vector<128x128xf32>
    %145 = arith.subf %130, %144 : vector<128x128xf32>
    %cst_32 = arith.constant 9.99999974E-6 : f32
    %146 = vector.broadcast %cst_32 : f32 to vector<128x1xf32>
    %147 = arith.addf %143, %146 : vector<128x1xf32>
    %148 = math.rsqrt %147 : vector<128x1xf32>
    %149 = vector.broadcast %148 : vector<128x1xf32> to vector<128x128xf32>
    %150 = arith.mulf %145, %149 : vector<128x128xf32>
    %151 = vector.broadcast %131 : vector<1x128xf32> to vector<128x128xf32>
    %152 = arith.mulf %150, %151 : vector<128x128xf32>
    %153 = vector.broadcast %132 : vector<1x128xf32> to vector<128x128xf32>
    %154 = arith.addf %152, %153 : vector<128x128xf32>
    %c0_33 = arith.constant 0 : index
    %c0_34 = arith.constant 0 : index
    %155 = vector.load %arg9[%c0_33, %c0_34] : memref<128x512xf32, #tpu.memory_space<vmem>>, vector<128x512xf32>
    %cst_35 = arith.constant dense<0.000000e+00> : vector<128x512xf32>
    %156 = tpu.matmul %154, %155, %cst_35 {dimension_numbers = #tpu.dot_dimension_numbers<[1], [0], [0], [1], [0, 0, 1, 1], [], []>} : vector<128x128xf32>, vector<128x512xf32>, vector<128x512xf32> -> vector<128x512xf32>
    %c0_36 = arith.constant 0 : index
    %c0_37 = arith.constant 0 : index
    %157 = vector.load %arg10[%c0_36, %c0_37] : memref<1x512xf32, #tpu.memory_space<vmem>>, vector<1x512xf32>
    %158 = vector.broadcast %157 : vector<1x512xf32> to vector<128x512xf32>
    %159 = arith.addf %156, %158 : vector<128x512xf32>
    %cst_38 = arith.constant 0.000000e+00 : f32
    %160 = vector.broadcast %cst_38 : f32 to vector<128x512xf32>
    %161 = arith.maximumf %159, %160 : vector<128x512xf32>
    %c0_39 = arith.constant 0 : index
    %c0_40 = arith.constant 0 : index
    %162 = vector.load %arg11[%c0_39, %c0_40] : memref<512x128xf32, #tpu.memory_space<vmem>>, vector<512x128xf32>
    %cst_41 = arith.constant dense<0.000000e+00> : vector<128x128xf32>
    %163 = tpu.matmul %161, %162, %cst_41 {dimension_numbers = #tpu.dot_dimension_numbers<[1], [0], [0], [1], [0, 0, 1, 1], [], []>} : vector<128x512xf32>, vector<512x128xf32>, vector<128x128xf32> -> vector<128x128xf32>
    %c0_42 = arith.constant 0 : index
    %c0_43 = arith.constant 0 : index
    %164 = vector.load %arg12[%c0_42, %c0_43] : memref<1x128xf32, #tpu.memory_space<vmem>>, vector<1x128xf32>
    %165 = vector.broadcast %164 : vector<1x128xf32> to vector<128x128xf32>
    %166 = arith.addf %163, %165 : vector<128x128xf32>
    %167 = arith.addf %130, %166 : vector<128x128xf32>
    %168 = vector.shape_cast %167 : vector<128x128xf32> to vector<2x64x128xf32>
    %c0_44 = arith.constant 0 : index
    %c0_45 = arith.constant 0 : index
    %c0_46 = arith.constant 0 : index
    %169 = vector.load %arg13[%c0_44, %c0_45, %c0_46] : memref<2x64x128xf32, #tpu.memory_space<vmem>>, vector<2x64x128xf32>
    tpu.vector_store %arg13[%c0_44, %c0_45, %c0_46], %168 {strides = array<i32>} : memref<2x64x128xf32, #tpu.memory_space<vmem>>, vector<2x64x128xf32>,
    return
  }
  func.func @transform_0(%arg0: i32) -> (i32, i32, i32) {
    %c0_i32 = arith.constant 0 : i32
    %c0_i32_0 = arith.constant 0 : i32
    %c0_i32_1 = arith.constant 0 : i32
    return %arg0, %c0_i32, %c0_i32_0 : i32, i32, i32
  }
  func.func @transform_1(%arg0: i32) -> (i32, i32) {
    %c0_i32 = arith.constant 0 : i32
    %c0_i32_0 = arith.constant 0 : i32
    %c0_i32_1 = arith.constant 0 : i32
    return %c0_i32, %c0_i32_0 : i32, i32
  }
  func.func @transform_2(%arg0: i32) -> (i32, i32) {
    %c0_i32 = arith.constant 0 : i32
    %c0_i32_0 = arith.constant 0 : i32
    %c0_i32_1 = arith.constant 0 : i32
    return %c0_i32, %c0_i32_0 : i32, i32
  }
  func.func @transform_3(%arg0: i32) -> (i32, i32) {
    %c0_i32 = arith.constant 0 : i32
    %c0_i32_0 = arith.constant 0 : i32
    %c0_i32_1 = arith.constant 0 : i32
    return %c0_i32, %c0_i32_0 : i32, i32
  }
  func.func @transform_4(%arg0: i32) -> (i32, i32) {
    %c0_i32 = arith.constant 0 : i32
    %c0_i32_0 = arith.constant 0 : i32
    %c0_i32_1 = arith.constant 0 : i32
    return %c0_i32, %c0_i32_0 : i32, i32
  }
  func.func @transform_5(%arg0: i32) -> (i32, i32) {
    %c0_i32 = arith.constant 0 : i32
    %c0_i32_0 = arith.constant 0 : i32
    %c0_i32_1 = arith.constant 0 : i32
    return %c0_i32, %c0_i32_0 : i32, i32
  }
  func.func @transform_6(%arg0: i32) -> (i32, i32) {
    %c0_i32 = arith.constant 0 : i32
    %c0_i32_0 = arith.constant 0 : i32
    %c0_i32_1 = arith.constant 0 : i32
    return %c0_i32, %c0_i32_0 : i32, i32
  }
  func.func @transform_7(%arg0: i32) -> (i32, i32) {
    %c0_i32 = arith.constant 0 : i32
    %c0_i32_0 = arith.constant 0 : i32
    %c0_i32_1 = arith.constant 0 : i32
    return %c0_i32, %c0_i32_0 : i32, i32
  }
  func.func @transform_8(%arg0: i32) -> (i32, i32) {
    %c0_i32 = arith.constant 0 : i32
    %c0_i32_0 = arith.constant 0 : i32
    %c0_i32_1 = arith.constant 0 : i32
    return %c0_i32, %c0_i32_0 : i32, i32
  }
  func.func @transform_9(%arg0: i32) -> (i32, i32) {
    %c0_i32 = arith.constant 0 : i32
    %c0_i32_0 = arith.constant 0 : i32
    %c0_i32_1 = arith.constant 0 : i32
    return %c0_i32, %c0_i32_0 : i32, i32
  }
  func.func @transform_10(%arg0: i32) -> (i32, i32) {
    %c0_i32 = arith.constant 0 : i32
    %c0_i32_0 = arith.constant 0 : i32
    %c0_i32_1 = arith.constant 0 : i32
    return %c0_i32, %c0_i32_0 : i32, i32
  }
  func.func @transform_11(%arg0: i32) -> (i32, i32) {
    %c0_i32 = arith.constant 0 : i32
    %c0_i32_0 = arith.constant 0 : i32
    %c0_i32_1 = arith.constant 0 : i32
    return %c0_i32, %c0_i32_0 : i32, i32
  }
  func.func @transform_12(%arg0: i32) -> (i32, i32, i32) {
    %c0_i32 = arith.constant 0 : i32
    %c0_i32_0 = arith.constant 0 : i32
    %c0_i32_1 = arith.constant 0 : i32
    return %arg0, %c0_i32, %c0_i32_0 : i32, i32, i32
  }
}

</mosaic_0001>

<bundles_post_ra>
// kernel: transformer_block.1
= control target key start
LH: loop header
LB: loop body
LE: loop exit
PB: predicated region body
PF: predicated region fallthrough
CT: control target
= control target key end

     0   :  { %17 = vsyncpa [#allocation3], 0  ;;  %s10931_s0 = inlined_call_operand.vmem [shape: f32[2,64,128], index: 0, kind: input, shape index: {}]   ;;  %s10932_s1 = inlined_call_operand.vmem [shape: f32[1,128], index: 1, kind: input, shape index: {}]   ;;  %s10933_s2 = inlined_call_operand.vmem [shape: f32[1,128], index: 2, kind: input, shape index: {}]   ;;  %s10934_s3 = inlined_call_operand.vmem [shape: f32[128,384], index: 3, kind: input, shape index: {}]   ;;  %s10935_s4 = inlined_call_operand.vmem [shape: f32[128,128], index: 4, kind: input, shape index: {}]   ;;  %s10936_s5 = inlined_call_operand.vmem [shape: f32[1,128], index: 5, kind: input, shape index: {}]   ;;  %s10937_s6 = inlined_call_operand.vmem [shape: f32[1,128], index: 6, kind: input, shape index: {}]   ;;  %s10938_s7 = inlined_call_operand.vmem [shape: f32[1,128], index: 7, kind: input, shape index: {}]   ;;  %s10939_s8 = inlined_call_operand.vmem [shape: f32[128,512], index: 8, kind: input, shape index: {}]   ;;  %s10940_s9 = inlined_call_operand.vmem [shape: f32[1,512], index: 9, kind: input, shape index: {}]   ;;  %s10941_s10 = inlined_call_operand.hbm [shape: f32[512,128], index: 10, kind: input, shape index: {}]   ;;  %s10942_s11 = inlined_call_operand.vmem [shape: f32[1,128], index: 11, kind: input, shape index: {}]   ;;  %s10943_s12 = inlined_call_operand.hbm [shape: f32[2,64,128], index: 12, kind: output, shape index: {}]  }
   0x1   :  { %18 = vsyncpa [#allocation4], 0  ;;  %s8109_s21 = smov [#allocation2]   ;;  %s8061_s25 = scalar_lea.hbm %s10941_s10, 8192 }
   0x2   :  { %s44_s22 = sshll.u32 %s8109_s21, 4  ;;  %p8062_p0 = scmp.ne.s32.totalorder %s10941_s10, %s8061_s25  ;;  %s45_s22 = int_to_ptr.vmem [resolvable:$true] %s44_s22 }
   0x3   :  { %p8065_p1 = scmp.lt.u32.totalorder %s8061_s25, %s10941_s10 }
   0x5   :  { %p8067_p2 = pnand %p8065_p1, %p8062_p0 }
   0x7   :  { %8070 = shalt.err (!%p8067_p2)
}
   0x8   :  { %s8071_s30 = scalar_lea.vmem %s45_s22, 8192  ;;  %p8076_p4 = scmp.lt.s32.totalorder %s45_s22, %s45_s22 }
   0x9   :  { %p8072_p3 = scmp.ne.s32.totalorder %s45_s22, %s8071_s30  ;;  %p8077_p5 = scmp.lt.s32.totalorder %s8071_s30, %s8071_s30 }
   0xb   :  { %p8078_p6 = por %p8077_p5, %p8076_p4 }
   0xd   :  { %p8079_p7 = pnand %p8078_p6, %p8072_p3 }
   0xf   :  { %8082 = shalt.err (!%p8079_p7)
}
  0x10   :  { %s8110_s13 = smov 128   ;;  %s8111_s14 = smov 8  }
  0x11   :  { %50 = dma.hbm_to_vmem [thread:$0]  %s10941_s10, 8192, %s45_s22, [#allocation3], %s8110_s13, %s8110_s13, %s8111_s14  }
  0x12   :  { %8105 = dma.done.wait [#allocation3], 8192  }
  0x13   :  { %8106 = vsyncadd [#allocation3], 4294959104  ;;  %v8200_v0 = vld [vmem:[%s10931_s0 + $0x8] sm:$0xff]  ;;  %v8205_v1 = vld [vmem:[%s10931_s0] sm:$0xff]  ;;  %vm1100_vm0 = vcmask 261120   ;;  %s8115_s28 = smov 96  }
  0x14   :  { %76 = vadd.xlane.f32.xlu1 %v8200_v0  ;;  %74 = vadd.xlane.f32.xlu0 %v8205_v1  ;;  %v124_v2 = vmul.f32 %v8200_v0, %v8200_v0  ;;  %v123_v3 = vmul.f32 %v8205_v1, %v8205_v1  ;;  %v8216_v4 = vld [vmem:[%s10931_s0 + $0x10] sm:$0xff]  ;;  %v8223_v6 = vld [vmem:[%s10931_s0 + $0x18] sm:$0xff]  ;;  %v328_v7 = vld [vmem:[%s10934_s3 + $0x8] sm:$0xff]  ;;  %vm2277_vm3 = vcmask 523264   ;;  %vm4238_vm11 = vcmask 785408  }
  0x15   :  { %v125_v5 = vmul.f32 %v8216_v4, %v8216_v4  ;;  %v331_v8 = vld [vmem:[%s10934_s3 + $0x20] sm:$0xff]  ;;  %v330_v11 = vld [vmem:[%s10934_s3 + $0x18] sm:$0xff]  ;;  %v329_v12 = vld [vmem:[%s10934_s3 + $0x10] sm:$0xff]  ;;  %v126_v19 = vmul.f32 %v8223_v6, %v8223_v6 }
  0x16   :  { %v6813_v9 = vpack.c.bf16 %v331_v8, %v328_v7  ;;  %v327_v10 = vld [vmem:[%s10934_s3] sm:$0xff]  ;;  %v332_v14 = vld [vmem:[%s10934_s3 + $0x28] sm:$0xff]  ;;  %v334_v15 = vld [vmem:[%s10934_s3 + $0x38] sm:$0xff] }
  0x17   :  { %v6815_v13 = vpack.c.bf16 %v330_v11, %v327_v10  ;;  %v337_v16 = vld [vmem:[%s10934_s3 + $0x50] sm:$0xff]  ;;  %v6845_v17 = vpack.c.bf16 %v332_v14, %v329_v12  ;;  %v8255_v20 = vld [vmem:[%s10931_s0 + $0x20] sm:$0xff]  ;;  %v336_v22 = vld [vmem:[%s10934_s3 + $0x48] sm:$0xff] }
  0x18   :  { %141 = vadd.xlane.f32.xlu1 %v124_v2  ;;  %139 = vadd.xlane.f32.xlu0 %v123_v3  ;;  %v6817_v18 = vpack.c.bf16 %v337_v16, %v334_v15  ;;  %v333_v21 = vld [vmem:[%s10934_s3 + $0x30] sm:$0xff]  ;;  %v335_v23 = vld [vmem:[%s10934_s3 + $0x40] sm:$0xff]  ;;  %v127_v24 = vmul.f32 %v8255_v20, %v8255_v20  ;;  %v338_v26 = vld [vmem:[%s10934_s3 + $0x58] sm:$0xff] }
  0x19   :  { %6814 = vmatprep.subr.bf16.mxu0 %v6813_v9  ;;  %6846 = vmatprep.subr.bf16.mxu1 %v6845_v17  ;;  %v6819_v25 = vpack.c.bf16 %v336_v22, %v333_v21  ;;  %v8275_v27 = vld [vmem:[%s10931_s0 + $0x28] sm:$0xff]  ;;  %v6849_v28 = vpack.c.bf16 %v338_v26, %v335_v23  ;;  %v343_v30 = vld [vmem:[%s10934_s3 + $0x80] sm:$0xff]  ;;  %v342_v34 = vld [vmem:[%s10934_s3 + $0x78] sm:$0xff] }
  0x1a   :  { %6816 = vmatpush1.bf16.msra.mxu0 %v6815_v13  ;;  %6848 = vmatpush3.bf16.msra.mxu1 %v6845_v17  ;;  %v340_v29 = vld [vmem:[%s10934_s3 + $0x68] sm:$0xff]  ;;  %v128_v32 = vmul.f32 %v8275_v27, %v8275_v27  ;;  %v339_v33 = vld [vmem:[%s10934_s3 + $0x60] sm:$0xff]  ;;  %v341_v35 = vld [vmem:[%s10934_s3 + $0x70] sm:$0xff] }
  0x1b   :  { %6818 = vmatprep.subr.bf16.mxu0 %v6817_v18  ;;  %6850 = vmatprep.subr.bf16.mxu1 %v6849_v28  ;;  %v6821_v31 = vpack.c.bf16 %v343_v30, %v340_v29  ;;  %v8298_v36 = vld [vmem:[%s10931_s0 + $0x30] sm:$0xff]  ;;  %v6823_v37 = vpack.c.bf16 %v342_v34, %v339_v33  ;;  %v344_v38 = vld [vmem:[%s10934_s3 + $0x88] sm:$0xff]  ;;  %v346_v40 = vld [vmem:[%s10934_s3 + $0x98] sm:$0xff] }
  0x1c   :  { %78 = vadd.xlane.f32.xlu0 %v8216_v4  ;;  %143 = vadd.xlane.f32.xlu1 %v125_v5  ;;  %v6853_v39 = vpack.c.bf16 %v344_v38, %v341_v35  ;;  %v349_v41 = vld [vmem:[%s10934_s3 + $0xb0] sm:$0xff]  ;;  %v129_v42 = vmul.f32 %v8298_v36, %v8298_v36  ;;  %v348_v45 = vld [vmem:[%s10934_s3 + $0xa8] sm:$0xff]  ;;  %v347_v46 = vld [vmem:[%s10934_s3 + $0xa0] sm:$0xff] }
  0x1d   :  { %v6825_v43 = vpack.c.bf16 %v349_v41, %v346_v40  ;;  %v345_v44 = vld [vmem:[%s10934_s3 + $0x90] sm:$0xff]  ;;  %v8324_v47 = vld [vmem:[%s10931_s0 + $0x38] sm:$0xff]  ;;  %v352_v51 = vld [vmem:[%s10934_s3 + $0xc8] sm:$0xff]  ;;  %v10944_v40 = vmov 0.0  }
  0x1e   :  { %6820 = vmatpush1.bf16.msra.mxu0 %v6819_v25  ;;  %6852 = vmatpush3.bf16.msra.mxu1 %v6849_v28  ;;  %v6827_v48 = vpack.c.bf16 %v348_v45, %v345_v44  ;;  %v350_v49 = vld [vmem:[%s10934_s3 + $0xb8] sm:$0xff]  ;;  %v355_v52 = vld [vmem:[%s10934_s3 + $0xe0] sm:$0xff]  ;;  %v130_v53 = vmul.f32 %v8324_v47, %v8324_v47  ;;  %v353_v57 = vld [vmem:[%s10934_s3 + $0xd0] sm:$0xff] }
  0x1f   :  { %6822 = vmatprep.subr.bf16.mxu0 %v6821_v31  ;;  %6854 = vmatprep.subr.bf16.mxu1 %v6853_v39  ;;  %v6857_v50 = vpack.c.bf16 %v350_v49, %v347_v46  ;;  %v6829_v54 = vpack.c.bf16 %v355_v52, %v352_v51  ;;  %v351_v55 = vld [vmem:[%s10934_s3 + $0xc0] sm:$0xff]  ;;  %v354_v56 = vld [vmem:[%s10934_s3 + $0xd8] sm:$0xff]  ;;  %v356_v60 = vld [vmem:[%s10934_s3 + $0xe8] sm:$0xff] }
  0x20   :  { %80 = vadd.xlane.f32.xlu0 %v8223_v6  ;;  %145 = vadd.xlane.f32.xlu1 %v126_v19  ;;  %v8350_v58 = vld [vmem:[%s10931_s0 + $0x40] sm:$0xff]  ;;  %v6831_v59 = vpack.c.bf16 %v354_v56, %v351_v55  ;;  %v6861_v61 = vpack.c.bf16 %v356_v60, %v353_v57  ;;  %v358_v62 = vld [vmem:[%s10934_s3 + $0xf8] sm:$0xff]  ;;  %v361_v63 = vld [vmem:[%s10934_s3 + $0x110] sm:$0xff] }
  0x21   :  { %v131_v2 = vmul.f32 %v8350_v58, %v8350_v58  ;;  %v6833_v3 = vpack.c.bf16 %v361_v63, %v358_v62  ;;  %v357_v5 = vld [vmem:[%s10934_s3 + $0xf0] sm:$0xff]  ;;  %v360_v7 = vld [vmem:[%s10934_s3 + $0x108] sm:$0xff]  ;;  %v359_v8 = vld [vmem:[%s10934_s3 + $0x100] sm:$0xff]  ;;  %439 = vmatprep.mubr.f32.mxu0 %v10944_v40 }
  0x22   :  { %6824 = vmatpush1.bf16.msra.mxu0 %v6823_v37  ;;  %6856 = vmatpush3.bf16.msra.mxu1 %v6853_v39  ;;  %v8376_v9 = vld [vmem:[%s10931_s0 + $0x48] sm:$0xff]  ;;  %v6835_v10 = vpack.c.bf16 %v360_v7, %v357_v5  ;;  %v362_v11 = vld [vmem:[%s10934_s3 + $0x118] sm:$0xff]  ;;  %v367_v14 = vld [vmem:[%s10934_s3 + $0x140] sm:$0xff] }
  0x23   :  { %6826 = vmatprep.subr.bf16.mxu0 %v6825_v43  ;;  %6858 = vmatprep.subr.bf16.mxu1 %v6857_v50  ;;  %v6865_v12 = vpack.c.bf16 %v362_v11, %v359_v8  ;;  %v364_v13 = vld [vmem:[%s10934_s3 + $0x128] sm:$0xff]  ;;  %v132_v15 = vmul.f32 %v8376_v9, %v8376_v9  ;;  %v363_v17 = vld [vmem:[%s10934_s3 + $0x120] sm:$0xff]  ;;  %v366_v18 = vld [vmem:[%s10934_s3 + $0x138] sm:$0xff] }
  0x24   :  { %82 = vadd.xlane.f32.xlu0 %v8255_v20  ;;  %147 = vadd.xlane.f32.xlu1 %v127_v24  ;;  %v6837_v16 = vpack.c.bf16 %v367_v14, %v364_v13  ;;  %v365_v19 = vld [vmem:[%s10934_s3 + $0x130] sm:$0xff]  ;;  %v6839_v22 = vpack.c.bf16 %v366_v18, %v363_v17  ;;  %v368_v23 = vld [vmem:[%s10934_s3 + $0x148] sm:$0xff]  ;;  %v370_v25 = vld [vmem:[%s10934_s3 + $0x158] sm:$0xff] }
  0x25   :  { %v8402_v21 = vld [vmem:[%s10931_s0 + $0x50] sm:$0xff]  ;;  %v6869_v24 = vpack.c.bf16 %v368_v23, %v365_v19  ;;  %v372_v31 = vld [vmem:[%s10934_s3 + $0x168] sm:$0xff]  ;;  %v8428_v33 = vld [vmem:[%s10931_s0 + $0x58] sm:$0xff] }
  0x26   :  { %6828 = vmatpush1.bf16.msra.mxu0 %v6827_v48  ;;  %6860 = vmatpush3.bf16.msra.mxu1 %v6857_v50  ;;  %v373_v26 = vld [vmem:[%s10934_s3 + $0x170] sm:$0xff]  ;;  %v133_v28 = vmul.f32 %v8402_v21, %v8402_v21  ;;  %v374_v35 = vld [vmem:[%s10934_s3 + $0x178] sm:$0xff]  ;;  %v134_v38 = vmul.f32 %v8428_v33, %v8428_v33  ;;  %v8439_v39 = vld [vmem:[%s10931_s0 + $0x60] sm:$0xff] }
  0x27   :  { %6830 = vmatprep.subr.bf16.mxu0 %v6829_v54  ;;  %6862 = vmatprep.subr.bf16.mxu1 %v6861_v61  ;;  %v6841_v29 = vpack.c.bf16 %v373_v26, %v370_v25  ;;  %v369_v30 = vld [vmem:[%s10934_s3 + $0x150] sm:$0xff]  ;;  %v135_v41 = vmul.f32 %v8439_v39, %v8439_v39  ;;  %v8464_v46 = vld [vmem:[%s10931_s0 + $0x78] sm:$0xff]  ;;  %vm8601_vm1 = vmpackc.low %vm1100_vm0, %vm1100_vm0 }
  0x28   :  { %84 = vadd.xlane.f32.xlu0 %v8275_v27  ;;  %149 = vadd.xlane.f32.xlu1 %v128_v32  ;;  %v371_v32 = vld [vmem:[%s10934_s3 + $0x160] sm:$0xff]  ;;  %v6843_v34 = vpack.c.bf16 %v372_v31, %v369_v30  ;;  %v8456_v44 = vld [vmem:[%s10931_s0 + $0x70] sm:$0xff]  ;;  %v138_v48 = vmul.f32 %v8464_v46, %v8464_v46 }
  0x29   :  { %v6873_v37 = vpack.c.bf16 %v374_v35, %v371_v32  ;;  %v137_v45 = vmul.f32 %v8456_v44, %v8456_v44 }
  0x2a   :  { %6832 = vmatpush1.bf16.msra.mxu0 %v6831_v59  ;;  %6864 = vmatpush3.bf16.msra.mxu1 %v6861_v61 }
  0x2b   :  { %6834 = vmatprep.subr.bf16.mxu0 %v6833_v3  ;;  %6866 = vmatprep.subr.bf16.mxu1 %v6865_v12 }
  0x2c   :  { %86 = vadd.xlane.f32.xlu0 %v8298_v36  ;;  %151 = vadd.xlane.f32.xlu1 %v129_v42  ;;  %v8448_v42 = vld [vmem:[%s10931_s0 + $0x68] sm:$0xff] }
  0x2d   :  { %v136_v43 = vmul.f32 %v8448_v42, %v8448_v42 }
  0x2e   :  { %6836 = vmatpush1.bf16.msra.mxu0 %v6835_v10  ;;  %6868 = vmatpush3.bf16.msra.mxu1 %v6865_v12 }
  0x2f   :  { %6838 = vmatprep.subr.bf16.mxu0 %v6837_v16  ;;  %6870 = vmatprep.subr.bf16.mxu1 %v6869_v24 }
  0x30   :  { %88 = vadd.xlane.f32.xlu0 %v8324_v47  ;;  %153 = vadd.xlane.f32.xlu1 %v130_v53 }
  0x32   :  { %6840 = vmatpush1.bf16.msra.mxu0 %v6839_v22  ;;  %6872 = vmatpush3.bf16.msra.mxu1 %v6869_v24 }
  0x33   :  { %6842 = vmatprep.subr.bf16.mxu0 %v6841_v29  ;;  %6874 = vmatprep.subr.bf16.mxu1 %v6873_v37 }
  0x34   :  { %90 = vadd.xlane.f32.xlu0 %v8350_v58  ;;  %155 = vadd.xlane.f32.xlu1 %v131_v2 }
  0x36   :  { %6844 = vmatpush1.bf16.msra.mxu0 %v6843_v34  ;;  %6876 = vmatpush3.bf16.msra.mxu1 %v6873_v37  ;;  %v8481_v37 = vld [vmem:[%s10932_s1] ss:$0 sm:$0xff]  ;;  %s8113_s1 = smov 64  }
  0x38   :  { %92 = vadd.xlane.f32.xlu0 %v8376_v9  ;;  %157 = vadd.xlane.f32.xlu1 %v132_v15 }
  0x3c   :  { %94 = vadd.xlane.f32.xlu0 %v8402_v21  ;;  %159 = vadd.xlane.f32.xlu1 %v133_v28 }
  0x40   :  { %96 = vadd.xlane.f32.xlu0 %v8428_v33  ;;  %161 = vadd.xlane.f32.xlu1 %v134_v38 }
  0x44   :  { %98 = vadd.xlane.f32.xlu0 %v8439_v39  ;;  %163 = vadd.xlane.f32.xlu1 %v135_v41 }
  0x48   :  { %100 = vadd.xlane.f32.xlu0 %v8448_v42  ;;  %165 = vadd.xlane.f32.xlu1 %v136_v43 }
  0x4c   :  { %102 = vadd.xlane.f32.xlu0 %v8456_v44  ;;  %167 = vadd.xlane.f32.xlu1 %v137_v45 }
  0x50   :  { %104 = vadd.xlane.f32.xlu0 %v8464_v46  ;;  %169 = vadd.xlane.f32.xlu1 %v138_v48 }
  0xa1   :  { %v77_v49 = vpop.xlane.xlu1 %76  ;;  %v75_v50 = vpop.xlane.xlu0 %74 }
  0xa2   :  { %v108_v51 = vmul.f32 0.0078125, %v77_v49  ;;  %v107_v52 = vmul.f32 0.0078125, %v75_v50  ;;  %v8488_v49 = vld [vmem:[%s10933_s2] ss:$0 sm:$0xff]  ;;  %s8114_s2 = smov 32  }
  0xa4   :  { %v188_v53 = vmul.f32 %v108_v51, %v108_v51  ;;  %v187_v56 = vmul.f32 %v107_v52, %v107_v52  ;;  %v220_v26 = vsub.f32 %v8200_v0, %v108_v51  ;;  %v219_v28 = vsub.f32 %v8205_v1, %v107_v52 }
  0xa5   :  { %v142_v54 = vpop.xlane.xlu1 %141  ;;  %v140_v55 = vpop.xlane.xlu0 %139 }
  0xa6   :  { %v172_v57 = vmul.f32 0.0078125, %v142_v54  ;;  %v171_v59 = vmul.f32 0.0078125, %v140_v55 }
  0xa8   :  { %v204_v60 = vsub.f32 %v172_v57, %v188_v53  ;;  %v203_v61 = vsub.f32 %v171_v59, %v187_v56 }
  0xa9   :  { %v79_v62 = vpop.xlane.xlu0 %78  ;;  %v144_v63 = vpop.xlane.xlu1 %143 }
  0xaa   :  { %v236_v2 = vadd.f32 1e-05, %v204_v60  ;;  %v235_v3 = vadd.f32 1e-05, %v203_v61  ;;  %v109_v5 = vmul.f32 0.0078125, %v79_v62  ;;  %v173_v7 = vmul.f32 0.0078125, %v144_v63 }
  0xac   :  { %7725 = vrsqrt.f32 %v236_v2  ;;  %v189_v8 = vmul.f32 %v109_v5, %v109_v5  ;;  %v221_v54 = vsub.f32 %v8216_v4, %v109_v5 }
  0xad   :  { %7727 = vrsqrt.f32 %v235_v3  ;;  %v81_v10 = vpop.xlane.xlu0 %80  ;;  %v146_v11 = vpop.xlane.xlu1 %145 }
  0xae   :  { %v205_v12 = vsub.f32 %v173_v7, %v189_v8  ;;  %v110_v13 = vmul.f32 0.0078125, %v81_v10  ;;  %v174_v14 = vmul.f32 0.0078125, %v146_v11 }
  0xb0   :  { %v237_v15 = vadd.f32 1e-05, %v205_v12  ;;  %v190_v16 = vmul.f32 %v110_v13, %v110_v13  ;;  %v222_v4 = vsub.f32 %v8223_v6, %v110_v13 }
  0xb1   :  { %v83_v17 = vpop.xlane.xlu0 %82  ;;  %v148_v18 = vpop.xlane.xlu1 %147 }
  0xb2   :  { %7729 = vrsqrt.f32 %v237_v15  ;;  %v206_v19 = vsub.f32 %v174_v14, %v190_v16  ;;  %v8470_v22 = vmul.f32 0.0078125, %v83_v17  ;;  %v175_v23 = vmul.f32 0.0078125, %v148_v18 }
  0xb4   :  { %v238_v24 = vadd.f32 1e-05, %v206_v19  ;;  %v191_v25 = vmul.f32 %v8470_v22, %v8470_v22  ;;  %v223_v19 = vsub.f32 %v8255_v20, %v8470_v22 }
  0xb5   :  { %v85_v29 = vpop.xlane.xlu0 %84  ;;  %v150_v30 = vpop.xlane.xlu1 %149 }
  0xb6   :  { %v7726_v31 = vpop.eup %7725  ;;  %7731 = vrsqrt.f32 %v238_v24  ;;  %v207_v32 = vsub.f32 %v175_v23, %v191_v25  ;;  %v8476_v34 = vmul.f32 0.0078125, %v85_v29  ;;  %v176_v35 = vmul.f32 0.0078125, %v150_v30 }
  0xb7   :  { %v7728_v38 = vpop.eup %7727  ;;  %v268_v41 = vmul.f32 %v7726_v31, %v220_v26 }
  0xb8   :  { %v239_v43 = vadd.f32 1e-05, %v207_v32  ;;  %v192_v0 = vmul.f32 %v8476_v34, %v8476_v34  ;;  %v267_v1 = vmul.f32 %v7728_v38, %v219_v28  ;;  %v224_v22 = vsub.f32 %v8275_v27, %v8476_v34 }
  0xb9   :  { %v87_v45 = vpop.xlane.xlu0 %86  ;;  %v152_v48 = vpop.xlane.xlu1 %151  ;;  %v290_v50 = vmul.f32 %v8481_v37, %v268_v41 }
  0xba   :  { %7733 = vrsqrt.f32 %v239_v43  ;;  %v208_v51 = vsub.f32 %v176_v35, %v192_v0  ;;  %v8491_v52 = vmul.f32 0.0078125, %v87_v45  ;;  %v177_v53 = vmul.f32 0.0078125, %v152_v48 }
  0xbb   :  { %v289_v55 = vmul.f32 %v8481_v37, %v267_v1  ;;  %v312_v60 = vadd.f32 %v8488_v49, %v290_v50 }
  0xbc   :  { %v7730_v56 = vpop.eup %7729  ;;  %v240_v57 = vadd.f32 1e-05, %v208_v51  ;;  %v193_v59 = vmul.f32 %v8491_v52, %v8491_v52  ;;  %v225_v34 = vsub.f32 %v8298_v36, %v8491_v52 }
  0xbd   :  { %v311_v61 = vadd.f32 %v8488_v49, %v289_v55  ;;  %v89_v62 = vpop.xlane.xlu0 %88  ;;  %v154_v63 = vpop.xlane.xlu1 %153  ;;  %v269_v2 = vmul.f32 %v7730_v56, %v221_v54 }
  0xbe   :  { %7735 = vrsqrt.f32 %v240_v57  ;;  %v209_v3 = vsub.f32 %v177_v53, %v193_v59  ;;  %v8499_v7 = vmul.f32 0.0078125, %v89_v62  ;;  %v178_v8 = vmul.f32 0.0078125, %v154_v63 }
  0xbf   :  { %440 = vmatmul.mubr.f32.vlgmr.msra.gmra.mrb[0].mxu0 %v311_v61  ;;  %6285 = vmatprep.mubr.f32.mxu1 %v311_v61  ;;  %v291_v5 = vmul.f32 %v8481_v37, %v269_v2 }
  0xc0   :  { %v7732_v10 = vpop.eup %7731  ;;  %v241_v11 = vadd.f32 1e-05, %v209_v3  ;;  %6286 = vmatmul.mubr.f32.vlgmr.msra.gmra.mrb[0].mxu1 %v312_v60  ;;  %v194_v12 = vmul.f32 %v8499_v7, %v8499_v7  ;;  %445 = vmatprep.mubr.f32.mxu0 %v10944_v40  ;;  %v226_v52 = vsub.f32 %v8324_v47, %v8499_v7 }
  0xc1   :  { %v313_v14 = vadd.f32 %v8488_v49, %v291_v5  ;;  %v270_v15 = vmul.f32 %v7732_v10, %v222_v4  ;;  %v91_v16 = vpop.xlane.xlu0 %90  ;;  %v156_v17 = vpop.xlane.xlu1 %155 }
  0xc2   :  { %7737 = vrsqrt.f32 %v241_v11  ;;  %v210_v18 = vsub.f32 %v178_v8, %v194_v12  ;;  %v8507_v6 = vmul.f32 0.0078125, %v91_v16  ;;  %v179_v13 = vmul.f32 0.0078125, %v156_v17 }
  0xc3   :  { %446 = vmatmul.mubr.f32.gmra.mrb[2].mxu0 %v312_v60  ;;  %6288 = vmatprep.mubr.f32.mxu1 %v313_v14  ;;  %v292_v23 = vmul.f32 %v8481_v37, %v270_v15 }
  0xc4   :  { %v7734_v24 = vpop.eup %7733  ;;  %v242_v25 = vadd.f32 1e-05, %v210_v18  ;;  %451 = vmatprep.mubr.f32.mxu0 %v10944_v40  ;;  %v195_v26 = vmul.f32 %v8507_v6, %v8507_v6  ;;  %v227_v10 = vsub.f32 %v8350_v58, %v8507_v6 }
  0xc5   :  { %v314_v28 = vadd.f32 %v8488_v49, %v292_v23  ;;  %v271_v29 = vmul.f32 %v7734_v24, %v223_v19  ;;  %v93_v30 = vpop.xlane.xlu0 %92  ;;  %v158_v31 = vpop.xlane.xlu1 %157 }
  0xc6   :  { %7739 = vrsqrt.f32 %v242_v25  ;;  %v211_v32 = vsub.f32 %v179_v13, %v195_v26  ;;  %v8516_v35 = vmul.f32 0.0078125, %v93_v30  ;;  %v180_v20 = vmul.f32 0.0078125, %v158_v31 }
  0xc7   :  { %452 = vmatmul.mubr.f32.gmra.mrb[4].mxu0 %v313_v14  ;;  %6289 = vmatmul.mubr.f32.gmra.mrb[2].mxu1 %v314_v28  ;;  %v293_v38 = vmul.f32 %v8481_v37, %v271_v29 }
  0xc8   :  { %v7736_v41 = vpop.eup %7735  ;;  %457 = vmatprep.mubr.f32.mxu0 %v10944_v40  ;;  %v243_v43 = vadd.f32 1e-05, %v211_v32  ;;  %v196_v0 = vmul.f32 %v8516_v35, %v8516_v35  ;;  %v228_v6 = vsub.f32 %v8376_v9, %v8516_v35 }
  0xc9   :  { %v315_v1 = vadd.f32 %v8488_v49, %v293_v38  ;;  %v272_v45 = vmul.f32 %v7736_v41, %v224_v22  ;;  %v95_v48 = vpop.xlane.xlu0 %94  ;;  %v160_v50 = vpop.xlane.xlu1 %159 }
  0xca   :  { %7741 = vrsqrt.f32 %v243_v43  ;;  %v212_v51 = vsub.f32 %v180_v20, %v196_v0  ;;  %v8525_v53 = vmul.f32 0.0078125, %v95_v48  ;;  %v181_v27 = vmul.f32 0.0078125, %v160_v50 }
  0xcb   :  { %458 = vmatmul.mubr.f32.gmra.mrb[6].mxu0 %v314_v28  ;;  %6291 = vmatprep.mubr.f32.mxu1 %v315_v1  ;;  %v294_v54 = vmul.f32 %v8481_v37, %v272_v45 }
  0xcc   :  { %v7738_v55 = vpop.eup %7737  ;;  %463 = vmatprep.mubr.f32.mxu0 %v10944_v40  ;;  %v244_v56 = vadd.f32 1e-05, %v212_v51  ;;  %v197_v57 = vmul.f32 %v8525_v53, %v8525_v53  ;;  %v229_v35 = vsub.f32 %v8402_v21, %v8525_v53 }
  0xcd   :  { %v316_v59 = vadd.f32 %v8488_v49, %v294_v54  ;;  %v273_v60 = vmul.f32 %v7738_v55, %v225_v34  ;;  %v97_v61 = vpop.xlane.xlu0 %96  ;;  %v162_v62 = vpop.xlane.xlu1 %161 }
  0xce   :  { %7743 = vrsqrt.f32 %v244_v56  ;;  %v213_v63 = vsub.f32 %v181_v27, %v197_v57  ;;  %v8534_v2 = vmul.f32 0.0078125, %v97_v61  ;;  %v182_v36 = vmul.f32 0.0078125, %v162_v62 }
  0xcf   :  { %464 = vmatmul.mubr.f32.gmra.mrb[8].mxu0 %v315_v1  ;;  %6292 = vmatmul.mubr.f32.gmra.mrb[4].mxu1 %v316_v59  ;;  %v295_v3 = vmul.f32 %v8481_v37, %v273_v60 }
  0xd0   :  { %v7740_v8 = vpop.eup %7739  ;;  %469 = vmatprep.mubr.f32.mxu0 %v10944_v40  ;;  %v245_v4 = vadd.f32 1e-05, %v213_v63  ;;  %v198_v5 = vmul.f32 %v8534_v2, %v8534_v2  ;;  %v230_v21 = vsub.f32 %v8428_v33, %v8534_v2 }
  0xd1   :  { %v317_v11 = vadd.f32 %v8488_v49, %v295_v3  ;;  %v274_v12 = vmul.f32 %v7740_v8, %v226_v52  ;;  %v99_v14 = vpop.xlane.xlu0 %98  ;;  %v164_v15 = vpop.xlane.xlu1 %163 }
  0xd2   :  { %7745 = vrsqrt.f32 %v245_v4  ;;  %v214_v47 = vsub.f32 %v182_v36, %v198_v5  ;;  %v8545_v7 = vmul.f32 0.0078125, %v99_v14  ;;  %v183_v16 = vmul.f32 0.0078125, %v164_v15 }
  0xd3   :  { %470 = vmatmul.mubr.f32.gmra.mrb[10].mxu0 %v316_v59  ;;  %v296_v17 = vmul.f32 %v8481_v37, %v274_v12  ;;  %6294 = vmatprep.mubr.f32.mxu1 %v317_v11 }
  0xd4   :  { %v7742_v18 = vpop.eup %7741  ;;  %475 = vmatprep.mubr.f32.mxu0 %v10944_v40  ;;  %v246_v13 = vadd.f32 1e-05, %v214_v47  ;;  %v199_v58 = vmul.f32 %v8545_v7, %v8545_v7  ;;  %v231_v33 = vsub.f32 %v8439_v39, %v8545_v7 }
  0xd5   :  { %v318_v19 = vadd.f32 %v8488_v49, %v296_v17  ;;  %v101_v23 = vpop.xlane.xlu0 %100  ;;  %v166_v24 = vpop.xlane.xlu1 %165  ;;  %v275_v25 = vmul.f32 %v7742_v18, %v227_v10 }
  0xd6   :  { %7747 = vrsqrt.f32 %v246_v13  ;;  %v215_v26 = vsub.f32 %v183_v16, %v199_v58  ;;  %v8554_v28 = vmul.f32 0.0078125, %v101_v23  ;;  %v184_v29 = vmul.f32 0.0078125, %v166_v24 }
  0xd7   :  { %476 = vmatmul.mubr.f32.gmra.mrb[12].mxu0 %v317_v11  ;;  %6295 = vmatmul.mubr.f32.gmra.mrb[6].mxu1 %v318_v19  ;;  %v297_v30 = vmul.f32 %v8481_v37, %v275_v25 }
  0xd8   :  { %v7744_v31 = vpop.eup %7743  ;;  %481 = vmatprep.mubr.f32.mxu0 %v10944_v40  ;;  %v247_v32 = vadd.f32 1e-05, %v215_v26  ;;  %v200_v9 = vmul.f32 %v8554_v28, %v8554_v28  ;;  %v232_v4 = vsub.f32 %v8448_v42, %v8554_v28 }
  0xd9   :  { %v319_v20 = vadd.f32 %v8488_v49, %v297_v30  ;;  %v276_v22 = vmul.f32 %v7744_v31, %v228_v6  ;;  %v103_v38 = vpop.xlane.xlu0 %102  ;;  %v168_v41 = vpop.xlane.xlu1 %167 }
  0xda   :  { %7749 = vrsqrt.f32 %v247_v32  ;;  %v216_v43 = vsub.f32 %v184_v29, %v200_v9  ;;  %v121_v0 = vmul.f32 0.0078125, %v103_v38  ;;  %v185_v1 = vmul.f32 0.0078125, %v168_v41 }
  0xdb   :  { %482 = vmatmul.mubr.f32.gmra.mrb[14].mxu0 %v318_v19  ;;  %v298_v45 = vmul.f32 %v8481_v37, %v276_v22  ;;  %6297 = vmatprep.mubr.f32.mxu1 %v319_v20 }
  0xdc   :  { %v7746_v48 = vpop.eup %7745  ;;  %v248_v50 = vadd.f32 1e-05, %v216_v43  ;;  %487 = vmatprep.mubr.f32.mxu0 %v10944_v40  ;;  %v201_v51 = vmul.f32 %v121_v0, %v121_v0  ;;  %v233_v15 = vsub.f32 %v8456_v44, %v121_v0 }
  0xdd   :  { %v320_v53 = vadd.f32 %v8488_v49, %v298_v45  ;;  %v277_v27 = vmul.f32 %v7746_v48, %v229_v35  ;;  %v105_v34 = vpop.xlane.xlu0 %104  ;;  %v170_v54 = vpop.xlane.xlu1 %169 }
  0xde   :  { %7751 = vrsqrt.f32 %v248_v50  ;;  %v217_v55 = vsub.f32 %v185_v1, %v201_v51  ;;  %v122_v56 = vmul.f32 0.0078125, %v105_v34  ;;  %v186_v57 = vmul.f32 0.0078125, %v170_v54 }
  0xdf   :  { %488 = vmatmul.mubr.f32.gmra.mrb[16].mxu0 %v319_v20  ;;  %v299_v59 = vmul.f32 %v8481_v37, %v277_v27  ;;  %6298 = vmatmul.mubr.f32.gmra.mrb[8].mxu1 %v320_v53 }
  0xe0   :  { %v7748_v60 = vpop.eup %7747  ;;  %493 = vmatprep.mubr.f32.mxu0 %v10944_v40  ;;  %v249_v61 = vadd.f32 1e-05, %v217_v55  ;;  %v202_v62 = vmul.f32 %v122_v56, %v122_v56  ;;  %v234_v16 = vsub.f32 %v8464_v46, %v122_v56 }
  0xe1   :  { %v321_v63 = vadd.f32 %v8488_v49, %v299_v59  ;;  %v278_v2 = vmul.f32 %v7748_v60, %v230_v21 }
  0xe2   :  { %7753 = vrsqrt.f32 %v249_v61  ;;  %v218_v36 = vsub.f32 %v186_v57, %v202_v62 }
  0xe3   :  { %494 = vmatmul.mubr.f32.gmra.mrb[18].mxu0 %v320_v53  ;;  %v300_v52 = vmul.f32 %v8481_v37, %v278_v2  ;;  %6300 = vmatprep.mubr.f32.mxu1 %v321_v63 }
  0xe4   :  { %v7750_v3 = vpop.eup %7749  ;;  %499 = vmatprep.mubr.f32.mxu0 %v10944_v40  ;;  %v250_v8 = vadd.f32 1e-05, %v218_v36 }
  0xe5   :  { %v322_v5 = vadd.f32 %v8488_v49, %v300_v52  ;;  %v279_v10 = vmul.f32 %v7750_v3, %v231_v33 }
  0xe6   :  { %7755 = vrsqrt.f32 %v250_v8 }
  0xe7   :  { %500 = vmatmul.mubr.f32.gmra.mrb[20].mxu0 %v321_v63  ;;  %v301_v39 = vmul.f32 %v8481_v37, %v279_v10  ;;  %6301 = vmatmul.mubr.f32.gmra.mrb[10].mxu1 %v322_v5 }
  0xe8   :  { %v7752_v11 = vpop.eup %7751  ;;  %505 = vmatprep.mubr.f32.mxu0 %v10944_v40 }
  0xe9   :  { %v323_v12 = vadd.f32 %v8488_v49, %v301_v39  ;;  %v280_v14 = vmul.f32 %v7752_v11, %v232_v4 }
  0xeb   :  { %506 = vmatmul.mubr.f32.gmra.mrb[22].mxu0 %v322_v5  ;;  %v302_v47 = vmul.f32 %v8481_v37, %v280_v14  ;;  %6303 = vmatprep.mubr.f32.mxu1 %v323_v12 }
  0xec   :  { %v7754_v42 = vpop.eup %7753  ;;  %511 = vmatprep.mubr.f32.mxu0 %v10944_v40 }
  0xed   :  { %v324_v7 = vadd.f32 %v8488_v49, %v302_v47  ;;  %v281_v17 = vmul.f32 %v7754_v42, %v233_v15 }
  0xef   :  { %512 = vmatmul.mubr.f32.gmra.mrb[24].mxu0 %v323_v12  ;;  %6304 = vmatmul.mubr.f32.gmra.mrb[12].mxu1 %v324_v7  ;;  %v303_v18 = vmul.f32 %v8481_v37, %v281_v17 }
  0xf0   :  { %v7756_v13 = vpop.eup %7755  ;;  %517 = vmatprep.mubr.f32.mxu0 %v10944_v40 }
  0xf1   :  { %v325_v44 = vadd.f32 %v8488_v49, %v303_v18  ;;  %v282_v58 = vmul.f32 %v7756_v13, %v234_v16 }
  0xf3   :  { %518 = vmatmul.mubr.f32.gmra.mrb[26].mxu0 %v324_v7  ;;  %v304_v6 = vmul.f32 %v8481_v37, %v282_v58  ;;  %6306 = vmatprep.mubr.f32.mxu1 %v325_v44 }
  0xf4   :  { %523 = vmatprep.mubr.f32.mxu0 %v10944_v40 }
  0xf5   :  { %v326_v19 = vadd.f32 %v8488_v49, %v304_v6 }
  0xf7   :  { %524 = vmatmul.mubr.f32.gmra.mrb[28].mxu0 %v325_v44  ;;  %6307 = vmatmul.mubr.f32.gmra.mrb[14].mxu1 %v326_v19 }
  0xf8   :  { %529 = vmatprep.mubr.f32.mxu0 %v10944_v40 }
  0xfb   :  { %530 = vmatmul.mubr.f32.gmra.mrb[30].mxu0 %v326_v19 }
 0x192   :  { %v441_v46 = vpop.f32.mrb[0].mxu0 }
 0x193   :  { %v681_v23 = vmul.f32 0.088388346, %v441_v46  ;;  %v443_v24 = vpop.f32.mrb[1].mxu0  ;;  %v6287_v25 = vpop.f32.mrb[0].mxu1 }
 0x194   :  { %v602_v26 = vpop.f32.mrb[1].mxu1 }
 0x195   :  { %v8593_v28 = vpack.i.bf16 %v6287_v25, %v602_v26  ;;  %740 = vrot.lane.b32.xlu1 %v681_v23, %s8113_s1  ;;  %6325 = vmatprep.mubr.msk.f32.mxu1 %vm1100_vm0, %v681_v23  ;;  %v8597_v49 = vpack.c.bf16 %v6287_v25, %v602_v26 }
 0x196   :  { %v447_v37 = vpop.f32.mrb[2].mxu0 }
 0x197   :  { %v449_v29 = vpop.f32.mrb[3].mxu0  ;;  %v8617_v0 = vmul.f32 0.088388346, %v447_v37 }
 0x198   :  { %v6877_v31 = vpack.c.bf16 %v449_v29, %v443_v24  ;;  %v7365_v32 = vpack.i.bf16 %v449_v29, %v443_v24 }
 0x199   :  { %756 = vrot.lane.b32.xlu1 %v681_v23, %s8114_s2 }
 0x19a   :  { %7366 = vrot.lane.b32.xlu0 %v7365_v32, %s8115_s28  ;;  %v453_v9 = vpop.f32.mrb[4].mxu0  ;;  %6879 = vmatprep.subr.msk.bf16.mxu1 %vm8601_vm1, %v6877_v31  ;;  %v6290_v35 = vpop.f32.mrb[2].mxu1 }
 0x19b   :  { %v455_v20 = vpop.f32.mrb[5].mxu0  ;;  %6882 = vmatpush3.bf16.xpose.msk.msra.mxu1 %vm8601_vm1, %v6877_v31  ;;  %v612_v22 = vpop.f32.mrb[3].mxu1  ;;  %v8633_v55 = vmul.f32 0.088388346, %v453_v9 }
 0x19c   :  { %v8611_v38 = vpack.i.bf16 %v6290_v35, %v612_v22  ;;  %v8613_v41 = vpack.c.bf16 %v6290_v35, %v612_v22 }
 0x19d   :  { %7376 = vrot.lane.b32.xlu1 %v7365_v32, %s8114_s2 }
 0x19e   :  { %724 = vrot.lane.b32.xlu0 %v681_v23, %s8115_s28  ;;  %v459_v43 = vpop.f32.mrb[6].mxu0 }
 0x19f   :  { %v461_v1 = vpop.f32.mrb[7].mxu0  ;;  %v8640_v62 = vmul.f32 0.088388346, %v459_v43 }
 0x1a0   :  { %v6883_v45 = vpack.c.bf16 %v461_v1, %v455_v20  ;;  %v7380_v48 = vpack.i.bf16 %v461_v1, %v455_v20 }
 0x1a1   :  { %726 = vrot.lane.b32.xlu1 %v8617_v0, %s8115_s28 }
 0x1a2   :  { %7371 = vrot.lane.b32.xlu0 %v7365_v32, %s8113_s1  ;;  %v465_v50 = vpop.f32.mrb[8].mxu0  ;;  %6885 = vmatprep.subr.msk.bf16.mxu1 %vm8601_vm1, %v6883_v45  ;;  %v6293_v51 = vpop.f32.mrb[4].mxu1 }
 0x1a3   :  { %v467_v21 = vpop.f32.mrb[9].mxu0  ;;  %6888 = vmatpush3.bf16.xpose.msk.msra.mxu1 %vm8601_vm1, %v6883_v45  ;;  %v622_v53 = vpop.f32.mrb[5].mxu1  ;;  %v8651_v3 = vmul.f32 0.088388346, %v465_v50 }
 0x1a4   :  { %v8626_v27 = vpack.i.bf16 %v6293_v51, %v622_v53  ;;  %v8628_v34 = vpack.c.bf16 %v6293_v51, %v622_v53 }
 0x1a5   :  { %7381 = vrot.lane.b32.xlu1 %v7380_v48, %s8115_s28 }
 0x1a6   :  { %742 = vrot.lane.b32.xlu0 %v8617_v0, %s8113_s1  ;;  %v471_v54 = vpop.f32.mrb[10].mxu0 }
 0x1a7   :  { %v473_v56 = vpop.f32.mrb[11].mxu0  ;;  %v686_v42 = vmul.f32 0.088388346, %v471_v54 }
 0x1a8   :  { %v6889_v57 = vpack.c.bf16 %v473_v56, %v467_v21  ;;  %v7395_v59 = vpack.i.bf16 %v473_v56, %v467_v21 }
 0x1a9   :  { %7391 = vrot.lane.b32.xlu1 %v7380_v48, %s8114_s2 }
 0x1aa   :  { %728 = vrot.lane.b32.xlu0 %v8633_v55, %s8115_s28  ;;  %6891 = vmatprep.subr.msk.bf16.mxu1 %vm8601_vm1, %v6889_v57  ;;  %v477_v60 = vpop.f32.mrb[12].mxu0  ;;  %v6296_v61 = vpop.f32.mrb[6].mxu1 }
 0x1ab   :  { %6894 = vmatpush3.bf16.xpose.msk.msra.mxu1 %vm8601_vm1, %v6889_v57  ;;  %v479_v33 = vpop.f32.mrb[13].mxu0  ;;  %v632_v63 = vpop.f32.mrb[7].mxu1  ;;  %v687_v7 = vmul.f32 0.088388346, %v477_v60 }
 0x1ac   :  { %v8644_v2 = vpack.i.bf16 %v6296_v61, %v632_v63  ;;  %v8646_v36 = vpack.c.bf16 %v6296_v61, %v632_v63 }
 0x1ad   :  { %730 = vrot.lane.b32.xlu1 %v8640_v62, %s8115_s28 }
 0x1ae   :  { %7386 = vrot.lane.b32.xlu0 %v7380_v48, %s8113_s1  ;;  %v483_v52 = vpop.f32.mrb[14].mxu0 }
 0x1af   :  { %v485_v8 = vpop.f32.mrb[15].mxu0  ;;  %v688_v31 = vmul.f32 0.088388346, %v483_v52 }
 0x1b0   :  { %v6895_v4 = vpack.c.bf16 %v485_v8, %v479_v33  ;;  %v7410_v5 = vpack.i.bf16 %v485_v8, %v479_v33 }
 0x1b1   :  { %7396 = vrot.lane.b32.xlu1 %v7395_v59, %s8115_s28 }
 0x1b2   :  { %732 = vrot.lane.b32.xlu0 %v8651_v3, %s8115_s28  ;;  %6897 = vmatprep.subr.msk.bf16.mxu1 %vm8601_vm1, %v6895_v4  ;;  %v8658_v10 = vpop.f32.mrb[16].mxu0  ;;  %v6299_v39 = vpop.f32.mrb[8].mxu1 }
 0x1b3   :  { %6900 = vmatpush3.bf16.xpose.msk.msra.mxu1 %vm8601_vm1, %v6895_v4  ;;  %v491_v11 = vpop.f32.mrb[17].mxu0  ;;  %v642_v12 = vpop.f32.mrb[9].mxu1  ;;  %v8742_v60 = vmul.f32 0.088388346, %v8658_v10 }
 0x1b4   :  { %v8662_v14 = vpack.i.bf16 %v6299_v39, %v642_v12  ;;  %v8664_v15 = vpack.c.bf16 %v6299_v39, %v642_v12 }
 0x1b5   :  { %7406 = vrot.lane.b32.xlu1 %v7395_v59, %s8114_s2 }
 0x1b6   :  { %7401 = vrot.lane.b32.xlu0 %v7395_v59, %s8113_s1  ;;  %v8668_v47 = vpop.f32.mrb[18].mxu0 }
 0x1b7   :  { %v497_v16 = vpop.f32.mrb[19].mxu0 }
 0x1b8   :  { %v8670_v17 = vpack.c.bf16 %v497_v16, %v491_v11  ;;  %v7425_v18 = vpack.i.bf16 %v497_v16, %v491_v11 }
 0x1b9   :  { %734 = vrot.lane.b32.xlu1 %v686_v42, %s8115_s28 }
 0x1ba   :  { %736 = vrot.lane.b32.xlu0 %v687_v7, %s8115_s28  ;;  %6326 = vmatmul.mubr.msk.f32.vlgmr.msra.gmra.mrb[16].mxu1 %vm1100_vm0, %v8617_v0  ;;  %v8676_v13 = vpop.f32.mrb[20].mxu0  ;;  %v6302_v44 = vpop.f32.mrb[10].mxu1 }
 0x1bb   :  { %6328 = vmatprep.mubr.msk.f32.mxu1 %vm1100_vm0, %v8633_v55  ;;  %v503_v58 = vpop.f32.mrb[21].mxu0  ;;  %v652_v6 = vpop.f32.mrb[11].mxu1 }
 0x1bc   :  { %v8680_v19 = vpack.i.bf16 %v6302_v44, %v652_v6  ;;  %v8682_v46 = vpack.c.bf16 %v6302_v44, %v652_v6 }
 0x1bd   :  { %7411 = vrot.lane.b32.xlu1 %v7410_v5, %s8115_s28 }
 0x1be   :  { %7416 = vrot.lane.b32.xlu0 %v7410_v5, %s8113_s1  ;;  %6329 = vmatmul.mubr.msk.f32.gmra.mrb[18].mxu1 %vm1100_vm0, %v8640_v62  ;;  %v507_v23 = vpop.f32.mrb[22].mxu0 }
 0x1bf   :  { %6331 = vmatprep.mubr.msk.f32.mxu1 %vm1100_vm0, %v8651_v3  ;;  %v509_v24 = vpop.f32.mrb[23].mxu0  ;;  %v8750_v61 = vmul.f32 0.088388346, %v507_v23 }
 0x1c0   :  { %v8690_v25 = vpack.c.bf16 %v509_v24, %v503_v58  ;;  %v7430_v26 = vpack.i.bf16 %v509_v24, %v503_v58 }
 0x1c1   :  { %744 = vrot.lane.b32.xlu1 %v8633_v55, %s8113_s1 }
 0x1c2   :  { %758 = vrot.lane.b32.xlu0 %v8617_v0, %s8114_s2  ;;  %6332 = vmatmul.mubr.msk.f32.gmra.mrb[20].mxu1 %vm1100_vm0, %v686_v42  ;;  %v513_v37 = vpop.f32.mrb[24].mxu0  ;;  %v6305_v29 = vpop.f32.mrb[12].mxu1 }
 0x1c3   :  { %6334 = vmatprep.mubr.msk.f32.mxu1 %vm1100_vm0, %v687_v7  ;;  %v515_v32 = vpop.f32.mrb[25].mxu0  ;;  %v662_v9 = vpop.f32.mrb[13].mxu1  ;;  %v8763_v63 = vmul.f32 0.088388346, %v513_v37 }
 0x1c4   :  { %v8698_v35 = vpack.i.bf16 %v6305_v29, %v662_v9  ;;  %v8700_v20 = vpack.c.bf16 %v6305_v29, %v662_v9 }
 0x1c5   :  { %7421 = vrot.lane.b32.xlu1 %v7410_v5, %s8114_s2 }
 0x1c6   :  { %11006 = vst [vmem:[#allocation8_spill] sm:$0xff] %v8698_v35  ;;  %7426 = vrot.lane.b32.xlu0 %v7425_v18, %s8115_s28  ;;  %6335 = vmatmul.mubr.msk.f32.gmra.mrb[22].mxu1 %vm1100_vm0, %v688_v31  ;;  %v519_v22 = vpop.f32.mrb[26].mxu0 }
 0x1c7   :  { %v521_v43 = vpop.f32.mrb[27].mxu0  ;;  %v8761_v33 = vmul.f32 0.088388346, %v519_v22 }
 0x1c8   :  { %v8705_v0 = vpack.c.bf16 %v521_v43, %v515_v32  ;;  %v7435_v1 = vpack.i.bf16 %v521_v43, %v515_v32 }
 0x1c9   :  { %738 = vrot.lane.b32.xlu1 %v688_v31, %s8115_s28 }
 0x1ca   :  { %746 = vrot.lane.b32.xlu0 %v8640_v62, %s8113_s1  ;;  %v525_v45 = vpop.f32.mrb[28].mxu0  ;;  %v6308_v48 = vpop.f32.mrb[14].mxu1 }
 0x1cb   :  { %v527_v50 = vpop.f32.mrb[29].mxu0  ;;  %v672_v51 = vpop.f32.mrb[15].mxu1  ;;  %v8771_v52 = vmul.f32 0.088388346, %v525_v45 }
 0x1cc   :  { %v8710_v21 = vpack.i.bf16 %v6308_v48, %v672_v51  ;;  %v8712_v53 = vpack.c.bf16 %v6308_v48, %v672_v51 }
 0x1cd   :  { %760 = vrot.lane.b32.xlu1 %v8633_v55, %s8114_s2  ;;  %v8739_v55 = vmul.f32 0.088388346, %v8668_v47 }
 0x1ce   :  { %11007 = vst [vmem:[#allocation9_spill] sm:$0xff] %v8710_v21  ;;  %762 = vrot.lane.b32.xlu0 %v8640_v62, %s8114_s2  ;;  %v8718_v54 = vpop.f32.mrb[30].mxu0  ;;  %v8753_v62 = vmul.f32 0.088388346, %v8676_v13 }
 0x1cf   :  { %v533_v56 = vpop.f32.mrb[31].mxu0 }
 0x1d0   :  { %v8720_v57 = vpack.i.bf16 %v533_v56, %v527_v50  ;;  %v8722_v59 = vpack.c.bf16 %v533_v56, %v527_v50 }
 0x1d1   :  { %750 = vrot.lane.b32.xlu1 %v686_v42, %s8113_s1 }
 0x1d2   :  { %748 = vrot.lane.b32.xlu0 %v8651_v3, %s8113_s1 }
 0x1d5   :  { %7431 = vrot.lane.b32.xlu1 %v7430_v26, %s8115_s28 }
 0x1d6   :  { %7436 = vrot.lane.b32.xlu0 %v7435_v1, %s8115_s28 }
 0x1d9   :  { %766 = vrot.lane.b32.xlu1 %v686_v42, %s8114_s2 }
 0x1da   :  { %764 = vrot.lane.b32.xlu0 %v8651_v3, %s8114_s2 }
 0x1dd   :  { %754 = vrot.lane.b32.xlu1 %v688_v31, %s8113_s1 }
 0x1de   :  { %752 = vrot.lane.b32.xlu0 %v687_v7, %s8113_s1 }
 0x1e1   :  { %770 = vrot.lane.b32.xlu1 %v688_v31, %s8114_s2 }
 0x1e2   :  { %768 = vrot.lane.b32.xlu0 %v687_v7, %s8114_s2 }
 0x1e5   :  { %7446 = vrot.lane.b32.xlu1 %v7425_v18, %s8114_s2 }
 0x1e6   :  { %7441 = vrot.lane.b32.xlu0 %v7425_v18, %s8113_s1 }
 0x1e9   :  { %782 = vrot.lane.b32.xlu1 %v8739_v55, %s8115_s28 }
 0x1ea   :  { %780 = vrot.lane.b32.xlu0 %v8742_v60, %s8115_s28 }
 0x1ed   :  { %7456 = vrot.lane.b32.xlu1 %v7430_v26, %s8114_s2 }
 0x1ee   :  { %7451 = vrot.lane.b32.xlu0 %v7430_v26, %s8113_s1 }
 0x1f1   :  { %786 = vrot.lane.b32.xlu1 %v8750_v61, %s8115_s28 }
 0x1f2   :  { %784 = vrot.lane.b32.xlu0 %v8753_v62, %s8115_s28 }
 0x1f5   :  { %7466 = vrot.lane.b32.xlu1 %v7435_v1, %s8114_s2 }
 0x1f6   :  { %7461 = vrot.lane.b32.xlu0 %v7435_v1, %s8113_s1 }
 0x1f9   :  { %790 = vrot.lane.b32.xlu1 %v8761_v33, %s8115_s28 }
 0x1fa   :  { %788 = vrot.lane.b32.xlu0 %v8763_v63, %s8115_s28 }
 0x1fd   :  { %7471 = vrot.lane.b32.xlu1 %v8720_v57, %s8115_s28 }
 0x1fe   :  { %7476 = vrot.lane.b32.xlu0 %v8720_v57, %s8113_s1 }
 0x201   :  { %798 = vrot.lane.b32.xlu1 %v8739_v55, %s8113_s1 }
 0x202   :  { %792 = vrot.lane.b32.xlu0 %v8771_v52, %s8115_s28 }
 0x205   :  { %814 = vrot.lane.b32.xlu1 %v8739_v55, %s8114_s2 }
 0x206   :  { %796 = vrot.lane.b32.xlu0 %v8742_v60, %s8113_s1 }
 0x207   :  { %v741_v3 = vpop.permute.xlu1 %740 }
 0x208   :  { %6381 = vmatprep.mubr.msk.f32.mxu1 %vm1100_vm0, %v741_v3 }
 0x209   :  { %802 = vrot.lane.b32.xlu1 %v8750_v61, %s8113_s1 }
 0x20a   :  { %812 = vrot.lane.b32.xlu0 %v8742_v60, %s8114_s2 }
 0x20b   :  { %v8788_v8 = vpop.permute.xlu1 %756 }
 0x20c   :  { %v7367_v4 = vpop.permute.xlu0 %7366 }
 0x20d   :  { %v7369_v5 = vunpack.i.h.bf16 %v7367_v4  ;;  %v7368_v10 = vunpack.i.l.bf16 %v7367_v4  ;;  %818 = vrot.lane.b32.xlu1 %v8750_v61, %s8114_s2 }
 0x20e   :  { %800 = vrot.lane.b32.xlu0 %v8753_v62, %s8113_s1 }
 0x20f   :  { %v6901_v39 = vpack.c.bf16 %v7369_v5, %v7368_v10  ;;  %v8794_v11 = vpop.permute.xlu1 %7376 }
 0x210   :  { %v725_v12 = vpop.permute.xlu0 %724 }
 0x211   :  { %806 = vrot.lane.b32.xlu1 %v8761_v33, %s8113_s1  ;;  %6903 = vmatprep.subr.msk.bf16.mxu0 %vm8601_vm1, %v6901_v39 }
 0x212   :  { %6353 = vmatprep.mubr.msk.f32.mxu0 %vm1100_vm0, %v725_v12  ;;  %816 = vrot.lane.b32.xlu0 %v8753_v62, %s8114_s2 }
 0x213   :  { %6906 = vmatpush3.bf16.xpose.msk.msra.mxu0 %vm8601_vm1, %v6901_v39  ;;  %v8805_v47 = vpop.permute.xlu1 %726 }
 0x214   :  { %v7372_v42 = vpop.permute.xlu0 %7371 }
 0x215   :  { %v7374_v7 = vunpack.i.h.bf16 %v7372_v42  ;;  %v7373_v16 = vunpack.i.l.bf16 %v7372_v42  ;;  %822 = vrot.lane.b32.xlu1 %v8761_v33, %s8114_s2 }
 0x216   :  { %804 = vrot.lane.b32.xlu0 %v8763_v63, %s8113_s1 }
 0x217   :  { %v6925_v18 = vpack.c.bf16 %v7374_v7, %v7373_v16  ;;  %v7382_v13 = vpop.permute.xlu1 %7381  ;;  %v7379_v7 = vunpack.i.h.bf16 %v8794_v11  ;;  %v7378_v16 = vunpack.i.l.bf16 %v8794_v11 }
 0x218   :  { %v7384_v44 = vunpack.i.h.bf16 %v7382_v13  ;;  %v7383_v58 = vunpack.i.l.bf16 %v7382_v13  ;;  %v8811_v6 = vpop.permute.xlu0 %742 }
 0x219   :  { %7486 = vrot.lane.b32.xlu1 %v8611_v38, %s8115_s28  ;;  %6927 = vmatprep.subr.msk.bf16.mxu1 %vm8601_vm1, %v6925_v18 }
 0x21a   :  { %v6907_v23 = vpack.c.bf16 %v7384_v44, %v7383_v58  ;;  %820 = vrot.lane.b32.xlu0 %v8763_v63, %s8114_s2  ;;  %6930 = vmatpush3.bf16.xpose.msk.msra.mxu1 %vm8601_vm1, %v6925_v18 }
 0x21b   :  { %v8821_v24 = vpop.permute.xlu1 %7391 }
 0x21c   :  { %v8823_v26 = vpop.permute.xlu0 %728  ;;  %6909 = vmatprep.subr.msk.bf16.mxu0 %vm8601_vm1, %v6907_v23 }
 0x21d   :  { %7496 = vrot.lane.b32.xlu1 %v8644_v2, %s8115_s28  ;;  %6912 = vmatpush3.bf16.xpose.msk.msra.mxu0 %vm8601_vm1, %v6907_v23 }
 0x21e   :  { %808 = vrot.lane.b32.xlu0 %v8771_v52, %s8113_s1 }
 0x21f   :  { %v8833_v37 = vpop.permute.xlu1 %730 }
 0x220   :  { %v7387_v29 = vpop.permute.xlu0 %7386 }
 0x221   :  { %v7389_v31 = vunpack.i.h.bf16 %v7387_v29  ;;  %v7388_v32 = vunpack.i.l.bf16 %v7387_v29  ;;  %7511 = vrot.lane.b32.xlu1 %v8626_v27, %s8113_s1  ;;  %v6949_v29 = vpack.c.bf16 %v7379_v7, %v7378_v16 }
 0x222   :  { %824 = vrot.lane.b32.xlu0 %v8771_v52, %s8114_s2 }
 0x223   :  { %v6931_v9 = vpack.c.bf16 %v7389_v31, %v7388_v32  ;;  %v7397_v22 = vpop.permute.xlu1 %7396  ;;  %v7394_v32 = vunpack.i.h.bf16 %v8821_v24 }
 0x224   :  { %v7399_v43 = vunpack.i.h.bf16 %v7397_v22  ;;  %v7398_v1 = vunpack.i.l.bf16 %v7397_v22  ;;  %v8839_v45 = vpop.permute.xlu0 %732  ;;  %v8903_v22 = vmul.f32 0.088388346, %v8718_v54 }
 0x225   :  { %7521 = vrot.lane.b32.xlu1 %v8593_v28, %s8114_s2  ;;  %6933 = vmatprep.subr.msk.bf16.mxu1 %vm8601_vm1, %v6931_v9 }
 0x226   :  { %v6913_v48 = vpack.c.bf16 %v7399_v43, %v7398_v1  ;;  %7481 = vrot.lane.b32.xlu0 %v8593_v28, %s8115_s28  ;;  %6936 = vmatpush3.bf16.xpose.msk.msra.mxu1 %vm8601_vm1, %v6931_v9  ;;  %v7393_v9 = vunpack.i.l.bf16 %v8821_v24 }
 0x227   :  { %v8849_v50 = vpop.permute.xlu1 %7406 }
 0x228   :  { %v7402_v51 = vpop.permute.xlu0 %7401  ;;  %6915 = vmatprep.subr.msk.bf16.mxu0 %vm8601_vm1, %v6913_v48 }
 0x229   :  { %v7404_v56 = vunpack.i.h.bf16 %v7402_v51  ;;  %v7403_v3 = vunpack.i.l.bf16 %v7402_v51  ;;  %7531 = vrot.lane.b32.xlu1 %v8626_v27, %s8114_s2  ;;  %6918 = vmatpush3.bf16.xpose.msk.msra.mxu0 %vm8601_vm1, %v6913_v48 }
 0x22a   :  { %7491 = vrot.lane.b32.xlu0 %v8626_v27, %s8115_s28 }
 0x22b   :  { %v6937_v4 = vpack.c.bf16 %v7404_v56, %v7403_v3  ;;  %v735_v5 = vpop.permute.xlu1 %734 }
 0x22c   :  { %v8859_v10 = vpop.permute.xlu0 %736 }
 0x22d   :  { %7541 = vrot.lane.b32.xlu1 %v8662_v14, %s8115_s28  ;;  %6939 = vmatprep.subr.msk.bf16.mxu1 %vm8601_vm1, %v6937_v4 }
 0x22e   :  { %7501 = vrot.lane.b32.xlu0 %v8593_v28, %s8113_s1  ;;  %6942 = vmatpush3.bf16.xpose.msk.msra.mxu1 %vm8601_vm1, %v6937_v4 }
 0x22f   :  { %v7412_v39 = vpop.permute.xlu1 %7411 }
 0x230   :  { %v7414_v12 = vunpack.i.h.bf16 %v7412_v39  ;;  %v7413_v42 = vunpack.i.l.bf16 %v7412_v39  ;;  %v7417_v27 = vpop.permute.xlu0 %7416 }
 0x231   :  { %v7419_v18 = vunpack.i.h.bf16 %v7417_v27  ;;  %v7418_v13 = vunpack.i.l.bf16 %v7417_v27  ;;  %7551 = vrot.lane.b32.xlu1 %v8698_v35, %s8115_s28 }
 0x232   :  { %v6919_v44 = vpack.c.bf16 %v7414_v12, %v7413_v42  ;;  %7506 = vrot.lane.b32.xlu0 %v8611_v38, %s8113_s1 }
 0x233   :  { %v6943_v28 = vpack.c.bf16 %v7419_v18, %v7418_v13  ;;  %v745_v58 = vpop.permute.xlu1 %744 }
 0x234   :  { %v8875_v23 = vpop.permute.xlu0 %758  ;;  %6921 = vmatprep.subr.msk.bf16.mxu0 %vm8601_vm1, %v6919_v44 }
 0x235   :  { %7556 = vrot.lane.b32.xlu1 %v8710_v21, %s8115_s28  ;;  %6924 = vmatpush3.bf16.xpose.msk.msra.mxu0 %vm8601_vm1, %v6919_v44 }
 0x236   :  { %6945 = vmatprep.subr.msk.bf16.mxu1 %vm8601_vm1, %v6943_v28  ;;  %7516 = vrot.lane.b32.xlu0 %v8644_v2, %s8113_s1 }
 0x237   :  { %6948 = vmatpush3.bf16.xpose.msk.msra.mxu1 %vm8601_vm1, %v6943_v28  ;;  %6951 = vmatprep.subr.msk.bf16.mxu0 %vm8601_vm1, %v6949_v29  ;;  %v7422_v11 = vpop.permute.xlu1 %7421 }
 0x238   :  { %6975 = vmatprep.subr.msk.bf16.mxu1 %vm8601_vm1, %v8670_v17  ;;  %v8894_v31 = vpop.permute.xlu0 %7426  ;;  %v7423_v48 = vunpack.i.l.bf16 %v7422_v11 }
 0x239   :  { %7566 = vrot.lane.b32.xlu1 %v8720_v57, %s8114_s2  ;;  %v6955_v57 = vpack.c.bf16 %v7394_v32, %v7393_v9 }
 0x23a   :  { %7526 = vrot.lane.b32.xlu0 %v8611_v38, %s8114_s2 }
 0x23b   :  { %v739_v43 = vpop.permute.xlu1 %738 }
 0x23c   :  { %v747_v1 = vpop.permute.xlu0 %746  ;;  %6354 = vmatmul.mubr.msk.f32.vlgmr.msra.gmra.mrb[32].mxu0 %vm1100_vm0, %v8805_v47  ;;  %v7408_v47 = vunpack.i.l.bf16 %v8849_v50 }
 0x23d   :  { %794 = vrot.lane.b32.xlu1 %v8903_v22, %s8115_s28  ;;  %6356 = vmatprep.mubr.msk.f32.mxu0 %vm1100_vm0, %v8823_v26 }
 0x23e   :  { %6382 = vmatmul.mubr.msk.f32.vlgmr.msra.gmra.mrb[24].mxu1 %vm1100_vm0, %v8811_v6  ;;  %6954 = vmatpush3.bf16.xpose.msk.msra.mxu0 %vm8601_vm1, %v6949_v29 }
 0x23f   :  { %7536 = vrot.lane.b32.xlu0 %v8644_v2, %s8114_s2  ;;  %6384 = vmatprep.mubr.msk.f32.mxu1 %vm1100_vm0, %v745_v58  ;;  %v8918_v38 = vpop.permute.xlu1 %760  ;;  %v7409_v2 = vunpack.i.h.bf16 %v8849_v50 }
 0x240   :  { %6957 = vmatprep.subr.msk.bf16.mxu0 %vm8601_vm1, %v6955_v57  ;;  %6978 = vmatpush3.bf16.xpose.msk.msra.mxu1 %vm8601_vm1, %v8670_v17  ;;  %v8925_v54 = vpop.permute.xlu0 %762 }
 0x241   :  { %6981 = vmatprep.subr.msk.bf16.mxu1 %vm8601_vm1, %v8690_v25  ;;  %6357 = vmatmul.mubr.msk.f32.gmra.mrb[34].mxu0 %vm1100_vm0, %v8833_v37  ;;  %v6961_v24 = vpack.c.bf16 %v7409_v2, %v7408_v47 }
 0x242   :  { %7571 = vrot.lane.b32.xlu1 %v8662_v14, %s8114_s2  ;;  %6359 = vmatprep.mubr.msk.f32.mxu0 %vm1100_vm0, %v8839_v45  ;;  %v7424_v45 = vunpack.i.h.bf16 %v7422_v11 }
 0x243   :  { %6385 = vmatmul.mubr.msk.f32.gmra.mrb[26].mxu1 %vm1100_vm0, %v747_v1  ;;  %7546 = vrot.lane.b32.xlu0 %v8680_v19, %s8115_s28  ;;  %v751_v17 = vpop.permute.xlu1 %750 }
 0x244   :  { %v749_v6 = vpop.permute.xlu0 %748  ;;  %v6967_v51 = vpack.c.bf16 %v7424_v45, %v7423_v48 }
 0x245   :  { %6360 = vmatmul.mubr.msk.f32.gmra.mrb[36].mxu0 %vm1100_vm0, %v735_v5  ;;  %6387 = vmatprep.mubr.msk.f32.mxu1 %vm1100_vm0, %v749_v6 }
 0x246   :  { %7576 = vrot.lane.b32.xlu1 %v8680_v19, %s8113_s1  ;;  %6362 = vmatprep.mubr.msk.f32.mxu0 %vm1100_vm0, %v8859_v10 }
 0x247   :  { %6960 = vmatpush3.bf16.xpose.msk.msra.mxu0 %vm8601_vm1, %v6955_v57  ;;  %7561 = vrot.lane.b32.xlu0 %v8662_v14, %s8113_s1  ;;  %v7432_v26 = vpop.permute.xlu1 %7431 }
 0x248   :  { %6388 = vmatmul.mubr.msk.f32.gmra.mrb[28].mxu1 %vm1100_vm0, %v751_v17  ;;  %6963 = vmatprep.subr.msk.bf16.mxu0 %vm8601_vm1, %v6961_v24  ;;  %v8954_v37 = vpop.permute.xlu0 %7436  ;;  %v7434_v42 = vunpack.i.h.bf16 %v7432_v26  ;;  %v7433_v27 = vunpack.i.l.bf16 %v7432_v26 }
 0x249   :  { %6984 = vmatpush3.bf16.xpose.msk.msra.mxu1 %vm8601_vm1, %v8690_v25  ;;  %6363 = vmatmul.mubr.msk.f32.gmra.mrb[38].mxu0 %vm1100_vm0, %v739_v43  ;;  %v7439_v58 = vunpack.i.h.bf16 %v8954_v37 }
 0x24a   :  { %6987 = vmatprep.subr.msk.bf16.mxu1 %vm8601_vm1, %v8705_v0  ;;  %7581 = vrot.lane.b32.xlu1 %v8680_v19, %s8114_s2  ;;  %v7429_v19 = vunpack.i.h.bf16 %v8894_v31  ;;  %v7003_v18 = vpack.c.bf16 %v7434_v42, %v7433_v27 }
 0x24b   :  { %6409 = vmatprep.mubr.msk.f32.mxu0 %vm1100_vm0, %v8788_v8  ;;  %v767_v14 = vpop.permute.xlu1 %766  ;;  %v7428_v8 = vunpack.i.l.bf16 %v8894_v31 }
 0x24c   :  { %v765_v50 = vpop.permute.xlu0 %764 }
 0x24d   :  { %v6997_v4 = vpack.c.bf16 %v7429_v19, %v7428_v8  ;;  %v697_v8 = vlaneseq }
 0x24e   :  { %810 = vrot.lane.b32.xlu1 %v8903_v22, %s8113_s1 }
 0x24f   :  { %6966 = vmatpush3.bf16.xpose.msk.msra.mxu0 %vm8601_vm1, %v6961_v24  ;;  %v755_v25 = vpop.permute.xlu1 %754  ;;  %v707_v27 = vand.u32 127, %v697_v8 }
 0x250   :  { %6969 = vmatprep.subr.msk.bf16.mxu0 %vm8601_vm1, %v6967_v51  ;;  %v753_v56 = vpop.permute.xlu0 %752 }
 0x251   :  { %6990 = vmatpush3.bf16.xpose.msk.msra.mxu1 %vm8601_vm1, %v8705_v0  ;;  %6390 = vmatprep.mubr.msk.f32.mxu1 %vm1100_vm0, %v753_v56 }
 0x252   :  { %6993 = vmatprep.subr.msk.bf16.mxu1 %vm8601_vm1, %v8722_v59  ;;  %826 = vrot.lane.b32.xlu1 %v8903_v22, %s8114_s2 }
 0x253   :  { %6391 = vmatmul.mubr.msk.f32.gmra.mrb[30].mxu1 %vm1100_vm0, %v755_v25  ;;  %v771_v3 = vpop.permute.xlu1 %770 }
 0x254   :  { %6437 = vmatprep.mubr.msk.f32.mxu1 %vm1100_vm0, %v8742_v60  ;;  %v769_v0 = vpop.permute.xlu0 %768 }
 0x257   :  { %6972 = vmatpush3.bf16.xpose.msk.msra.mxu0 %vm8601_vm1, %v6967_v51  ;;  %v8989_v5 = vpop.permute.xlu1 %7446 }
 0x258   :  { %6999 = vmatprep.subr.msk.bf16.mxu0 %vm8601_vm1, %v6997_v4  ;;  %v7442_v10 = vpop.permute.xlu0 %7441  ;;  %v7449_v47 = vunpack.i.h.bf16 %v8989_v5 }
 0x259   :  { %6996 = vmatpush3.bf16.xpose.msk.msra.mxu1 %vm8601_vm1, %v8722_v59  ;;  %v7444_v39 = vunpack.i.h.bf16 %v7442_v10  ;;  %v7443_v12 = vunpack.i.l.bf16 %v7442_v10  ;;  %v9091_v10 = vshrl.u32 %v697_v8, 7 }
 0x25b   :  { %v7021_v60 = vpack.c.bf16 %v7444_v39, %v7443_v12  ;;  %v8996_v7 = vpop.permute.xlu1 %782  ;;  %11008 = vst [vmem:[#allocation10_spill] sm:$0xff] %v9091_v10  ;;  %v699_v42 = vadd.s32 8, %v9091_v10  ;;  %vm9121_vm4 = vcmp.ge.s32.totalorder %v9091_v10, %v707_v27 }
 0x25c   :  { %v781_v16 = vpop.permute.xlu0 %780 }
 0x25d   :  { %7023 = vmatprep.subr.msk.bf16.mxu1 %vm8601_vm1, %v7021_v60  ;;  %vm9113_vm2 = vcmp.ge.s32.totalorder %v699_v42, %v707_v27 }
 0x25e   :  { %6410 = vmatmul.mubr.msk.f32.vlgmr.msra.gmra.mrb[40].mxu0 %vm1100_vm0, %v8875_v23  ;;  %v7438_v23 = vunpack.i.l.bf16 %v8954_v37 }
 0x25f   :  { %6412 = vmatprep.mubr.msk.f32.mxu0 %vm1100_vm0, %v8918_v38  ;;  %7002 = vmatpush3.bf16.xpose.msk.msra.mxu0 %vm8601_vm1, %v6997_v4  ;;  %v9006_v59 = vpop.permute.xlu1 %7456 }
 0x260   :  { %6438 = vmatmul.mubr.msk.f32.vlgmr.msra.gmra.mrb[32].mxu1 %vm1100_vm0, %v8739_v55  ;;  %7005 = vmatprep.subr.msk.bf16.mxu0 %vm8601_vm1, %v7003_v18  ;;  %v7452_v13 = vpop.permute.xlu0 %7451  ;;  %v7009_v11 = vpack.c.bf16 %v7439_v58, %v7438_v23 }
 0x261   :  { %6440 = vmatprep.mubr.msk.f32.mxu1 %vm1100_vm0, %v8753_v62  ;;  %7026 = vmatpush3.bf16.xpose.msk.msra.mxu1 %vm8601_vm1, %v7021_v60  ;;  %v7454_v44 = vunpack.i.h.bf16 %v7452_v13  ;;  %v7453_v28 = vunpack.i.l.bf16 %v7452_v13 }
 0x262   :  { %6413 = vmatmul.mubr.msk.f32.gmra.mrb[42].mxu0 %vm1100_vm0, %v8925_v54 }
 0x263   :  { %v7027_v55 = vpack.c.bf16 %v7454_v44, %v7453_v28  ;;  %6415 = vmatprep.mubr.msk.f32.mxu0 %vm1100_vm0, %v765_v50  ;;  %v9021_v29 = vpop.permute.xlu1 %786  ;;  %v7458_v50 = vunpack.i.l.bf16 %v9006_v59  ;;  %v700_v28 = vadd.s32 16, %v9091_v10 }
 0x264   :  { %6441 = vmatmul.mubr.msk.f32.gmra.mrb[34].mxu1 %vm1100_vm0, %v8750_v61  ;;  %v785_v62 = vpop.permute.xlu0 %784 }
 0x265   :  { %6443 = vmatprep.mubr.msk.f32.mxu1 %vm1100_vm0, %v8763_v63  ;;  %7029 = vmatprep.subr.msk.bf16.mxu1 %vm8601_vm1, %v7027_v55  ;;  %vm9153_vm6 = vcmp.ge.s32.totalorder %v700_v28, %v707_v27 }
 0x266   :  { %6416 = vmatmul.mubr.msk.f32.gmra.mrb[44].mxu0 %vm1100_vm0, %v767_v14  ;;  %v7459_v14 = vunpack.i.h.bf16 %v9006_v59 }
 0x267   :  { %6418 = vmatprep.mubr.msk.f32.mxu0 %vm1100_vm0, %v769_v0  ;;  %7008 = vmatpush3.bf16.xpose.msk.msra.mxu0 %vm8601_vm1, %v7003_v18  ;;  %v9033_v31 = vpop.permute.xlu1 %7466 }
 0x268   :  { %6444 = vmatmul.mubr.msk.f32.gmra.mrb[36].mxu1 %vm1100_vm0, %v8761_v33  ;;  %7011 = vmatprep.subr.msk.bf16.mxu0 %vm8601_vm1, %v7009_v11  ;;  %v7462_v61 = vpop.permute.xlu0 %7461  ;;  %v7051_v56 = vpack.c.bf16 %v7459_v14, %v7458_v50  ;;  %v7469_v0 = vunpack.i.h.bf16 %v9033_v31  ;;  %v7468_v4 = vunpack.i.l.bf16 %v9033_v31 }
 0x269   :  { %6446 = vmatprep.mubr.msk.f32.mxu1 %vm1100_vm0, %v8771_v52  ;;  %7032 = vmatpush3.bf16.xpose.msk.msra.mxu1 %vm8601_vm1, %v7027_v55  ;;  %v7464_v63 = vunpack.i.h.bf16 %v7462_v61  ;;  %v7463_v32 = vunpack.i.l.bf16 %v7462_v61 }
 0x26a   :  { %6419 = vmatmul.mubr.msk.f32.gmra.mrb[46].mxu0 %vm1100_vm0, %v771_v3 }
 0x26b   :  { %v7033_v9 = vpack.c.bf16 %v7464_v63, %v7463_v32  ;;  %6465 = vmatprep.mubr.msk.f32.mxu0 %vm1100_vm0, %v781_v16  ;;  %v791_v43 = vpop.permute.xlu1 %790  ;;  %v701_v16 = vadd.s32 24, %v9091_v10 }
 0x26c   :  { %6447 = vmatmul.mubr.msk.f32.gmra.mrb[38].mxu1 %vm1100_vm0, %v8903_v22  ;;  %v789_v33 = vpop.permute.xlu0 %788  ;;  %v7448_v22 = vunpack.i.l.bf16 %v8989_v5 }
 0x26d   :  { %7035 = vmatprep.subr.msk.bf16.mxu1 %vm8601_vm1, %v7033_v9  ;;  %vm9141_vm5 = vcmp.ge.s32.totalorder %v701_v16, %v707_v27 }
 0x26e   :  { %v7045_v37 = vpack.c.bf16 %v7449_v47, %v7448_v22 }
 0x26f   :  { %7014 = vmatpush3.bf16.xpose.msk.msra.mxu0 %vm8601_vm1, %v7009_v11  ;;  %v7472_v52 = vpop.permute.xlu1 %7471 }
 0x270   :  { %v7474_v1 = vunpack.i.h.bf16 %v7472_v52  ;;  %v7473_v57 = vunpack.i.l.bf16 %v7472_v52  ;;  %v7477_v38 = vpop.permute.xlu0 %7476 }
 0x271   :  { %7038 = vmatpush3.bf16.xpose.msk.msra.mxu1 %vm8601_vm1, %v7033_v9  ;;  %v7479_v54 = vunpack.i.h.bf16 %v7477_v38  ;;  %v7478_v2 = vunpack.i.l.bf16 %v7477_v38  ;;  %v702_v9 = vadd.s32 32, %v9091_v10 }
 0x272   :  { %v7015_v17 = vpack.c.bf16 %v7474_v1, %v7473_v57  ;;  %v705_v1 = vadd.s32 56, %v9091_v10 }
 0x273   :  { %v7039_v6 = vpack.c.bf16 %v7479_v54, %v7478_v2  ;;  %v799_v24 = vpop.permute.xlu1 %798  ;;  %vm9177_vm8 = vcmp.ge.s32.totalorder %v702_v9, %v707_v27 }
 0x274   :  { %v793_v26 = vpop.permute.xlu0 %792  ;;  %7017 = vmatprep.subr.msk.bf16.mxu0 %vm8601_vm1, %v7015_v17  ;;  %vm9186_vm9 = vcmp.ge.s32.totalorder %v705_v1, %v707_v27 }
 0x275   :  { %7041 = vmatprep.subr.msk.bf16.mxu1 %vm8601_vm1, %v7039_v6 }
 0x277   :  { %7020 = vmatpush3.bf16.xpose.msk.msra.mxu0 %vm8601_vm1, %v7015_v17  ;;  %v9061_v45 = vpop.permute.xlu1 %814  ;;  %v704_v17 = vadd.s32 48, %v9091_v10 }
 0x278   :  { %7047 = vmatprep.subr.msk.bf16.mxu0 %vm8601_vm1, %v7045_v37  ;;  %v797_v48 = vpop.permute.xlu0 %796 }
 0x279   :  { %7044 = vmatpush3.bf16.xpose.msk.msra.mxu1 %vm8601_vm1, %v7039_v6  ;;  %6493 = vmatprep.mubr.msk.f32.mxu1 %vm1100_vm0, %v797_v48  ;;  %vm9200_vm10 = vcmp.ge.s32.totalorder %v704_v17, %v707_v27 }
 0x27a   :  { %7070 = vmatprep.subr.bf16.mxu1 %v8597_v49 }
 0x27b   :  { %v803_v51 = vpop.permute.xlu1 %802 }
 0x27c   :  { %v9071_v25 = vpop.permute.xlu0 %812 }
 0x27e   :  { %6466 = vmatmul.mubr.msk.f32.vlgmr.msra.gmra.mrb[48].mxu0 %vm1100_vm0, %v8996_v7 }
 0x27f   :  { %6468 = vmatprep.mubr.msk.f32.mxu0 %vm1100_vm0, %v785_v62  ;;  %7050 = vmatpush3.bf16.xpose.msk.msra.mxu0 %vm8601_vm1, %v7045_v37  ;;  %v9078_v19 = vpop.permute.xlu1 %818 }
 0x280   :  { %6494 = vmatmul.mubr.msk.f32.vlgmr.msra.gmra.mrb[40].mxu1 %vm1100_vm0, %v799_v24  ;;  %7053 = vmatprep.subr.msk.bf16.mxu0 %vm8601_vm1, %v7051_v56  ;;  %v801_v3 = vpop.permute.xlu0 %800 }
 0x281   :  { %7072 = vmatpush3.bf16.msra.mxu1 %v8597_v49  ;;  %6496 = vmatprep.mubr.msk.f32.mxu1 %vm1100_vm0, %v801_v3  ;;  %v7057_v49 = vpack.c.bf16 %v7469_v0, %v7468_v4 }
 0x282   :  { %7074 = vmatprep.subr.bf16.mxu1 %v8613_v41  ;;  %6469 = vmatmul.mubr.msk.f32.gmra.mrb[50].mxu0 %vm1100_vm0, %v9021_v29  ;;  %v703_v29 = vadd.s32 40, %v9091_v10 }
 0x283   :  { %6471 = vmatprep.mubr.msk.f32.mxu0 %vm1100_vm0, %v789_v33  ;;  %v807_v5 = vpop.permute.xlu1 %806 }
 0x284   :  { %6497 = vmatmul.mubr.msk.f32.gmra.mrb[42].mxu1 %vm1100_vm0, %v803_v51  ;;  %v9094_v39 = vpop.permute.xlu0 %816  ;;  %vm9162_vm7 = vcmp.ge.s32.totalorder %v703_v29, %v707_v27 }
 0x285   :  { %7076 = vmatpush3.bf16.msra.mxu1 %v8613_v41 }
 0x286   :  { %7078 = vmatprep.subr.bf16.mxu1 %v8628_v34  ;;  %6472 = vmatmul.mubr.msk.f32.gmra.mrb[52].mxu0 %vm1100_vm0, %v791_v43 }
 0x287   :  { %7056 = vmatpush3.bf16.xpose.msk.msra.mxu0 %vm8601_vm1, %v7051_v56  ;;  %v9101_v12 = vpop.permute.xlu1 %822  ;;  %6474 = vmatprep.mubr.msk.f32.mxu0 %vm1100_vm0, %v793_v26 }
 0x288   :  { %7059 = vmatprep.subr.msk.bf16.mxu0 %vm8601_vm1, %v7057_v49  ;;  %v805_v60 = vpop.permute.xlu0 %804 }
 0x289   :  { %7080 = vmatpush3.bf16.msra.mxu1 %v8628_v34  ;;  %6499 = vmatprep.mubr.msk.f32.mxu1 %vm1100_vm0, %v805_v60 }
 0x28a   :  { %7082 = vmatprep.subr.bf16.mxu1 %v8646_v36  ;;  %6500 = vmatmul.mubr.msk.f32.gmra.mrb[44].mxu1 %vm1100_vm0, %v807_v5 }
 0x28b   :  { %v9111_v41 = vpop.permute.xlu1 %7486 }
 0x28c   :  { %v9118_v18 = vpop.permute.xlu0 %820 }
 0x28d   :  { %7084 = vmatpush3.bf16.msra.mxu1 %v8646_v36  ;;  %v6327_v59 = vpop.f32.mrb[16].mxu1 }
 0x28e   :  { %v9128_v13 = vsel %vm9113_vm2, %v6327_v59, -inf  ;;  %v1199_v44 = vpop.f32.mrb[17].mxu1 }
 0x28f   :  { %v2281_v58 = vsel %vm2277_vm3, %v9128_v13, -inf  ;;  %7062 = vmatpush3.bf16.xpose.msk.msra.mxu0 %vm8601_vm1, %v7057_v49  ;;  %v9137_v23 = vsel %vm9121_vm4, %v1199_v44, -inf  ;;  %v9139_v55 = vpop.permute.xlu1 %7496 }
 0x290   :  { %11013 = vst [vmem:[#allocation11_spill] sm:$0xff] %v9139_v55  ;;  %v2278_v62 = vsel %vm2277_vm3, %v9137_v23, -inf  ;;  %2282 = vmax.xlane.f32.xlu1 %v2281_v58  ;;  %v809_v11 = vpop.permute.xlu0 %808 }
 0x291   :  { %v6330_v31 = vpop.f32.mrb[18].mxu1  ;;  %2279 = vmax.xlane.f32.xlu0 %v2278_v62  ;;  %6502 = vmatprep.mubr.msk.f32.mxu1 %vm1100_vm0, %v809_v11 }
 0x292   :  { %v9151_v61 = vsel %vm9141_vm5, %v6330_v31, -inf  ;;  %v1209_v32 = vpop.f32.mrb[19].mxu1 }
 0x293   :  { %v2287_v43 = vsel %vm2277_vm3, %v9151_v61, -inf  ;;  %v9160_v33 = vpop.permute.xlu1 %7511  ;;  %v9171_v38 = vsel %vm9153_vm6, %v1209_v32, -inf }
 0x294   :  { %11018 = vst [vmem:[#allocation12_spill] sm:$0xff] %v9160_v33  ;;  %v9167_v57 = vpop.permute.xlu0 %824  ;;  %v2284_v37 = vsel %vm2277_vm3, %v9171_v38, -inf }
 0x295   :  { %v6333_v54 = vpop.f32.mrb[20].mxu1  ;;  %2288 = vmax.xlane.f32.xlu0 %v2287_v43 }
 0x296   :  { %v9175_v2 = vsel %vm9162_vm7, %v6333_v54, -inf  ;;  %v1219_v22 = vpop.f32.mrb[21].mxu1 }
 0x297   :  { %v2293_v6 = vsel %vm2277_vm3, %v9175_v2, -inf  ;;  %v9184_v24 = vpop.permute.xlu1 %7521  ;;  %v9194_v14 = vsel %vm9177_vm8, %v1219_v22, -inf }
 0x298   :  { %11023 = vst [vmem:[#allocation13_spill] sm:$0xff] %v9184_v24  ;;  %2294 = vmax.xlane.f32.xlu1 %v2293_v6  ;;  %v7482_v48 = vpop.permute.xlu0 %7481  ;;  %v2290_v42 = vsel %vm2277_vm3, %v9194_v14, -inf }
 0x299   :  { %v7484_v50 = vunpack.i.h.bf16 %v7482_v48  ;;  %v7483_v51 = vunpack.i.l.bf16 %v7482_v48  ;;  %v6336_v56 = vpop.f32.mrb[22].mxu1  ;;  %2285 = vmax.xlane.f32.xlu0 %v2284_v37 }
 0x29a   :  { %v9198_v8 = vsel %vm9186_vm9, %v6336_v56, -inf  ;;  %v1229_v0 = vpop.f32.mrb[23].mxu1 }
 0x29b   :  { %v2299_v4 = vsel %vm2277_vm3, %v9198_v8, -inf  ;;  %v9206_v5 = vpop.permute.xlu1 %7531  ;;  %v9208_v49 = vpack.c.bf16 %v7484_v50, %v7483_v51  ;;  %v9216_v27 = vsel %vm9200_vm10, %v1229_v0, -inf }
 0x29c   :  { %11028 = vst [vmem:[#allocation14_spill] sm:$0xff] %v9206_v5  ;;  %2300 = vmax.xlane.f32.xlu1 %v2299_v4  ;;  %v9212_v60 = vpop.permute.xlu0 %7491  ;;  %v2296_v59 = vsel %vm2277_vm3, %v9216_v27, -inf }
 0x29d   :  { %11029 = vst [vmem:[#allocation15_spill] sm:$0xff] %v9208_v49  ;;  %2291 = vmax.xlane.f32.xlu0 %v2290_v42  ;;  %7086 = vmatprep.subr.bf16.mxu1 %v9208_v49 }
 0x29f   :  { %v9219_v16 = vpop.permute.xlu1 %7541 }
 0x2a0   :  { %11030 = vst [vmem:[#allocation16_spill] sm:$0xff] %v9219_v16  ;;  %v9223_v44 = vpop.permute.xlu0 %7501 }
 0x2a1   :  { %11031 = vst [vmem:[#allocation17_spill] sm:$0xff] %v9223_v44  ;;  %2297 = vmax.xlane.f32.xlu0 %v2296_v59 }
 0x2a3   :  { %v9225_v28 = vpop.permute.xlu1 %7551 }
 0x2a4   :  { %11032 = vst [vmem:[#allocation18_spill] sm:$0xff] %v9225_v28  ;;  %v9227_v58 = vpop.permute.xlu0 %7506 }
 0x2a5   :  { %11033 = vst [vmem:[#allocation19_spill] sm:$0xff] %v9227_v58 }
 0x2a7   :  { %v9229_v29 = vpop.permute.xlu1 %7556 }
 0x2a8   :  { %11034 = vst [vmem:[#allocation20_spill] sm:$0xff] %v9229_v29  ;;  %v9231_v62 = vpop.permute.xlu0 %7516 }
 0x2a9   :  { %11035 = vst [vmem:[#allocation21_spill] sm:$0xff] %v9231_v62 }
 0x2ab   :  { %v7567_v11 = vpop.permute.xlu1 %7566 }
 0x2ac   :  { %v7569_v31 = vunpack.i.h.bf16 %v7567_v11  ;;  %v7568_v32 = vunpack.i.l.bf16 %v7567_v11  ;;  %v9233_v9 = vpop.permute.xlu0 %7526 }
 0x2ad   :  { %11036 = vst [vmem:[#allocation22_spill] sm:$0xff] %v9233_v9 }
 0x2ae   :  { %v7063_v43 = vpack.c.bf16 %v7569_v31, %v7568_v32 }
 0x2af   :  { %v795_v1 = vpop.permute.xlu1 %794 }
 0x2b0   :  { %6475 = vmatmul.mubr.msk.f32.gmra.mrb[54].mxu0 %vm1100_vm0, %v795_v1  ;;  %7065 = vmatprep.subr.msk.bf16.mxu0 %vm8601_vm1, %v7063_v43 }
 0x2b1   :  { %7068 = vmatpush3.bf16.xpose.msk.msra.mxu0 %vm8601_vm1, %v7063_v43  ;;  %6521 = vmatprep.mubr.msk.f32.mxu0 %vm1100_vm0, %v9071_v25  ;;  %v9242_v54 = vpop.permute.xlu0 %7536 }
 0x2b2   :  { %11037 = vst [vmem:[#allocation23_spill] sm:$0xff] %v9242_v54  ;;  %7134 = vmatprep.subr.bf16.mxu0 %v8664_v15 }
 0x2b4   :  { %v9245_v22 = vpop.permute.xlu1 %7571 }
 0x2b5   :  { %11038 = vst [vmem:[#allocation24_spill] sm:$0xff] %v9245_v22  ;;  %v9247_v17 = vpop.permute.xlu0 %7546 }
 0x2b6   :  { %11039 = vst [vmem:[#allocation25_spill] sm:$0xff] %v9247_v17 }
 0x2b8   :  { %v9249_v6 = vpop.permute.xlu1 %7576  ;;  %6522 = vmatmul.mubr.msk.f32.vlgmr.msra.gmra.mrb[56].mxu0 %vm1100_vm0, %v9061_v45 }
 0x2b9   :  { %11040 = vst [vmem:[#allocation26_spill] sm:$0xff] %v9249_v6  ;;  %6524 = vmatprep.mubr.msk.f32.mxu0 %vm1100_vm0, %v9094_v39  ;;  %7136 = vmatpush3.bf16.msra.mxu0 %v8664_v15  ;;  %v7562_v25 = vpop.permute.xlu0 %7561 }
 0x2ba   :  { %7138 = vmatprep.subr.bf16.mxu0 %v8682_v46  ;;  %v7564_v15 = vunpack.i.h.bf16 %v7562_v25  ;;  %v7563_v39 = vunpack.i.l.bf16 %v7562_v25 }
 0x2bc   :  { %v9257_v30 = vpop.permute.xlu1 %7581  ;;  %6525 = vmatmul.mubr.msk.f32.gmra.mrb[58].mxu0 %vm1100_vm0, %v9078_v19 }
 0x2bd   :  { %11041 = vst [vmem:[#allocation27_spill] sm:$0xff] %v9257_v30  ;;  %6527 = vmatprep.mubr.msk.f32.mxu0 %vm1100_vm0, %v9118_v18  ;;  %7140 = vmatpush3.bf16.msra.mxu0 %v8682_v46  ;;  %v9273_v46 = vpack.c.bf16 %v7564_v15, %v7563_v39 }
 0x2be   :  { %7142 = vmatprep.subr.bf16.mxu0 %v8700_v20 }
 0x2bf   :  { %11042 = vst [vmem:[#allocation28_spill] sm:$0xff] %v9273_v46 }
 0x2c0   :  { %v811_v45 = vpop.permute.xlu1 %810  ;;  %6528 = vmatmul.mubr.msk.f32.gmra.mrb[60].mxu0 %vm1100_vm0, %v9101_v12 }
 0x2c1   :  { %6503 = vmatmul.mubr.msk.f32.gmra.mrb[46].mxu1 %vm1100_vm0, %v811_v45  ;;  %6530 = vmatprep.mubr.msk.f32.mxu0 %vm1100_vm0, %v9167_v57 }
 0x2c2   :  { %7144 = vmatpush3.bf16.msra.mxu0 %v8700_v20 }
 0x2c3   :  { %7146 = vmatprep.subr.bf16.mxu0 %v8712_v53 }
 0x2c4   :  { %v827_v19 = vpop.permute.xlu1 %826 }
 0x2c5   :  { %6531 = vmatmul.mubr.msk.f32.gmra.mrb[62].mxu0 %vm1100_vm0, %v827_v19 }
 0x2c6   :  { %7148 = vmatpush3.bf16.msra.mxu0 %v8712_v53 }
 0x2c7   :  { %7166 = vmatprep.subr.bf16.mxu0 %v9273_v46 }
 0x30f   :  { %v6355_v12 = vpop.f32.mrb[32].mxu0 }
 0x310   :  { %v9279_v18 = vsel %vm9113_vm2, %v6355_v12, -inf  ;;  %v1336_v37 = vpop.f32.mrb[33].mxu0 }
 0x311   :  { %v2305_v20 = vsel %vm2277_vm3, %v9279_v18, -inf  ;;  %v9285_v57 = vsel %vm9121_vm4, %v1336_v37, -inf  ;;  %v6383_v48 = vpop.f32.mrb[24].mxu1 }
 0x312   :  { %v2302_v50 = vsel %vm2277_vm3, %v9285_v57, -inf  ;;  %v9291_v53 = vsel %vm9113_vm2, %v6383_v48, -inf  ;;  %v1473_v51 = vpop.f32.mrb[25].mxu1  ;;  %2306 = vmax.xlane.f32.xlu1 %v2305_v20 }
 0x313   :  { %v9295_v56 = vsel %vm9121_vm4, %v1473_v51, -inf  ;;  %2303 = vmax.xlane.f32.xlu0 %v2302_v50  ;;  %v2329_v4 = vsel %vm2277_vm3, %v9291_v53, -inf }
 0x314   :  { %v6358_v0 = vpop.f32.mrb[34].mxu0  ;;  %v2326_v59 = vsel %vm2277_vm3, %v9295_v56, -inf }
 0x315   :  { %v1346_v42 = vpop.f32.mrb[35].mxu0  ;;  %v9303_v11 = vsel %vm9141_vm5, %v6358_v0, -inf }
 0x316   :  { %v6386_v31 = vpop.f32.mrb[26].mxu1  ;;  %2330 = vmax.xlane.f32.xlu1 %v2329_v4  ;;  %v9307_v32 = vsel %vm9153_vm6, %v1346_v42, -inf  ;;  %v2311_v25 = vsel %vm2277_vm3, %v9303_v11, -inf }
 0x317   :  { %v1483_v43 = vpop.f32.mrb[27].mxu1  ;;  %2327 = vmax.xlane.f32.xlu0 %v2326_v59  ;;  %v2308_v15 = vsel %vm2277_vm3, %v9307_v32, -inf  ;;  %v9315_v39 = vsel %vm9141_vm5, %v6386_v31, -inf }
 0x318   :  { %v6361_v1 = vpop.f32.mrb[36].mxu0  ;;  %v9319_v19 = vsel %vm9153_vm6, %v1483_v43, -inf  ;;  %v2335_v48 = vsel %vm2277_vm3, %v9315_v39, -inf }
 0x319   :  { %v1356_v45 = vpop.f32.mrb[37].mxu0  ;;  %v2332_v51 = vsel %vm2277_vm3, %v9319_v19, -inf  ;;  %v9327_v0 = vsel %vm9162_vm7, %v6361_v1, -inf }
 0x31a   :  { %2312 = vmax.xlane.f32.xlu1 %v2311_v25  ;;  %v9331_v4 = vsel %vm9177_vm8, %v1356_v45, -inf  ;;  %v2317_v42 = vsel %vm2277_vm3, %v9327_v0, -inf }
 0x31b   :  { %v6389_v12 = vpop.f32.mrb[28].mxu1  ;;  %2309 = vmax.xlane.f32.xlu0 %v2308_v15  ;;  %v2314_v59 = vsel %vm2277_vm3, %v9331_v4, -inf }
 0x31c   :  { %v1493_v37 = vpop.f32.mrb[29].mxu1  ;;  %v6364_v20 = vpop.f32.mrb[38].mxu0  ;;  %v9339_v31 = vsel %vm9162_vm7, %v6389_v12, -inf }
 0x31d   :  { %v1366_v50 = vpop.f32.mrb[39].mxu0  ;;  %v9343_v43 = vsel %vm9177_vm8, %v1493_v37, -inf  ;;  %v2341_v1 = vsel %vm2277_vm3, %v9339_v31, -inf  ;;  %v9351_v45 = vsel %vm9186_vm9, %v6364_v20, -inf  ;;  %v2283_v10 = vpop.xlane.xlu1 %2282 }
 0x31e   :  { %2336 = vmax.xlane.f32.xlu1 %v2335_v48  ;;  %v2338_v25 = vsel %vm2277_vm3, %v9343_v43, -inf  ;;  %v9355_v12 = vsel %vm9200_vm10, %v1366_v50, -inf  ;;  %v9357_v37 = vpop.xlane.xlu0 %2279 }
 0x31f   :  { %2333 = vmax.xlane.f32.xlu0 %v2332_v51  ;;  %v2323_v51 = vsel %vm2277_vm3, %v9351_v45, -inf }
 0x322   :  { %2318 = vmax.xlane.f32.xlu1 %v2317_v42  ;;  %v2320_v42 = vsel %vm2277_vm3, %v9355_v12, -inf }
 0x323   :  { %2315 = vmax.xlane.f32.xlu0 %v2314_v59 }
 0x326   :  { %v6392_v15 = vpop.f32.mrb[30].mxu1  ;;  %2342 = vmax.xlane.f32.xlu1 %v2341_v1  ;;  %v9373_v1 = vpop.xlane.xlu0 %2288 }
 0x327   :  { %v1503_v48 = vpop.f32.mrb[31].mxu1  ;;  %2339 = vmax.xlane.f32.xlu0 %v2338_v25  ;;  %v9365_v20 = vsel %vm9186_vm9, %v6392_v15, -inf }
 0x328   :  { %v9369_v59 = vsel %vm9200_vm10, %v1503_v48, -inf  ;;  %v2347_v50 = vsel %vm2277_vm3, %v9365_v20, -inf }
 0x329   :  { %v2344_v25 = vsel %vm2277_vm3, %v9369_v59, -inf }
 0x32a   :  { %2324 = vmax.xlane.f32.xlu1 %v2323_v51  ;;  %v2286_v22 = vpop.xlane.xlu0 %2285 }
 0x32b   :  { %2321 = vmax.xlane.f32.xlu0 %v2320_v42  ;;  %v2472_v62 = vsub.f32 %v9171_v38, %v2286_v22  ;;  %v2470_v38 = vsub.f32 %v9137_v23, %v9357_v37 }
 0x32d   :  { %v2538_v22 = vmul.f32 1.442695, %v2472_v62  ;;  %v2534_v23 = vmul.f32 1.442695, %v2470_v38 }
 0x32e   :  { %2348 = vmax.xlane.f32.xlu1 %v2347_v50 }
 0x32f   :  { %2345 = vmax.xlane.f32.xlu0 %v2344_v25 }
 0x331   :  { %v6411_v40 = vpop.f32.mrb[40].mxu0 }
 0x332   :  { %v9379_v15 = vsel %vm9113_vm2, %v6411_v40, -inf  ;;  %v1610_v51 = vpop.f32.mrb[41].mxu0 }
 0x333   :  { %v2353_v48 = vsel %vm2277_vm3, %v9379_v15, -inf  ;;  %v9385_v42 = vsel %vm9121_vm4, %v1610_v51, -inf  ;;  %v6439_v30 = vpop.f32.mrb[32].mxu1  ;;  %v2471_v51 = vsub.f32 %v9128_v13, %v2283_v10 }
 0x334   :  { %v2350_v50 = vsel %vm2277_vm3, %v9385_v42, -inf  ;;  %v9391_v25 = vsel %vm9113_vm2, %v6439_v30, -inf  ;;  %v1747_v40 = vpop.f32.mrb[33].mxu1  ;;  %2354 = vmax.xlane.f32.xlu1 %v2353_v48 }
 0x335   :  { %v9395_v29 = vsel %vm9121_vm4, %v1747_v40, -inf  ;;  %2351 = vmax.xlane.f32.xlu0 %v2350_v50  ;;  %v6414_v28 = vpop.f32.mrb[42].mxu0  ;;  %v2377_v46 = vsel %vm2277_vm3, %v9391_v25, -inf  ;;  %v2536_v13 = vmul.f32 1.442695, %v2471_v51  ;;  %v9410_v40 = vpop.xlane.xlu0 %2291 }
 0x336   :  { %v1620_v17 = vpop.f32.mrb[43].mxu0  ;;  %v2374_v6 = vsel %vm2277_vm3, %v9395_v29, -inf  ;;  %v9404_v30 = vsel %vm9141_vm5, %v6414_v28, -inf }
 0x337   :  { %v6442_v16 = vpop.f32.mrb[34].mxu1  ;;  %v9408_v50 = vsel %vm9153_vm6, %v1620_v17, -inf  ;;  %v2359_v5 = vsel %vm2277_vm3, %v9404_v30, -inf  ;;  %7757 = vpow2.f32 %v2536_v13 }
 0x338   :  { %v1757_v48 = vpop.f32.mrb[35].mxu1  ;;  %2378 = vmax.xlane.f32.xlu1 %v2377_v46  ;;  %v2356_v28 = vsel %vm2277_vm3, %v9408_v50, -inf  ;;  %v9418_v46 = vsel %vm9141_vm5, %v6442_v16, -inf  ;;  %7759 = vpow2.f32 %v2538_v22 }
 0x339   :  { %2375 = vmax.xlane.f32.xlu0 %v2374_v6  ;;  %v6417_v10 = vpop.f32.mrb[44].mxu0  ;;  %v9422_v17 = vsel %vm9153_vm6, %v1757_v48, -inf  ;;  %v2383_v33 = vsel %vm2277_vm3, %v9418_v46, -inf  ;;  %v2298_v21 = vpop.xlane.xlu0 %2297  ;;  %7761 = vpow2.f32 %v2534_v23 }
 0x33a   :  { %v1630_v54 = vpop.f32.mrb[45].mxu0  ;;  %v2380_v16 = vsel %vm2277_vm3, %v9422_v17, -inf }
 0x33b   :  { %v6445_v9 = vpop.f32.mrb[36].mxu1  ;;  %v9435_v13 = vsel %vm9177_vm8, %v1630_v54, -inf }
 0x33c   :  { %v1767_v24 = vpop.f32.mrb[37].mxu1  ;;  %2360 = vmax.xlane.f32.xlu1 %v2359_v5  ;;  %v9431_v5 = vsel %vm9162_vm7, %v6417_v10, -inf  ;;  %v2362_v10 = vsel %vm2277_vm3, %v9435_v13, -inf }
 0x33d   :  { %2357 = vmax.xlane.f32.xlu0 %v2356_v28  ;;  %v6420_v6 = vpop.f32.mrb[46].mxu0  ;;  %v2476_v28 = vsub.f32 %v9216_v27, %v2298_v21  ;;  %v2365_v35 = vsel %vm2277_vm3, %v9431_v5, -inf  ;;  %v9450_v54 = vsel %vm9177_vm8, %v1767_v24, -inf  ;;  %v2473_v21 = vsub.f32 %v9151_v61, %v9373_v1  ;;  %v2295_v27 = vpop.xlane.xlu1 %2294 }
 0x33e   :  { %v1640_v51 = vpop.f32.mrb[47].mxu0  ;;  %v2475_v61 = vsub.f32 %v9175_v2, %v2295_v27  ;;  %v9469_v38 = vsel %vm9186_vm9, %v6420_v6, -inf  ;;  %v2474_v2 = vsub.f32 %v9194_v14, %v9410_v40 }
 0x33f   :  { %v6448_v58 = vpop.f32.mrb[38].mxu1  ;;  %v2546_v62 = vmul.f32 1.442695, %v2476_v28  ;;  %v9462_v24 = vsel %vm9200_vm10, %v1640_v51, -inf  ;;  %v2371_v23 = vsel %vm2277_vm3, %v9469_v38, -inf }
 0x340   :  { %v1777_v48 = vpop.f32.mrb[39].mxu1  ;;  %2384 = vmax.xlane.f32.xlu1 %v2383_v33  ;;  %v9446_v33 = vsel %vm9162_vm7, %v6445_v9, -inf  ;;  %v2540_v9 = vmul.f32 1.442695, %v2473_v21  ;;  %v2368_v22 = vsel %vm2277_vm3, %v9462_v24, -inf  ;;  %v9483_v6 = vsel %vm9186_vm9, %v6448_v58, -inf }
 0x341   :  { %2381 = vmax.xlane.f32.xlu0 %v2380_v16  ;;  %v2389_v37 = vsel %vm2277_vm3, %v9446_v33, -inf  ;;  %v9456_v16 = vpop.eup %7757  ;;  %7763 = vpow2.f32 %v2546_v62  ;;  %v9475_v51 = vsel %vm9200_vm10, %v1777_v48, -inf  ;;  %v2544_v28 = vmul.f32 1.442695, %v2475_v61 }
 0x342   :  { %v2665_v1 = vsel %vm2277_vm3, %v9456_v16, 0.0  ;;  %7765 = vpow2.f32 %v2540_v9  ;;  %v2392_v21 = vsel %vm2277_vm3, %v9475_v51, -inf  ;;  %v9487_v48 = vpop.eup %7759  ;;  %v2542_v14 = vmul.f32 1.442695, %v2474_v2 }
 0x343   :  { %7767 = vpow2.f32 %v2544_v28  ;;  %v9492_v9 = vpop.eup %7761  ;;  %v2668_v61 = vsel %vm2277_vm3, %v9487_v48, 0.0 }
 0x344   :  { %2366 = vmax.xlane.f32.xlu1 %v2365_v35  ;;  %v2386_v35 = vsel %vm2277_vm3, %v9450_v54, -inf  ;;  %7769 = vpow2.f32 %v2542_v14 }
 0x345   :  { %2363 = vmax.xlane.f32.xlu0 %v2362_v10  ;;  %v2301_v10 = vpop.xlane.xlu1 %2300 }
 0x346   :  { %v2477_v62 = vsub.f32 %v9198_v8, %v2301_v10  ;;  %v2662_v10 = vsel %vm2277_vm3, %v9492_v9, 0.0 }
 0x348   :  { %2390 = vmax.xlane.f32.xlu1 %v2389_v37  ;;  %v2395_v37 = vsel %vm2277_vm3, %v9483_v6, -inf  ;;  %v2548_v28 = vmul.f32 1.442695, %v2477_v62 }
 0x349   :  { %2387 = vmax.xlane.f32.xlu0 %v2386_v35 }
 0x34a   :  { %7771 = vpow2.f32 %v2548_v28 }
 0x34c   :  { %2666 = vadd.xlane.f32.xlu1 %v2665_v1  ;;  %v9496_v1 = vpop.eup %7763 }
 0x34d   :  { %2369 = vmax.xlane.f32.xlu0 %v2368_v22  ;;  %11043 = vst [vmem:[#allocation29_spill] sm:$0xff] %v9496_v1 }
 0x350   :  { %2372 = vmax.xlane.f32.xlu1 %v2371_v23  ;;  %v9500_v23 = vpop.eup %7765 }
 0x351   :  { %2393 = vmax.xlane.f32.xlu0 %v2392_v21  ;;  %v6467_v27 = vpop.f32.mrb[48].mxu0  ;;  %11044 = vst [vmem:[#allocation30_spill] sm:$0xff] %v9500_v23  ;;  %v2671_v14 = vsel %vm2277_vm3, %v9500_v23, 0.0  ;;  %v9510_v55 = vpop.eup %7767 }
 0x352   :  { %v1884_v40 = vpop.f32.mrb[49].mxu0  ;;  %11046 = vst [vmem:[#allocation32_spill] sm:$0xff] %v9510_v55  ;;  %v2677_v28 = vsel %vm2277_vm3, %v9510_v55, 0.0 }
 0x353   :  { %v6495_v35 = vpop.f32.mrb[40].mxu1  ;;  %v9506_v44 = vsel %vm9121_vm4, %v1884_v40, -inf }
 0x354   :  { %v2021_v58 = vpop.f32.mrb[41].mxu1  ;;  %2396 = vmax.xlane.f32.xlu1 %v2395_v37  ;;  %v2680_v37 = vsel %vm2277_vm3, %v9496_v1, 0.0  ;;  %11045 = vst [vmem:[#allocation31_spill] sm:$0xff] %v9506_v44  ;;  %v2398_v49 = vsel %vm2277_vm3, %v9506_v44, -inf }
 0x355   :  { %2669 = vadd.xlane.f32.xlu0 %v2668_v61  ;;  %v6470_v22 = vpop.f32.mrb[50].mxu0 }
 0x356   :  { %v1894_v8 = vpop.f32.mrb[51].mxu0 }
 0x357   :  { %v6498_v2 = vpop.f32.mrb[42].mxu1  ;;  %v9526_v44 = vsel %vm9153_vm6, %v1894_v8, -inf  ;;  %v9542_v8 = vsel %vm9113_vm2, %v6467_v27, -inf }
 0x358   :  { %v2031_v21 = vpop.f32.mrb[43].mxu1  ;;  %2663 = vadd.xlane.f32.xlu1 %v2662_v10  ;;  %v9516_v10 = vsel %vm9121_vm4, %v2021_v58, -inf  ;;  %11047 = vst [vmem:[#allocation33_spill] sm:$0xff] %v9526_v44 }
 0x359   :  { %2681 = vadd.xlane.f32.xlu0 %v2680_v37  ;;  %v6473_v61 = vpop.f32.mrb[52].mxu0  ;;  %v9520_v37 = vpop.eup %7769  ;;  %v2422_v23 = vsel %vm2277_vm3, %v9516_v10, -inf  ;;  %v9536_v55 = vsel %vm9153_vm6, %v2031_v21, -inf  ;;  %v2401_v21 = vsel %vm2277_vm3, %v9542_v8, -inf }
 0x35a   :  { %v1904_v62 = vpop.f32.mrb[53].mxu0  ;;  %v2674_v58 = vsel %vm2277_vm3, %v9520_v37, 0.0  ;;  %11049 = vst [vmem:[#allocation35_spill] sm:$0xff] %v9536_v55 }
 0x35c   :  { %2672 = vadd.xlane.f32.xlu1 %v2671_v14  ;;  %v2404_v14 = vsel %vm2277_vm3, %v9526_v44, -inf  ;;  %v9548_v44 = vsel %vm9177_vm8, %v1904_v62, -inf }
 0x35d   :  { %2399 = vmax.xlane.f32.xlu0 %v2398_v49  ;;  %v6501_v40 = vpop.f32.mrb[44].mxu1  ;;  %v9530_v49 = vpop.eup %7771  ;;  %11050 = vst [vmem:[#allocation36_spill] sm:$0xff] %v9548_v44  ;;  %v2410_v27 = vsel %vm2277_vm3, %v9548_v44, -inf }
 0x35e   :  { %v2041_v1 = vpop.f32.mrb[45].mxu1  ;;  %11048 = vst [vmem:[#allocation34_spill] sm:$0xff] %v9530_v49 }
 0x360   :  { %2678 = vadd.xlane.f32.xlu1 %v2677_v28  ;;  %v2683_v28 = vsel %vm2277_vm3, %v9530_v49, 0.0 }
 0x361   :  { %2423 = vmax.xlane.f32.xlu0 %v2422_v23  ;;  %v2428_v23 = vsel %vm2277_vm3, %v9536_v55, -inf }
 0x364   :  { %2675 = vadd.xlane.f32.xlu1 %v2674_v58  ;;  %v9554_v58 = vsel %vm9113_vm2, %v6495_v35, -inf }
 0x365   :  { %2405 = vmax.xlane.f32.xlu0 %v2404_v14  ;;  %v9560_v14 = vsel %vm9177_vm8, %v2041_v1, -inf  ;;  %v2425_v62 = vsel %vm2277_vm3, %v9554_v58, -inf  ;;  %v9574_v1 = vsel %vm9141_vm5, %v6498_v2, -inf }
 0x366   :  { %11051 = vst [vmem:[#allocation37_spill] sm:$0xff] %v9560_v14  ;;  %v2434_v35 = vsel %vm2277_vm3, %v9560_v14, -inf  ;;  %11053 = vst [vmem:[#allocation39_spill] sm:$0xff] %v9574_v1 }
 0x368   :  { %2684 = vadd.xlane.f32.xlu1 %v2683_v28  ;;  %v9566_v28 = vsel %vm9141_vm5, %v6470_v22, -inf  ;;  %v9580_v22 = vsel %vm9162_vm7, %v6473_v61, -inf }
 0x369   :  { %2429 = vmax.xlane.f32.xlu0 %v2428_v23  ;;  %11052 = vst [vmem:[#allocation38_spill] sm:$0xff] %v9566_v28  ;;  %v2407_v23 = vsel %vm2277_vm3, %v9566_v28, -inf  ;;  %11054 = vst [vmem:[#allocation40_spill] sm:$0xff] %v9580_v22 }
 0x36c   :  { %2402 = vmax.xlane.f32.xlu1 %v2401_v21  ;;  %v2431_v21 = vsel %vm2277_vm3, %v9574_v1, -inf }
 0x36d   :  { %2411 = vmax.xlane.f32.xlu0 %v2410_v27  ;;  %v2413_v27 = vsel %vm2277_vm3, %v9580_v22, -inf }
 0x370   :  { %2426 = vmax.xlane.f32.xlu1 %v2425_v62  ;;  %v9586_v62 = vsel %vm9162_vm7, %v6501_v40, -inf }
 0x371   :  { %2435 = vmax.xlane.f32.xlu0 %v2434_v35  ;;  %11055 = vst [vmem:[#allocation41_spill] sm:$0xff] %v9586_v62  ;;  %v2437_v2 = vsel %vm2277_vm3, %v9586_v62, -inf }
 0x374   :  { %2408 = vmax.xlane.f32.xlu1 %v2407_v23 }
 0x378   :  { %2432 = vmax.xlane.f32.xlu1 %v2431_v21 }
 0x37c   :  { %2414 = vmax.xlane.f32.xlu1 %v2413_v27 }
 0x380   :  { %2438 = vmax.xlane.f32.xlu1 %v2437_v2 }
 0x383   :  { %v6476_v35 = vpop.f32.mrb[54].mxu0 }
 0x384   :  { %v9592_v23 = vsel %vm9186_vm9, %v6476_v35, -inf  ;;  %v1914_v61 = vpop.f32.mrb[55].mxu0 }
 0x385   :  { %11056 = vst [vmem:[#allocation42_spill] sm:$0xff] %v9592_v23  ;;  %v2419_v21 = vsel %vm2277_vm3, %v9592_v23, -inf  ;;  %v9598_v44 = vsel %vm9200_vm10, %v1914_v61, -inf }
 0x386   :  { %11057 = vst [vmem:[#allocation43_spill] sm:$0xff] %v9598_v44  ;;  %v2416_v40 = vsel %vm2277_vm3, %v9598_v44, -inf  ;;  %2420 = vmax.xlane.f32.xlu1 %v2419_v21 }
 0x387   :  { %2417 = vmax.xlane.f32.xlu0 %v2416_v40 }
 0x38b   :  { %v6523_v27 = vpop.f32.mrb[56].mxu0 }
 0x38c   :  { %v2158_v2 = vpop.f32.mrb[57].mxu0  ;;  %v9614_v21 = vsel %vm9113_vm2, %v6523_v27, -inf }
 0x38f   :  { %v6526_v62 = vpop.f32.mrb[58].mxu0 }
 0x390   :  { %v2168_v22 = vpop.f32.mrb[59].mxu0  ;;  %v9628_v7 = vsel %vm9141_vm5, %v6526_v62, -inf }
 0x391   :  { %v2455_v34 = vsel %vm2277_vm3, %v9628_v7, -inf }
 0x393   :  { %v6529_v14 = vpop.f32.mrb[60].mxu0 }
 0x394   :  { %v6504_v35 = vpop.f32.mrb[46].mxu1  ;;  %v2178_v1 = vpop.f32.mrb[61].mxu0 }
 0x395   :  { %v9604_v55 = vsel %vm9186_vm9, %v6504_v35, -inf  ;;  %v2051_v23 = vpop.f32.mrb[47].mxu1  ;;  %v9620_v35 = vsel %vm9121_vm4, %v2158_v2, -inf  ;;  %v9634_v2 = vsel %vm9153_vm6, %v2168_v22, -inf }
 0x396   :  { %11058 = vst [vmem:[#allocation44_spill] sm:$0xff] %v9604_v55  ;;  %v2443_v61 = vsel %vm2277_vm3, %v9604_v55, -inf  ;;  %v9610_v44 = vsel %vm9200_vm10, %v2051_v23, -inf  ;;  %11060 = vst [vmem:[#allocation46_spill] sm:$0xff] %v9620_v35  ;;  %v2449_v55 = vsel %vm2277_vm3, %v9614_v21, -inf  ;;  %v2446_v23 = vsel %vm2277_vm3, %v9620_v35, -inf }
 0x397   :  { %11059 = vst [vmem:[#allocation45_spill] sm:$0xff] %v9610_v44  ;;  %v2440_v40 = vsel %vm2277_vm3, %v9610_v44, -inf  ;;  %2444 = vmax.xlane.f32.xlu1 %v2443_v61  ;;  %v2452_v36 = vsel %vm2277_vm3, %v9634_v2, -inf }
 0x398   :  { %2441 = vmax.xlane.f32.xlu0 %v2440_v40  ;;  %v6532_v28 = vpop.f32.mrb[62].mxu0 }
 0x399   :  { %v2188_v49 = vpop.f32.mrb[63].mxu0  ;;  %v9658_v47 = vsel %vm9186_vm9, %v6532_v28, -inf }
 0x39a   :  { %v9670_v28 = vsel %vm9200_vm10, %v2188_v49, -inf }
 0x39b   :  { %2450 = vmax.xlane.f32.xlu1 %v2449_v55 }
 0x39c   :  { %2447 = vmax.xlane.f32.xlu0 %v2446_v23  ;;  %v9642_v23 = vsel %vm9162_vm7, %v6529_v14, -inf }
 0x39f   :  { %v2307_v27 = vpop.xlane.xlu1 %2306 }
 0x3a0   :  { %v2479_v61 = vsub.f32 %v9279_v18, %v2307_v27  ;;  %2456 = vmax.xlane.f32.xlu0 %v2455_v34  ;;  %v2304_v40 = vpop.xlane.xlu0 %2303 }
 0x3a1   :  { %v2478_v44 = vsub.f32 %v9285_v57, %v2304_v40  ;;  %v2461_v57 = vsel %vm2277_vm3, %v9642_v23, -inf  ;;  %v9650_v40 = vsel %vm9177_vm8, %v2178_v1, -inf }
 0x3a2   :  { %v2552_v55 = vmul.f32 1.442695, %v2479_v61  ;;  %v2458_v14 = vsel %vm2277_vm3, %v9650_v40, -inf }
 0x3a3   :  { %v2331_v62 = vpop.xlane.xlu1 %2330  ;;  %v2550_v35 = vmul.f32 1.442695, %v2478_v44 }
 0x3a4   :  { %7773 = vpow2.f32 %v2552_v55  ;;  %v2487_v63 = vsub.f32 %v9291_v53, %v2331_v62  ;;  %2453 = vmax.xlane.f32.xlu0 %v2452_v36  ;;  %v2328_v22 = vpop.xlane.xlu0 %2327 }
 0x3a5   :  { %v2486_v18 = vsub.f32 %v9295_v56, %v2328_v22 }
 0x3a6   :  { %v2568_v34 = vmul.f32 1.442695, %v2487_v63  ;;  %v2467_v63 = vsel %vm2277_vm3, %v9658_v47, -inf }
 0x3a7   :  { %v2566_v27 = vmul.f32 1.442695, %v2486_v18  ;;  %v2313_v61 = vpop.xlane.xlu1 %2312 }
 0x3a8   :  { %7775 = vpow2.f32 %v2568_v34  ;;  %v2481_v52 = vsub.f32 %v9303_v11, %v2313_v61  ;;  %2462 = vmax.xlane.f32.xlu0 %v2461_v57  ;;  %v2310_v53 = vpop.xlane.xlu0 %2309  ;;  %v2464_v61 = vsel %vm2277_vm3, %v9670_v28, -inf }
 0x3a9   :  { %7777 = vpow2.f32 %v2550_v35  ;;  %v2480_v44 = vsub.f32 %v9307_v32, %v2310_v53 }
 0x3aa   :  { %7779 = vpow2.f32 %v2566_v27  ;;  %v2556_v56 = vmul.f32 1.442695, %v2481_v52 }
 0x3ab   :  { %v2554_v55 = vmul.f32 1.442695, %v2480_v44  ;;  %v2337_v36 = vpop.xlane.xlu1 %2336 }
 0x3ac   :  { %v2489_v1 = vsub.f32 %v9315_v39, %v2337_v36  ;;  %2459 = vmax.xlane.f32.xlu0 %v2458_v14  ;;  %v2334_v11 = vpop.xlane.xlu0 %2333  ;;  %7781 = vpow2.f32 %v2556_v56 }
 0x3ad   :  { %7783 = vpow2.f32 %v2554_v55  ;;  %v2488_v35 = vsub.f32 %v9319_v19, %v2334_v11 }
 0x3ae   :  { %v9661_v62 = vpop.eup %7773  ;;  %v2572_v32 = vmul.f32 1.442695, %v2489_v1 }
 0x3af   :  { %v2319_v22 = vpop.xlane.xlu1 %2318  ;;  %v2689_v26 = vsel %vm2277_vm3, %v9661_v62, 0.0  ;;  %v2570_v19 = vmul.f32 1.442695, %v2488_v35 }
 0x3b0   :  { %2468 = vmax.xlane.f32.xlu0 %v2467_v63  ;;  %v2316_v39 = vpop.xlane.xlu0 %2315  ;;  %2690 = vadd.xlane.f32.xlu1 %v2689_v26  ;;  %7785 = vpow2.f32 %v2572_v32  ;;  %v2483_v57 = vsub.f32 %v9327_v0, %v2319_v22 }
 0x3b1   :  { %v2482_v18 = vsub.f32 %v9331_v4, %v2316_v39 }
 0x3b2   :  { %v9673_v34 = vpop.eup %7775  ;;  %v2560_v0 = vmul.f32 1.442695, %v2483_v57 }
 0x3b3   :  { %v9676_v27 = vpop.eup %7777  ;;  %v2558_v52 = vmul.f32 1.442695, %v2482_v18  ;;  %v2343_v3 = vpop.xlane.xlu1 %2342  ;;  %v2713_v49 = vsel %vm2277_vm3, %v9673_v34, 0.0 }
 0x3b4   :  { %v9682_v53 = vpop.eup %7779  ;;  %2465 = vmax.xlane.f32.xlu0 %v2464_v61  ;;  %v2340_v4 = vpop.xlane.xlu0 %2339  ;;  %2714 = vadd.xlane.f32.xlu1 %v2713_v49  ;;  %v2491_v56 = vsub.f32 %v9339_v31, %v2343_v3  ;;  %v2686_v11 = vsel %vm2277_vm3, %v9676_v27, 0.0 }
 0x3b5   :  { %7787 = vpow2.f32 %v2558_v52  ;;  %v2490_v44 = vsub.f32 %v9343_v43, %v2340_v4  ;;  %v2710_v1 = vsel %vm2277_vm3, %v9682_v53, 0.0 }
 0x3b6   :  { %7789 = vpow2.f32 %v2570_v19  ;;  %v9686_v14 = vpop.eup %7781  ;;  %v2576_v43 = vmul.f32 1.442695, %v2491_v56 }
 0x3b7   :  { %v2574_v55 = vmul.f32 1.442695, %v2490_v44  ;;  %v2325_v36 = vpop.xlane.xlu1 %2324  ;;  %v9692_v32 = vpop.eup %7783  ;;  %v2695_v26 = vsel %vm2277_vm3, %v9686_v14, 0.0 }
 0x3b8   :  { %2711 = vadd.xlane.f32.xlu0 %v2710_v1  ;;  %v2322_v35 = vpop.xlane.xlu0 %2321  ;;  %2687 = vadd.xlane.f32.xlu1 %v2686_v11  ;;  %v2485_v31 = vsub.f32 %v9351_v45, %v2325_v36  ;;  %v2692_v22 = vsel %vm2277_vm3, %v9692_v32, 0.0 }
 0x3b9   :  { %7791 = vpow2.f32 %v2574_v55  ;;  %v2484_v49 = vsub.f32 %v9355_v12, %v2322_v35 }
 0x3ba   :  { %7793 = vpow2.f32 %v2560_v0  ;;  %v9699_v39 = vpop.eup %7785  ;;  %v2564_v57 = vmul.f32 1.442695, %v2485_v31 }
 0x3bb   :  { %v2349_v63 = vpop.xlane.xlu1 %2348  ;;  %7795 = vpow2.f32 %v2576_v43  ;;  %v2719_v45 = vsel %vm2277_vm3, %v9699_v39, 0.0  ;;  %v2562_v12 = vmul.f32 1.442695, %v2484_v49 }
 0x3bc   :  { %2693 = vadd.xlane.f32.xlu0 %v2692_v22  ;;  %v2346_v18 = vpop.xlane.xlu0 %2345  ;;  %2696 = vadd.xlane.f32.xlu1 %v2695_v26  ;;  %v2493_v19 = vsub.f32 %v9365_v20, %v2349_v63  ;;  %7797 = vpow2.f32 %v2564_v57 }
 0x3bd   :  { %v2492_v35 = vsub.f32 %v9369_v59, %v2346_v18 }
 0x3be   :  { %v2580_v4 = vmul.f32 1.442695, %v2493_v19 }
 0x3bf   :  { %v9702_v61 = vpop.eup %7787  ;;  %v2578_v19 = vmul.f32 1.442695, %v2492_v35 }
 0x3c0   :  { %v9706_v52 = vpop.eup %7789  ;;  %2720 = vadd.xlane.f32.xlu1 %v2719_v45  ;;  %v2698_v3 = vsel %vm2277_vm3, %v9702_v61, 0.0  ;;  %7799 = vpow2.f32 %v2580_v4 }
 0x3c1   :  { %v2355_v44 = vpop.xlane.xlu1 %2354  ;;  %2699 = vadd.xlane.f32.xlu0 %v2698_v3  ;;  %v2716_v55 = vsel %vm2277_vm3, %v9706_v52, 0.0 }
 0x3c2   :  { %v2495_v20 = vsub.f32 %v9379_v15, %v2355_v44  ;;  %v2352_v0 = vpop.xlane.xlu0 %2351 }
 0x3c3   :  { %v9712_v56 = vpop.eup %7791  ;;  %v2494_v57 = vsub.f32 %v9385_v42, %v2352_v0 }
 0x3c4   :  { %v9716_v36 = vpop.eup %7793  ;;  %v2584_v1 = vmul.f32 1.442695, %v2495_v20  ;;  %2717 = vadd.xlane.f32.xlu1 %v2716_v55  ;;  %v2722_v11 = vsel %vm2277_vm3, %v9712_v56, 0.0 }
 0x3c5   :  { %v2379_v43 = vpop.xlane.xlu1 %2378  ;;  %2723 = vadd.xlane.f32.xlu0 %v2722_v11  ;;  %v2701_v63 = vsel %vm2277_vm3, %v9716_v36, 0.0  ;;  %v9724_v22 = vpop.eup %7795  ;;  %v2582_v4 = vmul.f32 1.442695, %v2494_v57 }
 0x3c6   :  { %7801 = vpow2.f32 %v2584_v1  ;;  %v2503_v15 = vsub.f32 %v9391_v25, %v2379_v43  ;;  %v2376_v31 = vpop.xlane.xlu0 %2375  ;;  %v2725_v25 = vsel %vm2277_vm3, %v9724_v22, 0.0  ;;  %v9730_v3 = vpop.eup %7797 }
 0x3c7   :  { %7803 = vpow2.f32 %v2562_v12  ;;  %v2502_v44 = vsub.f32 %v9395_v29, %v2376_v31 }
 0x3c8   :  { %v2600_v26 = vmul.f32 1.442695, %v2503_v15  ;;  %2702 = vadd.xlane.f32.xlu1 %v2701_v63 }
 0x3c9   :  { %v2361_v45 = vpop.xlane.xlu1 %2360  ;;  %v2598_v12 = vmul.f32 1.442695, %v2502_v44 }
 0x3ca   :  { %7805 = vpow2.f32 %v2600_v26  ;;  %v2497_v59 = vsub.f32 %v9404_v30, %v2361_v45  ;;  %v2358_v18 = vpop.xlane.xlu0 %2357  ;;  %v9734_v55 = vpop.eup %7799  ;;  %v2707_v30 = vsel %vm2277_vm3, %v9730_v3, 0.0 }
 0x3cb   :  { %7807 = vpow2.f32 %v2578_v19  ;;  %v2496_v35 = vsub.f32 %v9408_v50, %v2358_v18  ;;  %v2731_v63 = vsel %vm2277_vm3, %v9734_v55, 0.0 }
 0x3cc   :  { %v2588_v49 = vmul.f32 1.442695, %v2497_v59  ;;  %2726 = vadd.xlane.f32.xlu1 %v2725_v25 }
 0x3cd   :  { %v2385_v20 = vpop.xlane.xlu1 %2384  ;;  %v2586_v50 = vmul.f32 1.442695, %v2496_v35 }
 0x3ce   :  { %7809 = vpow2.f32 %v2588_v49  ;;  %v2505_v42 = vsub.f32 %v9418_v46, %v2385_v20  ;;  %v2382_v0 = vpop.xlane.xlu0 %2381 }
 0x3cf   :  { %7811 = vpow2.f32 %v2582_v4  ;;  %v2504_v59 = vsub.f32 %v9422_v17, %v2382_v0 }
 0x3d0   :  { %v9738_v1 = vpop.eup %7801  ;;  %v2604_v11 = vmul.f32 1.442695, %v2505_v42  ;;  %2708 = vadd.xlane.f32.xlu1 %v2707_v30 }
 0x3d1   :  { %v2367_v43 = vpop.xlane.xlu1 %2366  ;;  %v2737_v29 = vsel %vm2277_vm3, %v9738_v1, 0.0  ;;  %v9744_v31 = vpop.eup %7803  ;;  %v2602_v0 = vmul.f32 1.442695, %v2504_v59 }
 0x3d2   :  { %7813 = vpow2.f32 %v2604_v11  ;;  %v2499_v46 = vsub.f32 %v9431_v5, %v2367_v43  ;;  %v2364_v15 = vpop.xlane.xlu0 %2363  ;;  %2738 = vadd.xlane.f32.xlu0 %v2737_v29  ;;  %v2704_v49 = vsel %vm2277_vm3, %v9744_v31, 0.0 }
 0x3d3   :  { %7815 = vpow2.f32 %v2598_v12  ;;  %v2498_v20 = vsub.f32 %v9435_v13, %v2364_v15 }
 0x3d4   :  { %v9748_v26 = vpop.eup %7805  ;;  %v2592_v19 = vmul.f32 1.442695, %v2499_v46  ;;  %2732 = vadd.xlane.f32.xlu1 %v2731_v63 }
 0x3d5   :  { %v2391_v57 = vpop.xlane.xlu1 %2390  ;;  %v2761_v45 = vsel %vm2277_vm3, %v9748_v26, 0.0  ;;  %v9754_v25 = vpop.eup %7807  ;;  %v2590_v43 = vmul.f32 1.442695, %v2498_v20 }
 0x3d6   :  { %7817 = vpow2.f32 %v2592_v19  ;;  %v2507_v5 = vsub.f32 %v9446_v33, %v2391_v57  ;;  %v2388_v18 = vpop.xlane.xlu0 %2387  ;;  %2762 = vadd.xlane.f32.xlu0 %v2761_v45  ;;  %v2728_v12 = vsel %vm2277_vm3, %v9754_v25, 0.0 }
 0x3d7   :  { %7819 = vpow2.f32 %v2586_v50  ;;  %v2506_v11 = vsub.f32 %v9450_v54, %v2388_v18 }
 0x3d8   :  { %v9758_v4 = vpop.eup %7809  ;;  %v2608_v44 = vmul.f32 1.442695, %v2507_v5  ;;  %2705 = vadd.xlane.f32.xlu1 %v2704_v49 }
 0x3d9   :  { %v2667_v42 = vpop.xlane.xlu1 %2666  ;;  %v2743_v17 = vsel %vm2277_vm3, %v9758_v4, 0.0  ;;  %v9763_v30 = vpop.eup %7811  ;;  %v2606_v19 = vmul.f32 1.442695, %v2506_v11 }
 0x3da   :  { %7821 = vpow2.f32 %v2608_v44  ;;  %v2370_v33 = vpop.xlane.xlu0 %2369  ;;  %2744 = vadd.xlane.f32.xlu0 %v2743_v17  ;;  %v2734_v54 = vsel %vm2277_vm3, %v9763_v30, 0.0 }
 0x3db   :  { %7823 = vpow2.f32 %v2602_v0  ;;  %v2500_v45 = vsub.f32 %v9462_v24, %v2370_v33 }
 0x3dc   :  { %v9768_v35 = vpop.eup %7813  ;;  %2729 = vadd.xlane.f32.xlu1 %v2728_v12  ;;  %7825 = vpow2.f32 %v2590_v43 }
 0x3dd   :  { %v2373_v13 = vpop.xlane.xlu1 %2372  ;;  %v2767_v29 = vsel %vm2277_vm3, %v9768_v35, 0.0  ;;  %v9773_v63 = vpop.eup %7815  ;;  %v2594_v24 = vmul.f32 1.442695, %v2500_v45 }
 0x3de   :  { %v2501_v46 = vsub.f32 %v9469_v38, %v2373_v13  ;;  %v2394_v15 = vpop.xlane.xlu0 %2393  ;;  %2768 = vadd.xlane.f32.xlu0 %v2767_v29  ;;  %v2758_v44 = vsel %vm2277_vm3, %v9773_v63, 0.0 }
 0x3e0   :  { %v9777_v50 = vpop.eup %7817  ;;  %v2596_v57 = vmul.f32 1.442695, %v2501_v46  ;;  %2735 = vadd.xlane.f32.xlu1 %v2734_v54 }
 0x3e1   :  { %v2397_v59 = vpop.xlane.xlu1 %2396  ;;  %v2749_v5 = vsel %vm2277_vm3, %v9777_v50, 0.0  ;;  %v9783_v49 = vpop.eup %7819 }
 0x3e2   :  { %7827 = vpow2.f32 %v2596_v57  ;;  %v2509_v38 = vsub.f32 %v9483_v6, %v2397_v59  ;;  %v2670_v18 = vpop.xlane.xlu0 %2669  ;;  %2750 = vadd.xlane.f32.xlu0 %v2749_v5  ;;  %v2508_v6 = vsub.f32 %v9475_v51, %v2394_v15  ;;  %v2740_v12 = vsel %vm2277_vm3, %v9783_v49, 0.0 }
 0x3e3   :  { %7829 = vpow2.f32 %v2606_v19 }
 0x3e4   :  { %v9787_v20 = vpop.eup %7821  ;;  %7831 = vrcp.f32 %v2667_v42  ;;  %v2612_v17 = vmul.f32 1.442695, %v2509_v38  ;;  %2759 = vadd.xlane.f32.xlu1 %v2758_v44  ;;  %v2610_v13 = vmul.f32 1.442695, %v2508_v6 }
 0x3e5   :  { %7833 = vrcp.f32 %v2670_v18  ;;  %v2664_v0 = vpop.xlane.xlu1 %2663  ;;  %v2773_v33 = vsel %vm2277_vm3, %v9787_v20, 0.0  ;;  %v9794_v43 = vpop.eup %7823 }
 0x3e6   :  { %7835 = vpow2.f32 %v2612_v17  ;;  %v2682_v11 = vpop.xlane.xlu0 %2681  ;;  %2774 = vadd.xlane.f32.xlu0 %v2773_v33  ;;  %v9796_v46 = vpop.eup %7825  ;;  %v2764_v51 = vsel %vm2277_vm3, %v9794_v43, 0.0  ;;  %v7489_v17 = vunpack.i.h.bf16 %v9111_v41 }
 0x3e7   :  { %7837 = vrcp.f32 %v2664_v0  ;;  %v2746_v38 = vsel %vm2277_vm3, %v9796_v46, 0.0 }
 0x3e8   :  { %2741 = vadd.xlane.f32.xlu1 %v2740_v12  ;;  %7839 = vpow2.f32 %v2594_v24  ;;  %v7488_v24 = vunpack.i.l.bf16 %v9111_v41 }
 0x3e9   :  { %v2673_v42 = vpop.xlane.xlu1 %2672 }
 0x3ea   :  { %7841 = vrcp.f32 %v2673_v42  ;;  %v2400_v29 = vpop.xlane.xlu0 %2399 }
 0x3eb   :  { %7843 = vpow2.f32 %v2610_v13 }
 0x3ec   :  { %v9800_v15 = vpop.eup %7827  ;;  %2765 = vadd.xlane.f32.xlu1 %v2764_v51  ;;  %7845 = vrcp.f32 %v2682_v11 }
 0x3ed   :  { %v9802_v19 = vpop.eup %7829  ;;  %v2679_v54 = vpop.xlane.xlu1 %2678  ;;  %v2755_v57 = vsel %vm2277_vm3, %v9800_v15, 0.0 }
 0x3ee   :  { %v7832_v45 = vpop.eup %7831  ;;  %v9806_v59 = vpop.xlane.xlu0 %2423  ;;  %2756 = vadd.xlane.f32.xlu0 %v2755_v57  ;;  %7847 = vrcp.f32 %v2679_v54  ;;  %v2770_v13 = vsel %vm2277_vm3, %v9802_v19, 0.0  ;;  %v7494_v54 = vunpack.i.h.bf16 %v9212_v60  ;;  %v7493_v57 = vunpack.i.l.bf16 %v9212_v60  ;;  %v11066_v60 = vld [vmem:[#allocation11_spill] sm:$0xff] }
 0x3ef   :  { %v7834_v5 = vpop.eup %7833  ;;  %v2919_v42 = vmul.f32 %v7832_v45, %v9456_v16  ;;  %v11062_v16 = vld [vmem:[#allocation30_spill] sm:$0xff] }
 0x3f0   :  { %v9810_v18 = vpop.eup %7835  ;;  %2747 = vadd.xlane.f32.xlu1 %v2746_v38  ;;  %v2920_v41 = vmul.f32 %v7834_v5, %v9487_v48 }
 0x3f1   :  { %11061 = vst [vmem:[#allocation47_spill] sm:$0xff] %v9810_v18  ;;  %v7838_v44 = vpop.eup %7837  ;;  %v2676_v0 = vpop.xlane.xlu1 %2675  ;;  %v2779_v33 = vsel %vm2277_vm3, %v9810_v18, 0.0  ;;  %v11068_v18 = vld [vmem:[#allocation32_spill] sm:$0xff] }
 0x3f2   :  { %7849 = vrcp.f32 %v2676_v0  ;;  %2780 = vadd.xlane.f32.xlu0 %v2779_v33  ;;  %v2918_v6 = vmul.f32 %v7838_v44, %v9492_v9  ;;  %v9817_v12 = vpop.eup %7839  ;;  %v9820_v11 = vpop.xlane.xlu0 %2405  ;;  %v7089_v9 = vpack.c.bf16 %v7489_v17, %v7488_v24  ;;  %v11063_v44 = vld [vmem:[#allocation15_spill] sm:$0xff]  ;;  %v7498_v17 = vunpack.i.l.bf16 %v11066_v60 }
 0x3f3   :  { %v2752_v48 = vsel %vm2277_vm3, %v9817_v12, 0.0  ;;  %v11065_v0 = vld [vmem:[#allocation31_spill] sm:$0xff] }
 0x3f4   :  { %v7842_v51 = vpop.eup %7841  ;;  %6549 = vmatprep.mubr.msk.f32.mxu1 %vm2277_vm3, %v2918_v6  ;;  %2771 = vadd.xlane.f32.xlu1 %v2770_v13  ;;  %v2510_v33 = vsub.f32 %v11065_v0, %v2400_v29  ;;  %v7499_v6 = vunpack.i.h.bf16 %v11066_v60  ;;  %v11067_v60 = vld [vmem:[#allocation17_spill] sm:$0xff] }
 0x3f5   :  { %6550 = vmatmul.mubr.msk.f32.vlgmr.msra.gmra.mrb[48].mxu1 %vm2277_vm3, %v2919_v42  ;;  %v2685_v38 = vpop.xlane.xlu1 %2684  ;;  %v2921_v45 = vmul.f32 %v7842_v51, %v11062_v16  ;;  %v9834_v5 = vpop.eup %7843  ;;  %v7093_v42 = vpack.c.bf16 %v7494_v54, %v7493_v57  ;;  %v7503_v54 = vunpack.i.l.bf16 %v11067_v60 }
 0x3f6   :  { %7088 = vmatpush3.bf16.msra.mxu1 %v11063_v44  ;;  %7851 = vrcp.f32 %v2685_v38  ;;  %6552 = vmatprep.mubr.msk.f32.mxu1 %vm2277_vm3, %v2920_v41  ;;  %11064 = vst [vmem:[#allocation30_spill] sm:$0xff] %v9834_v5  ;;  %v2430_v24 = vpop.xlane.xlu0 %2429  ;;  %v7846_v51 = vpop.eup %7845  ;;  %v2776_v16 = vsel %vm2277_vm3, %v9834_v5, 0.0  ;;  %v2614_v44 = vmul.f32 1.442695, %v2510_v33  ;;  %v7097_v57 = vpack.c.bf16 %v7499_v6, %v7498_v17  ;;  %v11070_v6 = vld [vmem:[#allocation33_spill] sm:$0xff] }
 0x3f7   :  { %7090 = vmatprep.subr.bf16.mxu1 %v7089_v9  ;;  %v2512_v17 = vsub.f32 %v11070_v6, %v9820_v11 }
 0x3f8   :  { %2753 = vadd.xlane.f32.xlu1 %v2752_v48  ;;  %v7848_v38 = vpop.eup %7847  ;;  %v2518_v48 = vsub.f32 %v9516_v10, %v9806_v59  ;;  %v11069_v10 = vld [vmem:[#allocation29_spill] sm:$0xff] }
 0x3f9   :  { %6553 = vmatmul.mubr.msk.f32.gmra.mrb[50].mxu1 %vm2277_vm3, %v2921_v45  ;;  %v2403_v13 = vpop.xlane.xlu1 %2402  ;;  %v7504_v45 = vunpack.i.h.bf16 %v11067_v60  ;;  %v2923_v5 = vmul.f32 %v7848_v38, %v11068_v18  ;;  %v2924_v59 = vmul.f32 %v7846_v51, %v11069_v10  ;;  %v11071_v18 = vld [vmem:[#allocation34_spill] sm:$0xff] }
 0x3fa   :  { %7092 = vmatpush3.bf16.msra.mxu1 %v7089_v9  ;;  %v2511_v41 = vsub.f32 %v9542_v8, %v2403_v13  ;;  %v2412_v33 = vpop.xlane.xlu0 %2411  ;;  %v11072_v38 = vld [vmem:[#allocation38_spill] sm:$0xff] }
 0x3fb   :  { %7094 = vmatprep.subr.bf16.mxu1 %v7093_v42 }
 0x3fc   :  { %v7850_v29 = vpop.eup %7849  ;;  %v2616_v0 = vmul.f32 1.442695, %v2511_v41  ;;  %2777 = vadd.xlane.f32.xlu1 %v2776_v16  ;;  %v2630_v16 = vmul.f32 1.442695, %v2518_v48 }
 0x3fd   :  { %v2427_v9 = vpop.xlane.xlu1 %2426  ;;  %v2922_v8 = vmul.f32 %v7850_v29, %v9520_v37  ;;  %v9856_v37 = vpack.c.bf16 %v7504_v45, %v7503_v54  ;;  %v2618_v29 = vmul.f32 1.442695, %v2512_v17  ;;  %v11074_v45 = vld [vmem:[#allocation39_spill] sm:$0xff] }
 0x3fe   :  { %7853 = vpow2.f32 %v2616_v0  ;;  %7096 = vmatpush3.bf16.msra.mxu1 %v7093_v42  ;;  %v2519_v13 = vsub.f32 %v9554_v58, %v2427_v9 }
 0x3ff   :  { %7098 = vmatprep.subr.bf16.mxu1 %v7097_v57  ;;  %6555 = vmatprep.mubr.msk.f32.mxu1 %vm2277_vm3, %v2922_v8  ;;  %7855 = vpow2.f32 %v2614_v44  ;;  %v11073_v44 = vld [vmem:[#allocation35_spill] sm:$0xff]  ;;  %v11076_v8 = vld [vmem:[#allocation37_spill] sm:$0xff] }
 0x400   :  { %v7852_v41 = vpop.eup %7851  ;;  %v2632_v60 = vmul.f32 1.442695, %v2519_v13  ;;  %6556 = vmatmul.mubr.msk.f32.gmra.mrb[52].mxu1 %vm2277_vm3, %v2923_v5  ;;  %v2520_v11 = vsub.f32 %v11073_v44, %v2430_v24  ;;  %v2436_v5 = vpop.xlane.xlu0 %2435 }
 0x401   :  { %6558 = vmatprep.mubr.msk.f32.mxu1 %vm2277_vm3, %v2924_v59  ;;  %v2409_v58 = vpop.xlane.xlu1 %2408  ;;  %v2925_v42 = vmul.f32 %v7852_v41, %v11071_v18  ;;  %v2522_v13 = vsub.f32 %v11076_v8, %v2436_v5 }
 0x402   :  { %7857 = vpow2.f32 %v2632_v60  ;;  %7100 = vmatpush3.bf16.msra.mxu1 %v7097_v57  ;;  %v2513_v51 = vsub.f32 %v11072_v38, %v2409_v58  ;;  %v2634_v57 = vmul.f32 1.442695, %v2520_v11  ;;  %v11080_v60 = vld [vmem:[#allocation36_spill] sm:$0xff]  ;;  %v11082_v11 = vld [vmem:[#allocation41_spill] sm:$0xff] }
 0x403   :  { %7102 = vmatprep.subr.bf16.mxu1 %v9856_v37  ;;  %7859 = vpow2.f32 %v2630_v16  ;;  %v11078_v16 = vld [vmem:[#allocation40_spill] sm:$0xff]  ;;  %v2514_v58 = vsub.f32 %v11080_v60, %v2412_v33  ;;  %v2638_v18 = vmul.f32 1.442695, %v2522_v13 }
 0x404   :  { %v2620_v48 = vmul.f32 1.442695, %v2513_v51  ;;  %6559 = vmatmul.mubr.msk.f32.gmra.mrb[54].mxu1 %vm2277_vm3, %v2925_v42 }
 0x405   :  { %v2433_v0 = vpop.xlane.xlu1 %2432 }
 0x406   :  { %7861 = vpow2.f32 %v2620_v48  ;;  %v2521_v54 = vsub.f32 %v11074_v45, %v2433_v0  ;;  %v2622_v0 = vmul.f32 1.442695, %v2514_v58 }
 0x407   :  { %7863 = vpow2.f32 %v2618_v29 }
 0x408   :  { %v9864_v9 = vpop.eup %7853  ;;  %v2636_v10 = vmul.f32 1.442695, %v2521_v54 }
 0x409   :  { %11075 = vst [vmem:[#allocation15_spill] sm:$0xff] %v9864_v9  ;;  %v2415_v59 = vpop.xlane.xlu1 %2414  ;;  %v2785_v41 = vsel %vm2277_vm3, %v9864_v9, 0.0  ;;  %v9869_v24 = vpop.eup %7855 }
 0x40a   :  { %11077 = vst [vmem:[#allocation31_spill] sm:$0xff] %v9869_v24  ;;  %7865 = vpow2.f32 %v2636_v10  ;;  %v2515_v6 = vsub.f32 %v11078_v16, %v2415_v59  ;;  %2786 = vadd.xlane.f32.xlu1 %v2785_v41  ;;  %v2782_v51 = vsel %vm2277_vm3, %v9869_v24, 0.0  ;;  %v11086_v10 = vld [vmem:[#allocation42_spill] sm:$0xff]  ;;  %v11087_v16 = vld [vmem:[#allocation43_spill] sm:$0xff] }
 0x40b   :  { %7867 = vpow2.f32 %v2634_v57 }
 0x40c   :  { %v9872_v17 = vpop.eup %7857  ;;  %v2624_v42 = vmul.f32 1.442695, %v2515_v6 }
 0x40d   :  { %11079 = vst [vmem:[#allocation11_spill] sm:$0xff] %v9872_v17  ;;  %v2439_v38 = vpop.xlane.xlu1 %2438  ;;  %v2809_v29 = vsel %vm2277_vm3, %v9872_v17, 0.0  ;;  %v9879_v44 = vpop.eup %7859 }
 0x40e   :  { %11081 = vst [vmem:[#allocation17_spill] sm:$0xff] %v9879_v44  ;;  %7869 = vpow2.f32 %v2624_v42  ;;  %v2523_v48 = vsub.f32 %v11082_v11, %v2439_v38  ;;  %2783 = vadd.xlane.f32.xlu1 %v2782_v51  ;;  %2810 = vadd.xlane.f32.xlu0 %v2809_v29  ;;  %v2806_v45 = vsel %vm2277_vm3, %v9879_v44, 0.0 }
 0x40f   :  { %7871 = vpow2.f32 %v2638_v18 }
 0x410   :  { %v9882_v5 = vpop.eup %7861  ;;  %v2640_v33 = vmul.f32 1.442695, %v2523_v48 }
 0x411   :  { %11083 = vst [vmem:[#allocation32_spill] sm:$0xff] %v9882_v5  ;;  %v2791_v54 = vsel %vm2277_vm3, %v9882_v5, 0.0  ;;  %v9888_v57 = vpop.eup %7863 }
 0x412   :  { %11084 = vst [vmem:[#allocation29_spill] sm:$0xff] %v9888_v57  ;;  %7873 = vpow2.f32 %v2640_v33  ;;  %2807 = vadd.xlane.f32.xlu1 %v2806_v45  ;;  %2792 = vadd.xlane.f32.xlu0 %v2791_v54  ;;  %v2788_v58 = vsel %vm2277_vm3, %v9888_v57, 0.0 }
 0x413   :  { %v2421_v8 = vpop.xlane.xlu1 %2420  ;;  %7875 = vpow2.f32 %v2622_v0 }
 0x414   :  { %v9890_v13 = vpop.eup %7865  ;;  %v2517_v59 = vsub.f32 %v11086_v10, %v2421_v8  ;;  %v2418_v41 = vpop.xlane.xlu0 %2417 }
 0x415   :  { %11085 = vst [vmem:[#allocation33_spill] sm:$0xff] %v9890_v13  ;;  %v2516_v6 = vsub.f32 %v11087_v16, %v2418_v41  ;;  %v2815_v60 = vsel %vm2277_vm3, %v9890_v13, 0.0  ;;  %v9898_v18 = vpop.eup %7867 }
 0x416   :  { %11088 = vst [vmem:[#allocation34_spill] sm:$0xff] %v9898_v18  ;;  %v2628_v42 = vmul.f32 1.442695, %v2517_v59  ;;  %2816 = vadd.xlane.f32.xlu1 %v2815_v60  ;;  %2789 = vadd.xlane.f32.xlu0 %v2788_v58  ;;  %v2812_v11 = vsel %vm2277_vm3, %v9898_v18, 0.0 }
 0x417   :  { %v2626_v38 = vmul.f32 1.442695, %v2516_v6 }
 0x418   :  { %v9900_v51 = vpop.eup %7869  ;;  %7877 = vpow2.f32 %v2628_v42 }
 0x419   :  { %11089 = vst [vmem:[#allocation38_spill] sm:$0xff] %v9900_v51  ;;  %v2797_v29 = vsel %vm2277_vm3, %v9900_v51, 0.0  ;;  %v9906_v48 = vpop.eup %7871  ;;  %7879 = vpow2.f32 %v2626_v38  ;;  %v11097_v51 = vld [vmem:[#allocation46_spill] sm:$0xff] }
 0x41a   :  { %11090 = vst [vmem:[#allocation35_spill] sm:$0xff] %v9906_v48  ;;  %2798 = vadd.xlane.f32.xlu1 %v2797_v29  ;;  %2813 = vadd.xlane.f32.xlu0 %v2812_v11  ;;  %v2818_v45 = vsel %vm2277_vm3, %v9906_v48, 0.0  ;;  %v11095_v29 = vld [vmem:[#allocation8_spill] sm:$0xff] }
 0x41c   :  { %v9908_v0 = vpop.eup %7873 }
 0x41d   :  { %11091 = vst [vmem:[#allocation39_spill] sm:$0xff] %v9908_v0  ;;  %v2821_v33 = vsel %vm2277_vm3, %v9908_v0, 0.0  ;;  %v9914_v54 = vpop.eup %7875 }
 0x41e   :  { %11092 = vst [vmem:[#allocation37_spill] sm:$0xff] %v9914_v54  ;;  %2822 = vadd.xlane.f32.xlu1 %v2821_v33  ;;  %2819 = vadd.xlane.f32.xlu0 %v2818_v45  ;;  %v2794_v8 = vsel %vm2277_vm3, %v9914_v54, 0.0  ;;  %v11096_v33 = vld [vmem:[#allocation9_spill] sm:$0xff] }
 0x422   :  { %v9918_v10 = vpop.eup %7877  ;;  %2795 = vadd.xlane.f32.xlu1 %v2794_v8 }
 0x423   :  { %11093 = vst [vmem:[#allocation40_spill] sm:$0xff] %v9918_v10  ;;  %v2803_v59 = vsel %vm2277_vm3, %v9918_v10, 0.0  ;;  %v9922_v41 = vpop.eup %7879 }
 0x424   :  { %11094 = vst [vmem:[#allocation36_spill] sm:$0xff] %v9922_v41  ;;  %2804 = vadd.xlane.f32.xlu0 %v2803_v59  ;;  %v2800_v6 = vsel %vm2277_vm3, %v9922_v41, 0.0  ;;  %v9928_v38 = vpop.xlane.xlu1 %2444 }
 0x425   :  { %v9924_v16 = vpop.xlane.xlu0 %2441 }
 0x428   :  { %2801 = vadd.xlane.f32.xlu0 %v2800_v6  ;;  %v2451_v45 = vpop.xlane.xlu1 %2450 }
 0x429   :  { %v2448_v60 = vpop.xlane.xlu0 %2447  ;;  %v2527_v13 = vsub.f32 %v9614_v21, %v2451_v45 }
 0x42a   :  { %v2526_v54 = vsub.f32 %v11097_v51, %v2448_v60  ;;  %v11099_v60 = vld [vmem:[#allocation12_spill] sm:$0xff] }
 0x42b   :  { %v2648_v41 = vmul.f32 1.442695, %v2527_v13 }
 0x42c   :  { %v2646_v9 = vmul.f32 1.442695, %v2526_v54 }
 0x42d   :  { %v2457_v58 = vpop.xlane.xlu0 %2456 }
 0x42e   :  { %v2529_v10 = vsub.f32 %v9628_v7, %v2457_v58  ;;  %v7514_v58 = vunpack.i.h.bf16 %v11099_v60 }
 0x430   :  { %v2652_v44 = vmul.f32 1.442695, %v2529_v10 }
 0x431   :  { %v2454_v42 = vpop.xlane.xlu0 %2453 }
 0x433   :  { %7591 = vrot.lane.b32.xlu1 %v11095_v29, %s8114_s2 }
 0x435   :  { %v2463_v11 = vpop.xlane.xlu0 %2462 }
 0x436   :  { %v2531_v7 = vsub.f32 %v9642_v23, %v2463_v11 }
 0x437   :  { %7596 = vrot.lane.b32.xlu1 %v11096_v33, %s8113_s1 }
 0x439   :  { %v2460_v8 = vpop.xlane.xlu0 %2459 }
 0x43a   :  { %v2530_v54 = vsub.f32 %v9650_v40, %v2460_v8 }
 0x43d   :  { %v9934_v59 = vpop.xlane.xlu0 %2468  ;;  %v2691_v0 = vpop.xlane.xlu1 %2690 }
 0x43e   :  { %7586 = vrot.lane.b32.xlu0 %v11095_v29, %s8113_s1  ;;  %7881 = vrcp.f32 %v2691_v0  ;;  %v2528_v29 = vsub.f32 %v9634_v2, %v2454_v42  ;;  %v11098_v0 = vld [vmem:[#allocation19_spill] sm:$0xff] }
 0x43f   :  { %v7508_v2 = vunpack.i.l.bf16 %v11098_v0 }
 0x440   :  { %v2650_v24 = vmul.f32 1.442695, %v2528_v29  ;;  %v2654_v29 = vmul.f32 1.442695, %v2530_v54 }
 0x441   :  { %v9938_v6 = vpop.xlane.xlu0 %2465  ;;  %v9940_v48 = vpop.xlane.xlu1 %2714 }
 0x445   :  { %v9943_v18 = vpop.xlane.xlu0 %2711  ;;  %v2688_v17 = vpop.xlane.xlu1 %2687 }
 0x446   :  { %7883 = vrcp.f32 %v2688_v17 }
 0x448   :  { %v7882_v17 = vpop.eup %7881 }
 0x449   :  { %v2694_v5 = vpop.xlane.xlu0 %2693  ;;  %v2697_v57 = vpop.xlane.xlu1 %2696 }
 0x44a   :  { %7885 = vrcp.f32 %v2694_v5  ;;  %v7509_v5 = vunpack.i.h.bf16 %v11098_v0 }
 0x44b   :  { %7887 = vrcp.f32 %v2697_v57  ;;  %v2656_v57 = vmul.f32 1.442695, %v2531_v7 }
 0x44c   :  { %7889 = vpow2.f32 %v2648_v41  ;;  %v2927_v41 = vmul.f32 %v7882_v17, %v9661_v62  ;;  %v11100_v62 = vld [vmem:[#allocation45_spill] sm:$0xff] }
 0x44d   :  { %v9948_v21 = vpop.xlane.xlu1 %2720  ;;  %7891 = vpow2.f32 %v2652_v44  ;;  %v2524_v8 = vsub.f32 %v11100_v62, %v9924_v16 }
 0x44e   :  { %v2700_v45 = vpop.xlane.xlu0 %2699 }
 0x44f   :  { %7893 = vrcp.f32 %v2700_v45 }
 0x450   :  { %7895 = vpow2.f32 %v2646_v9  ;;  %v7884_v51 = vpop.eup %7883  ;;  %v7513_v9 = vunpack.i.l.bf16 %v11099_v60 }
 0x451   :  { %v9951_v13 = vpop.xlane.xlu1 %2717  ;;  %7897 = vpow2.f32 %v2650_v24  ;;  %v2926_v44 = vmul.f32 %v7884_v51, %v9676_v27  ;;  %v7105_v24 = vpack.c.bf16 %v7509_v5, %v7508_v2  ;;  %v11101_v51 = vld [vmem:[#allocation21_spill] sm:$0xff]  ;;  %v2642_v2 = vmul.f32 1.442695, %v2524_v8 }
 0x452   :  { %v7109_v7 = vpack.c.bf16 %v7514_v58, %v7513_v9  ;;  %v7518_v0 = vunpack.i.l.bf16 %v11101_v51  ;;  %v2724_v54 = vpop.xlane.xlu0 %2723 }
 0x453   :  { %6577 = vmatprep.mubr.msk.f32.mxu1 %vm2277_vm3, %v2926_v44 }
 0x454   :  { %v7886_v10 = vpop.eup %7885  ;;  %6578 = vmatmul.mubr.msk.f32.vlgmr.msra.gmra.mrb[56].mxu1 %vm2277_vm3, %v2927_v41 }
 0x455   :  { %v7888_v23 = vpop.eup %7887  ;;  %v2703_v42 = vpop.xlane.xlu1 %2702  ;;  %v2928_v11 = vmul.f32 %v7886_v10, %v9692_v32  ;;  %7104 = vmatpush3.bf16.msra.mxu1 %v9856_v37 }
 0x456   :  { %7899 = vrcp.f32 %v2703_v42  ;;  %v2929_v40 = vmul.f32 %v7888_v23, %v9686_v14  ;;  %v9964_v27 = vpop.eup %7889  ;;  %7106 = vmatprep.subr.bf16.mxu1 %v7105_v24  ;;  %v7519_v14 = vunpack.i.h.bf16 %v11101_v51 }
 0x457   :  { %7901 = vpow2.f32 %v2656_v57  ;;  %6580 = vmatprep.mubr.msk.f32.mxu1 %vm2277_vm3, %v2928_v11  ;;  %v9970_v45 = vpop.eup %7891  ;;  %v2833_v16 = vsel %vm2277_vm3, %v9964_v27, 0.0  ;;  %v2532_v57 = vsub.f32 %v9670_v28, %v9938_v6  ;;  %v2533_v6 = vsub.f32 %v9658_v47, %v9934_v59 }
 0x458   :  { %6581 = vmatmul.mubr.msk.f32.gmra.mrb[58].mxu1 %vm2277_vm3, %v2929_v40  ;;  %7903 = vpow2.f32 %v2654_v29  ;;  %v2839_v44 = vsel %vm2277_vm3, %v9970_v45, 0.0  ;;  %v7113_v58 = vpack.c.bf16 %v7519_v14, %v7518_v0 }
 0x459   :  { %v7894_v32 = vpop.eup %7893  ;;  %v9972_v17 = vpop.xlane.xlu1 %2726  ;;  %7108 = vmatpush3.bf16.msra.mxu1 %v7105_v24  ;;  %7905 = vpow2.f32 %v2642_v2  ;;  %v2658_v9 = vmul.f32 1.442695, %v2532_v57 }
 0x45a   :  { %v2930_v37 = vmul.f32 %v7894_v32, %v9702_v61  ;;  %v9980_v5 = vpop.eup %7895  ;;  %7110 = vmatprep.subr.bf16.mxu1 %v7109_v7  ;;  %v11102_v61 = vld [vmem:[#allocation13_spill] sm:$0xff]  ;;  %v2660_v32 = vmul.f32 1.442695, %v2533_v6 }
 0x45b   :  { %2834 = vadd.xlane.f32.xlu1 %v2833_v16  ;;  %v9987_v10 = vpop.eup %7897  ;;  %v7524_v23 = vunpack.i.h.bf16 %v11102_v61  ;;  %v7523_v60 = vunpack.i.l.bf16 %v11102_v61  ;;  %v2830_v28 = vsel %vm2277_vm3, %v9980_v5, 0.0  ;;  %7907 = vpow2.f32 %v2658_v9 }
 0x45c   :  { %6583 = vmatprep.mubr.msk.f32.mxu1 %vm2277_vm3, %v2930_v37  ;;  %v2836_v24 = vsel %vm2277_vm3, %v9987_v10, 0.0  ;;  %7909 = vrcp.f32 %v9943_v18 }
 0x45d   :  { %v2709_v41 = vpop.xlane.xlu1 %2708  ;;  %2840 = vadd.xlane.f32.xlu0 %v2839_v44  ;;  %7112 = vmatpush3.bf16.msra.mxu1 %v7109_v7  ;;  %v10002_v29 = vpack.c.bf16 %v7524_v23, %v7523_v60 }
 0x45e   :  { %7114 = vmatprep.subr.bf16.mxu1 %v7113_v58  ;;  %7911 = vrcp.f32 %v2709_v41 }
 0x45f   :  { %2831 = vadd.xlane.f32.xlu1 %v2830_v28  ;;  %v9995_v42 = vpop.xlane.xlu0 %2738 }
 0x460   :  { %v7900_v11 = vpop.eup %7899 }
 0x461   :  { %v9999_v40 = vpop.eup %7901  ;;  %v2733_v62 = vpop.xlane.xlu1 %2732  ;;  %2837 = vadd.xlane.f32.xlu0 %v2836_v24  ;;  %v2931_v8 = vmul.f32 %v7900_v11, %v9716_v36  ;;  %7116 = vmatpush3.bf16.msra.mxu1 %v7113_v58  ;;  %v11103_v58 = vld [vmem:[#allocation22_spill] sm:$0xff] }
 0x462   :  { %7118 = vmatprep.subr.bf16.mxu1 %v10002_v29  ;;  %v2845_v59 = vsel %vm2277_vm3, %v9999_v40, 0.0  ;;  %v10009_v7 = vpop.eup %7903  ;;  %v7529_v28 = vunpack.i.h.bf16 %v11103_v58  ;;  %v7528_v6 = vunpack.i.l.bf16 %v11103_v58 }
 0x463   :  { %v2763_v47 = vpop.xlane.xlu0 %2762  ;;  %6584 = vmatmul.mubr.msk.f32.gmra.mrb[60].mxu1 %vm2277_vm3, %v2931_v8  ;;  %v2842_v36 = vsel %vm2277_vm3, %v10009_v7, 0.0  ;;  %v10013_v14 = vpop.eup %7905 }
 0x464   :  { %v2824_v16 = vsel %vm2277_vm3, %v10013_v14, 0.0 }
 0x465   :  { %v2706_v51 = vpop.xlane.xlu1 %2705  ;;  %2846 = vadd.xlane.f32.xlu0 %v2845_v59  ;;  %v10021_v37 = vpop.eup %7907 }
 0x466   :  { %7913 = vrcp.f32 %v2706_v51  ;;  %v7910_v57 = vpop.eup %7909 }
 0x467   :  { %7915 = vpow2.f32 %v2660_v32  ;;  %v10017_v0 = vpop.xlane.xlu0 %2744  ;;  %v11104_v32 = vld [vmem:[#allocation14_spill] sm:$0xff] }
 0x468   :  { %7917 = vrcp.f32 %v9940_v48  ;;  %v7912_v44 = vpop.eup %7911  ;;  %v7533_v59 = vunpack.i.l.bf16 %v11104_v32 }
 0x469   :  { %v2730_v18 = vpop.xlane.xlu1 %2729  ;;  %2843 = vadd.xlane.f32.xlu0 %v2842_v36  ;;  %7919 = vrcp.f32 %v9951_v13  ;;  %v2848_v13 = vsel %vm2277_vm3, %v10021_v37, 0.0 }
 0x46a   :  { %7921 = vrcp.f32 %v9948_v21 }
 0x46b   :  { %7923 = vrcp.f32 %v2724_v54  ;;  %v2769_v48 = vpop.xlane.xlu0 %2768  ;;  %v2933_v54 = vmul.f32 %v7912_v44, %v9730_v3  ;;  %v11106_v44 = vld [vmem:[#allocation44_spill] sm:$0xff] }
 0x46c   :  { %7925 = vrcp.f32 %v9972_v17  ;;  %v2934_v17 = vmul.f32 %v7910_v57, %v9682_v53 }
 0x46d   :  { %v2736_v2 = vpop.xlane.xlu1 %2735  ;;  %2825 = vadd.xlane.f32.xlu0 %v2824_v16  ;;  %7927 = vrcp.f32 %v2763_v47  ;;  %v7534_v47 = vunpack.i.h.bf16 %v11104_v32  ;;  %v11105_v16 = vld [vmem:[#allocation23_spill] sm:$0xff] }
 0x46e   :  { %v7538_v57 = vunpack.i.l.bf16 %v11105_v16 }
 0x46f   :  { %v2751_v53 = vpop.xlane.xlu0 %2750 }
 0x470   :  { %v7914_v41 = vpop.eup %7913  ;;  %7601 = vrot.lane.b32.xlu1 %v11096_v33, %s8114_s2 }
 0x471   :  { %v10029_v61 = vpop.eup %7915  ;;  %v2760_v23 = vpop.xlane.xlu1 %2759  ;;  %2849 = vadd.xlane.f32.xlu0 %v2848_v13  ;;  %v2932_v21 = vmul.f32 %v7914_v41, %v9744_v31  ;;  %v2525_v41 = vsub.f32 %v11106_v44, %v9928_v38 }
 0x472   :  { %7929 = vrcp.f32 %v2760_v23  ;;  %v7918_v60 = vpop.eup %7917  ;;  %v2851_v9 = vsel %vm2277_vm3, %v10029_v61, 0.0  ;;  %v11107_v23 = vld [vmem:[#allocation26_spill] sm:$0xff] }
 0x473   :  { %7931 = vrcp.f32 %v2730_v18  ;;  %6586 = vmatprep.mubr.msk.f32.mxu1 %vm2277_vm3, %v2932_v21  ;;  %v7920_v33 = vpop.eup %7919  ;;  %v2935_v3 = vmul.f32 %v7918_v60, %v9673_v34  ;;  %v7579_v21 = vunpack.i.h.bf16 %v11107_v23 }
 0x474   :  { %6587 = vmatmul.mubr.msk.f32.gmra.mrb[62].mxu1 %vm2277_vm3, %v2933_v54  ;;  %7933 = vrcp.f32 %v2733_v62  ;;  %v7922_v11 = vpop.eup %7921  ;;  %v2936_v24 = vmul.f32 %v7920_v33, %v9706_v52  ;;  %v7121_v62 = vpack.c.bf16 %v7529_v28, %v7528_v6  ;;  %v11108_v33 = vld [vmem:[#allocation16_spill] sm:$0xff]  ;;  %v2644_v6 = vmul.f32 1.442695, %v2525_v41 }
 0x475   :  { %v2742_v31 = vpop.xlane.xlu1 %2741  ;;  %2852 = vadd.xlane.f32.xlu0 %v2851_v9  ;;  %6605 = vmatprep.mubr.msk.f32.mxu1 %vm2277_vm3, %v2934_v17  ;;  %7935 = vrcp.f32 %v9995_v42  ;;  %v7924_v8 = vpop.eup %7923  ;;  %v2937_v52 = vmul.f32 %v7922_v11, %v9699_v39  ;;  %v7578_v39 = vunpack.i.l.bf16 %v11107_v23  ;;  %v7544_v58 = vunpack.i.h.bf16 %v11108_v33 }
 0x476   :  { %7937 = vrcp.f32 %v2736_v2  ;;  %v7926_v42 = vpop.eup %7925  ;;  %v2938_v36 = vmul.f32 %v7924_v8, %v9712_v56  ;;  %v7539_v2 = vunpack.i.h.bf16 %v11105_v16  ;;  %v7543_v28 = vunpack.i.l.bf16 %v11108_v33 }
 0x477   :  { %7939 = vrcp.f32 %v2769_v48  ;;  %v7928_v51 = vpop.eup %7927  ;;  %v7125_v48 = vpack.c.bf16 %v7534_v47, %v7533_v59  ;;  %v2939_v38 = vmul.f32 %v7926_v42, %v9724_v22  ;;  %v11109_v22 = vld [vmem:[#allocation28_spill] sm:$0xff]  ;;  %v7169_v11 = vpack.c.bf16 %v7579_v21, %v7578_v39 }
 0x478   :  { %6606 = vmatmul.mubr.msk.f32.vlgmr.msra.gmra.mrb[64].mxu1 %vm2277_vm3, %v2935_v3  ;;  %7941 = vrcp.f32 %v2742_v31  ;;  %v2951_v60 = vmul.f32 %v7928_v51, %v9748_v26  ;;  %v7149_v32 = vpack.c.bf16 %v7544_v58, %v7543_v28 }
 0x479   :  { %7120 = vmatpush3.bf16.msra.mxu1 %v10002_v29  ;;  %v2766_v34 = vpop.xlane.xlu1 %2765  ;;  %6608 = vmatprep.mubr.msk.f32.mxu1 %vm2277_vm3, %v2936_v24  ;;  %v2775_v29 = vpop.xlane.xlu0 %2774 }
 0x47a   :  { %7943 = vrcp.f32 %v2766_v34  ;;  %7122 = vmatprep.subr.bf16.mxu1 %v7121_v62 }
 0x47b   :  { %7945 = vrcp.f32 %v10017_v0 }
 0x47c   :  { %v7930_v18 = vpop.eup %7929  ;;  %6609 = vmatmul.mubr.msk.f32.gmra.mrb[66].mxu1 %vm2277_vm3, %v2937_v52 }
 0x47d   :  { %v7932_v13 = vpop.eup %7931  ;;  %7124 = vmatpush3.bf16.msra.mxu1 %v7121_v62  ;;  %v2748_v56 = vpop.xlane.xlu1 %2747  ;;  %6611 = vmatprep.mubr.msk.f32.mxu1 %vm2277_vm3, %v2938_v36  ;;  %v2950_v54 = vmul.f32 %v7930_v18, %v9773_v63  ;;  %v7129_v63 = vpack.c.bf16 %v7539_v2, %v7538_v57  ;;  %v11111_v2 = vld [vmem:[#allocation18_spill] sm:$0xff] }
 0x47e   :  { %7947 = vrcp.f32 %v2748_v56  ;;  %7126 = vmatprep.subr.bf16.mxu1 %v7125_v48  ;;  %v7934_v17 = vpop.eup %7933  ;;  %v2757_v9 = vpop.xlane.xlu0 %2756  ;;  %v2940_v26 = vmul.f32 %v7932_v13, %v9754_v25  ;;  %v11110_v25 = vld [vmem:[#allocation25_spill] sm:$0xff]  ;;  %v7554_v57 = vunpack.i.h.bf16 %v11111_v2  ;;  %v7553_v44 = vunpack.i.l.bf16 %v11111_v2  ;;  %v11112_v13 = vld [vmem:[#allocation20_spill] sm:$0xff] }
 0x47f   :  { %6661 = vmatprep.mubr.msk.f32.mxu0 %vm2277_vm3, %v2950_v54  ;;  %v7936_v0 = vpop.eup %7935  ;;  %7949 = vrcp.f32 %v2751_v53  ;;  %v2941_v53 = vmul.f32 %v7934_v17, %v9734_v55  ;;  %v7549_v59 = vunpack.i.h.bf16 %v11110_v25  ;;  %v7548_v62 = vunpack.i.l.bf16 %v11110_v25  ;;  %v11113_v17 = vld [vmem:[#allocation24_spill] sm:$0xff]  ;;  %v11116_v25 = vld [vmem:[#allocation27_spill] sm:$0xff]  ;;  %v11119_v2 = vld [vmem:[#allocation17_spill] sm:$0xff] }
 0x480   :  { %6612 = vmatmul.mubr.msk.f32.gmra.mrb[68].mxu1 %vm2277_vm3, %v2939_v38  ;;  %6662 = vmatmul.mubr.msk.f32.vlgmr.msra.gmra.mrb[64].mxu0 %vm2277_vm3, %v2951_v60  ;;  %v7938_v31 = vpop.eup %7937  ;;  %7951 = vrcp.f32 %v2775_v29  ;;  %v2943_v55 = vmul.f32 %v7936_v0, %v9738_v1  ;;  %v7559_v23 = vunpack.i.h.bf16 %v11112_v13  ;;  %v7558_v21 = vunpack.i.l.bf16 %v11112_v13 }
 0x481   :  { %7128 = vmatpush3.bf16.msra.mxu1 %v7125_v48  ;;  %7168 = vmatpush3.bf16.msra.mxu0 %v11109_v22  ;;  %v2772_v3 = vpop.xlane.xlu1 %2771  ;;  %v7940_v24 = vpop.eup %7939  ;;  %v2942_v34 = vmul.f32 %v7938_v31, %v9763_v30  ;;  %v7153_v1 = vpack.c.bf16 %v7549_v59, %v7548_v62  ;;  %v7157_v39 = vpack.c.bf16 %v7554_v57, %v7553_v44  ;;  %v7574_v33 = vunpack.i.h.bf16 %v11113_v17  ;;  %v11115_v31 = vld [vmem:[#allocation47_spill] sm:$0xff] }
 0x482   :  { %7953 = vrcp.f32 %v2772_v3  ;;  %6614 = vmatprep.mubr.msk.f32.mxu1 %vm2277_vm3, %v2940_v26  ;;  %7130 = vmatprep.subr.bf16.mxu1 %v7129_v63  ;;  %v7942_v8 = vpop.eup %7941  ;;  %v2781_v51 = vpop.xlane.xlu0 %2780  ;;  %v2953_v36 = vmul.f32 %v7940_v24, %v9768_v35  ;;  %v7573_v58 = vunpack.i.l.bf16 %v11113_v17  ;;  %v11114_v26 = vld [vmem:[#allocation30_spill] sm:$0xff]  ;;  %v7584_v59 = vunpack.i.h.bf16 %v11116_v25 }
 0x483   :  { %7170 = vmatprep.subr.bf16.mxu0 %v7169_v11  ;;  %7955 = vpow2.f32 %v2644_v6  ;;  %v2944_v30 = vmul.f32 %v7942_v8, %v9783_v49  ;;  %v7583_v62 = vunpack.i.l.bf16 %v11116_v25 }
 0x484   :  { %v7944_v47 = vpop.eup %7943  ;;  %6615 = vmatmul.mubr.msk.f32.gmra.mrb[70].mxu1 %vm2277_vm3, %v2941_v53  ;;  %7957 = vrcp.f32 %v2757_v9  ;;  %v7181_v9 = vpack.c.bf16 %v7574_v33, %v7573_v58 }
 0x485   :  { %7132 = vmatpush3.bf16.msra.mxu1 %v7129_v63  ;;  %7172 = vmatpush3.bf16.msra.mxu0 %v7169_v11  ;;  %v2754_v42 = vpop.xlane.xlu1 %2753  ;;  %v2952_v52 = vmul.f32 %v7944_v47, %v9794_v43  ;;  %v7946_v18 = vpop.eup %7945 }
 0x486   :  { %7959 = vrcp.f32 %v2754_v42  ;;  %6633 = vmatprep.mubr.msk.f32.mxu1 %vm2277_vm3, %v2942_v34  ;;  %7150 = vmatprep.subr.bf16.mxu1 %v7149_v32  ;;  %v2945_v49 = vmul.f32 %v7946_v18, %v9758_v4 }
 0x487   :  { %6664 = vmatprep.mubr.msk.f32.mxu0 %vm2277_vm3, %v2952_v52  ;;  %7961 = vrcp.f32 %v2781_v51  ;;  %v11117_v52 = vld [vmem:[#allocation31_spill] sm:$0xff] }
 0x488   :  { %v7948_v16 = vpop.eup %7947  ;;  %6634 = vmatmul.mubr.msk.f32.vlgmr.msra.gmra.mrb[72].mxu1 %vm2277_vm3, %v2943_v55  ;;  %6665 = vmatmul.mubr.msk.f32.gmra.mrb[66].mxu0 %vm2277_vm3, %v2953_v36  ;;  %v11118_v51 = vld [vmem:[#allocation15_spill] sm:$0xff] }
 0x489   :  { %7152 = vmatpush3.bf16.msra.mxu1 %v7149_v32  ;;  %v2778_v43 = vpop.xlane.xlu1 %2777  ;;  %6636 = vmatprep.mubr.msk.f32.mxu1 %vm2277_vm3, %v2944_v30  ;;  %v7950_v35 = vpop.eup %7949  ;;  %v2946_v29 = vmul.f32 %v7948_v16, %v9796_v46  ;;  %v7185_v30 = vpack.c.bf16 %v7584_v59, %v7583_v62 }
 0x48a   :  { %7963 = vrcp.f32 %v2778_v43  ;;  %7154 = vmatprep.subr.bf16.mxu1 %v7153_v1  ;;  %v7952_v41 = vpop.eup %7951  ;;  %v2947_v4 = vmul.f32 %v7950_v35, %v9777_v50 }
 0x48b   :  { %v2955_v46 = vmul.f32 %v7952_v41, %v9787_v20 }
 0x48c   :  { %v7954_v48 = vpop.eup %7953  ;;  %6637 = vmatmul.mubr.msk.f32.gmra.mrb[74].mxu1 %vm2277_vm3, %v2945_v49  ;;  %v11120_v49 = vld [vmem:[#allocation29_spill] sm:$0xff] }
 0x48d   :  { %7156 = vmatpush3.bf16.msra.mxu1 %v7153_v1  ;;  %6639 = vmatprep.mubr.msk.f32.mxu1 %vm2277_vm3, %v2946_v29  ;;  %v2954_v56 = vmul.f32 %v7954_v48, %v9802_v19  ;;  %v10094_v54 = vpop.eup %7955  ;;  %v7161_v19 = vpack.c.bf16 %v7559_v23, %v7558_v21  ;;  %v11121_v29 = vld [vmem:[#allocation32_spill] sm:$0xff] }
 0x48e   :  { %7158 = vmatprep.subr.bf16.mxu1 %v7157_v39  ;;  %v7958_v60 = vpop.eup %7957  ;;  %v2827_v0 = vsel %vm2277_vm3, %v10094_v54, 0.0 }
 0x48f   :  { %6667 = vmatprep.mubr.msk.f32.mxu0 %vm2277_vm3, %v2954_v56  ;;  %v2949_v50 = vmul.f32 %v7958_v60, %v9800_v15 }
 0x490   :  { %v7960_v38 = vpop.eup %7959  ;;  %6640 = vmatmul.mubr.msk.f32.gmra.mrb[76].mxu1 %vm2277_vm3, %v2947_v4  ;;  %6668 = vmatmul.mubr.msk.f32.gmra.mrb[68].mxu0 %vm2277_vm3, %v2955_v46 }
 0x491   :  { %7160 = vmatpush3.bf16.msra.mxu1 %v7157_v39  ;;  %v2948_v28 = vmul.f32 %v7960_v38, %v9817_v12  ;;  %v7962_v20 = vpop.eup %7961 }
 0x492   :  { %7162 = vmatprep.subr.bf16.mxu1 %v7161_v19  ;;  %v2957_v12 = vmul.f32 %v7962_v20, %v11115_v31 }
 0x493   :  { %6642 = vmatprep.mubr.msk.f32.mxu1 %vm2277_vm3, %v2948_v28 }
 0x494   :  { %v7964_v6 = vpop.eup %7963  ;;  %2828 = vadd.xlane.f32.xlu1 %v2827_v0  ;;  %6643 = vmatmul.mubr.msk.f32.gmra.mrb[78].mxu1 %vm2277_vm3, %v2949_v50  ;;  %v11122_v50 = vld [vmem:[#allocation37_spill] sm:$0xff] }
 0x495   :  { %7164 = vmatpush3.bf16.msra.mxu1 %v7161_v19  ;;  %v2956_v63 = vmul.f32 %v7964_v6, %v11114_v26  ;;  %v11123_v6 = vld [vmem:[#allocation38_spill] sm:$0xff] }
 0x496   :  { %7182 = vmatprep.subr.bf16.mxu1 %v7181_v9 }
 0x497   :  { %v2787_v22 = vpop.xlane.xlu1 %2786  ;;  %6670 = vmatprep.mubr.msk.f32.mxu0 %vm2277_vm3, %v2956_v63 }
 0x498   :  { %6671 = vmatmul.mubr.msk.f32.gmra.mrb[70].mxu0 %vm2277_vm3, %v2957_v12  ;;  %7965 = vrcp.f32 %v2787_v22  ;;  %v11124_v22 = vld [vmem:[#allocation36_spill] sm:$0xff] }
 0x49b   :  { %v2784_v15 = vpop.xlane.xlu1 %2783  ;;  %v2811_v3 = vpop.xlane.xlu0 %2810 }
 0x49c   :  { %7967 = vrcp.f32 %v2784_v15 }
 0x49f   :  { %v2808_v11 = vpop.xlane.xlu1 %2807  ;;  %v2793_v24 = vpop.xlane.xlu0 %2792 }
 0x4a0   :  { %7969 = vrcp.f32 %v2808_v11  ;;  %v11125_v11 = vld [vmem:[#allocation40_spill] sm:$0xff] }
 0x4a1   :  { %7971 = vrcp.f32 %v2793_v24 }
 0x4a2   :  { %v7966_v32 = vpop.eup %7965 }
 0x4a3   :  { %v2817_v53 = vpop.xlane.xlu1 %2816  ;;  %v2790_v8 = vpop.xlane.xlu0 %2789  ;;  %v2959_v36 = vmul.f32 %v7966_v32, %v11118_v51  ;;  %v11129_v51 = vld [vmem:[#allocation35_spill] sm:$0xff] }
 0x4a4   :  { %7973 = vrcp.f32 %v2790_v8 }
 0x4a6   :  { %v7968_v47 = vpop.eup %7967 }
 0x4a7   :  { %v2799_v34 = vpop.xlane.xlu1 %2798  ;;  %v2814_v42 = vpop.xlane.xlu0 %2813  ;;  %v2958_v55 = vmul.f32 %v7968_v47, %v11117_v52  ;;  %v11127_v47 = vld [vmem:[#allocation34_spill] sm:$0xff] }
 0x4a8   :  { %7975 = vrcp.f32 %v2799_v34  ;;  %v11128_v34 = vld [vmem:[#allocation33_spill] sm:$0xff] }
 0x4a9   :  { %6689 = vmatprep.mubr.msk.f32.mxu1 %vm2277_vm3, %v2958_v55 }
 0x4aa   :  { %v7970_v18 = vpop.eup %7969  ;;  %6690 = vmatmul.mubr.msk.f32.vlgmr.msra.gmra.mrb[80].mxu1 %vm2277_vm3, %v2959_v36 }
 0x4ab   :  { %7184 = vmatpush3.bf16.msra.mxu1 %v7181_v9  ;;  %v2823_v16 = vpop.xlane.xlu1 %2822  ;;  %v2966_v57 = vmul.f32 %v7970_v18, %v11119_v2  ;;  %v2820_v44 = vpop.xlane.xlu0 %2819 }
 0x4ac   :  { %7186 = vmatprep.subr.bf16.mxu1 %v7185_v30  ;;  %v7972_v1 = vpop.eup %7971 }
 0x4ad   :  { %6717 = vmatprep.mubr.msk.f32.mxu0 %vm2277_vm3, %v2966_v57  ;;  %v2961_v48 = vmul.f32 %v7972_v1, %v11121_v29 }
 0x4ae   :  { %v7974_v43 = vpop.eup %7973 }
 0x4af   :  { %7188 = vmatpush3.bf16.msra.mxu1 %v7185_v30  ;;  %v2796_v35 = vpop.xlane.xlu1 %2795  ;;  %v2960_v41 = vmul.f32 %v7974_v43, %v11120_v49  ;;  %v11130_v30 = vld [vmem:[#allocation39_spill] sm:$0xff] }
 0x4b0   :  { %7977 = vrcp.f32 %v2796_v35 }
 0x4b1   :  { %v2805_v13 = vpop.xlane.xlu0 %2804  ;;  %6692 = vmatprep.mubr.msk.f32.mxu1 %vm2277_vm3, %v2960_v41 }
 0x4b2   :  { %6693 = vmatmul.mubr.msk.f32.gmra.mrb[82].mxu1 %vm2277_vm3, %v2961_v48  ;;  %7979 = vrcp.f32 %v2805_v13  ;;  %v7976_v60 = vpop.eup %7975 }
 0x4b3   :  { %v7592_v23 = vpop.permute.xlu1 %7591  ;;  %v2963_v9 = vmul.f32 %v7976_v60, %v11123_v6 }
 0x4b4   :  { %v7594_v21 = vunpack.i.h.bf16 %v7592_v23  ;;  %v7593_v39 = vunpack.i.l.bf16 %v7592_v23 }
 0x4b5   :  { %v2802_v56 = vpop.xlane.xlu0 %2801 }
 0x4b6   :  { %v7189_v4 = vpack.c.bf16 %v7594_v21, %v7593_v39  ;;  %7981 = vrcp.f32 %v2802_v56 }
 0x4b7   :  { %7983 = vrcp.f32 %v2811_v3  ;;  %v7597_v46 = vpop.permute.xlu1 %7596 }
 0x4b8   :  { %7985 = vrcp.f32 %v2814_v42  ;;  %7190 = vmatprep.subr.bf16.mxu1 %v7189_v4  ;;  %v7599_v33 = vunpack.i.h.bf16 %v7597_v46  ;;  %v7598_v58 = vunpack.i.l.bf16 %v7597_v46 }
 0x4b9   :  { %7192 = vmatpush3.bf16.msra.mxu1 %v7189_v4  ;;  %v7587_v38 = vpop.permute.xlu0 %7586  ;;  %7987 = vrcp.f32 %v2817_v53  ;;  %v11126_v53 = vld [vmem:[#allocation11_spill] sm:$0xff] }
 0x4ba   :  { %v7978_v17 = vpop.eup %7977  ;;  %v7589_v19 = vunpack.i.h.bf16 %v7587_v38  ;;  %v7588_v28 = vunpack.i.l.bf16 %v7587_v38  ;;  %7989 = vrcp.f32 %v2820_v44  ;;  %v7177_v26 = vpack.c.bf16 %v7599_v33, %v7598_v58 }
 0x4bb   :  { %v2962_v20 = vmul.f32 %v7978_v17, %v11122_v50  ;;  %7991 = vrcp.f32 %v2823_v16 }
 0x4bc   :  { %v7173_v0 = vpack.c.bf16 %v7589_v19, %v7588_v28  ;;  %v7980_v63 = vpop.eup %7979 }
 0x4bd   :  { %6695 = vmatprep.mubr.msk.f32.mxu1 %vm2277_vm3, %v2962_v20  ;;  %v2965_v24 = vmul.f32 %v7980_v63, %v11125_v11  ;;  %v4260_v11 = vld [vmem:[%s10935_s4 + $0x28] sm:$0xff] }
 0x4be   :  { %6696 = vmatmul.mubr.msk.f32.gmra.mrb[84].mxu1 %vm2277_vm3, %v2963_v9  ;;  %7174 = vmatprep.subr.bf16.mxu0 %v7173_v0 }
 0x4bf   :  { %7176 = vmatpush3.bf16.msra.mxu0 %v7173_v0 }
 0x4c0   :  { %v7982_v31 = vpop.eup %7981  ;;  %7178 = vmatprep.subr.bf16.mxu0 %v7177_v26 }
 0x4c1   :  { %v7984_v12 = vpop.eup %7983  ;;  %v2964_v15 = vmul.f32 %v7982_v31, %v11124_v22 }
 0x4c2   :  { %v7986_v3 = vpop.eup %7985  ;;  %v2967_v8 = vmul.f32 %v7984_v12, %v11126_v53  ;;  %v4256_v12 = vld [vmem:[%s10935_s4 + $0x8] sm:$0xff] }
 0x4c3   :  { %6698 = vmatprep.mubr.msk.f32.mxu1 %vm2277_vm3, %v2964_v15  ;;  %7180 = vmatpush3.bf16.msra.mxu0 %v7177_v26  ;;  %v7988_v32 = vpop.eup %7987  ;;  %v2968_v25 = vmul.f32 %v7986_v3, %v11127_v47  ;;  %v4259_v3 = vld [vmem:[%s10935_s4 + $0x20] sm:$0xff] }
 0x4c4   :  { %6699 = vmatmul.mubr.msk.f32.gmra.mrb[86].mxu1 %vm2277_vm3, %v2965_v24  ;;  %v7990_v59 = vpop.eup %7989  ;;  %v2969_v42 = vmul.f32 %v7988_v32, %v11128_v34  ;;  %v7205_v24 = vpack.c.bf16 %v4260_v11, %v4259_v3 }
 0x4c5   :  { %v7992_v52 = vpop.eup %7991  ;;  %v2970_v36 = vmul.f32 %v7990_v59, %v11129_v51 }
 0x4c6   :  { %6718 = vmatmul.mubr.msk.f32.vlgmr.msra.gmra.mrb[72].mxu0 %vm2277_vm3, %v2967_v8  ;;  %v2971_v16 = vmul.f32 %v7992_v52, %v11130_v30  ;;  %v4261_v30 = vld [vmem:[%s10935_s4 + $0x30] sm:$0xff] }
 0x4c7   :  { %6720 = vmatprep.mubr.msk.f32.mxu0 %vm2277_vm3, %v2968_v25 }
 0x4c8   :  { %v10137_v62 = vpop.f32.mrb[48].mxu1 }
 0x4c9   :  { %v10140_v55 = vpop.f32.mrb[49].mxu1 }
 0x4ca   :  { %6721 = vmatmul.mubr.msk.f32.gmra.mrb[74].mxu0 %vm2277_vm3, %v2969_v42 }
 0x4cb   :  { %6723 = vmatprep.mubr.msk.f32.mxu0 %vm2277_vm3, %v2970_v36 }
 0x4cc   :  { %v10145_v18 = vpop.f32.mrb[50].mxu1 }
 0x4cd   :  { %v10148_v2 = vpop.f32.mrb[51].mxu1 }
 0x4ce   :  { %6724 = vmatmul.mubr.msk.f32.gmra.mrb[76].mxu0 %vm2277_vm3, %v2971_v16 }
 0x4d3   :  { %v10151_v57 = vpop.f32.mrb[52].mxu1 }
 0x4d4   :  { %v10153_v44 = vpop.f32.mrb[53].mxu1 }
 0x4d7   :  { %v10155_v1 = vpop.f32.mrb[54].mxu1 }
 0x4d8   :  { %v10157_v43 = vpop.f32.mrb[55].mxu1 }
 0x4e8   :  { %v2835_v35 = vpop.xlane.xlu1 %2834 }
 0x4e9   :  { %7993 = vrcp.f32 %v2835_v35  ;;  %v4263_v35 = vld [vmem:[%s10935_s4 + $0x40] sm:$0xff] }
 0x4ea   :  { %v2841_v49 = vpop.xlane.xlu0 %2840 }
 0x4ec   :  { %v2832_v41 = vpop.xlane.xlu1 %2831 }
 0x4ed   :  { %7995 = vrcp.f32 %v2832_v41 }
 0x4ee   :  { %v2838_v29 = vpop.xlane.xlu0 %2837 }
 0x4ef   :  { %7997 = vrcp.f32 %v2838_v29 }
 0x4f0   :  { %7999 = vrcp.f32 %v2841_v49  ;;  %v7602_v48 = vpop.permute.xlu1 %7601  ;;  %v4264_v49 = vld [vmem:[%s10935_s4 + $0x48] sm:$0xff] }
 0x4f1   :  { %v7604_v13 = vunpack.i.h.bf16 %v7602_v48  ;;  %v7603_v23 = vunpack.i.l.bf16 %v7602_v48  ;;  %v7213_v29 = vpack.c.bf16 %v4264_v49, %v4263_v35 }
 0x4f2   :  { %v2847_v21 = vpop.xlane.xlu0 %2846 }
 0x4f3   :  { %v7193_v39 = vpack.c.bf16 %v7604_v13, %v7603_v23  ;;  %v7994_v56 = vpop.eup %7993  ;;  %8001 = vrcp.f32 %v2847_v21  ;;  %v4265_v23 = vld [vmem:[%s10935_s4 + $0x50] sm:$0xff]  ;;  %v4266_v21 = vld [vmem:[%s10935_s4 + $0x58] sm:$0xff] }
 0x4f4   :  { %v2975_v17 = vmul.f32 %v7994_v56, %v9964_v27  ;;  %v7217_v56 = vpack.c.bf16 %v4266_v21, %v4265_v23 }
 0x4f5   :  { %7194 = vmatprep.subr.bf16.mxu1 %v7193_v39 }
 0x4f6   :  { %7196 = vmatpush3.bf16.msra.mxu1 %v7193_v39  ;;  %v2844_v4 = vpop.xlane.xlu0 %2843 }
 0x4f7   :  { %v7996_v46 = vpop.eup %7995  ;;  %8003 = vrcp.f32 %v2844_v4 }
 0x4f8   :  { %v2974_v60 = vmul.f32 %v7996_v46, %v9980_v5 }
 0x4f9   :  { %v7998_v38 = vpop.eup %7997 }
 0x4fa   :  { %v8000_v33 = vpop.eup %7999  ;;  %6745 = vmatprep.mubr.msk.f32.mxu1 %vm2277_vm3, %v2974_v60  ;;  %v2826_v58 = vpop.xlane.xlu0 %2825  ;;  %v2976_v19 = vmul.f32 %v7998_v38, %v9987_v10  ;;  %v4267_v38 = vld [vmem:[%s10935_s4 + $0x60] sm:$0xff] }
 0x4fb   :  { %6746 = vmatmul.mubr.msk.f32.vlgmr.msra.gmra.mrb[88].mxu1 %vm2277_vm3, %v2975_v17  ;;  %8005 = vrcp.f32 %v2826_v58  ;;  %v2977_v28 = vmul.f32 %v8000_v33, %v9970_v45  ;;  %v4268_v17 = vld [vmem:[%s10935_s4 + $0x68] sm:$0xff] }
 0x4fc   :  { %6748 = vmatprep.mubr.msk.f32.mxu1 %vm2277_vm3, %v2976_v19  ;;  %v7221_v58 = vpack.c.bf16 %v4268_v17, %v4267_v38 }
 0x4fd   :  { %v8002_v5 = vpop.eup %8001 }
 0x4fe   :  { %v2850_v50 = vpop.xlane.xlu0 %2849  ;;  %v2979_v6 = vmul.f32 %v8002_v5, %v9999_v40  ;;  %v11131_v40 = vmov 0.0   ;;  %v4269_v5 = vld [vmem:[%s10935_s4 + $0x70] sm:$0xff] }
 0x4ff   :  { %6749 = vmatmul.mubr.msk.f32.gmra.mrb[90].mxu1 %vm2277_vm3, %v2977_v28  ;;  %8007 = vrcp.f32 %v2850_v50 }
 0x501   :  { %v8004_v20 = vpop.eup %8003 }
 0x502   :  { %v2853_v27 = vpop.xlane.xlu0 %2852  ;;  %v2978_v0 = vmul.f32 %v8004_v20, %v10009_v7  ;;  %v4270_v20 = vld [vmem:[%s10935_s4 + $0x78] sm:$0xff] }
 0x503   :  { %8009 = vrcp.f32 %v2853_v27 }
 0x504   :  { %6751 = vmatprep.mubr.msk.f32.mxu1 %vm2277_vm3, %v2978_v0 }
 0x505   :  { %v8006_v10 = vpop.eup %8005  ;;  %6752 = vmatmul.mubr.msk.f32.gmra.mrb[92].mxu1 %vm2277_vm3, %v2979_v6  ;;  %v7225_v6 = vpack.c.bf16 %v4270_v20, %v4269_v5 }
 0x506   :  { %v2972_v9 = vmul.f32 %v8006_v10, %v10013_v14  ;;  %v4255_v14 = vld [vmem:[%s10935_s4] sm:$0xff] }
 0x507   :  { %v7197_v22 = vpack.c.bf16 %v4256_v12, %v4255_v14 }
 0x508   :  { %6726 = vmatprep.mubr.msk.f32.mxu0 %vm2277_vm3, %v2972_v9 }
 0x509   :  { %v8008_v45 = vpop.eup %8007  ;;  %7198 = vmatprep.subr.bf16.mxu0 %v7197_v22 }
 0x50a   :  { %v2980_v26 = vmul.f32 %v8008_v45, %v10021_v37  ;;  %v4257_v37 = vld [vmem:[%s10935_s4 + $0x10] sm:$0xff]  ;;  %7200 = vmatpush3.bf16.msra.mxu0 %v7197_v22 }
 0x50c   :  { %6754 = vmatprep.mubr.msk.f32.mxu1 %vm2277_vm3, %v2980_v26 }
 0x50d   :  { %v8010_v63 = vpop.eup %8009 }
 0x50e   :  { %v2981_v7 = vmul.f32 %v8010_v63, %v10029_v61  ;;  %v4258_v61 = vld [vmem:[%s10935_s4 + $0x18] sm:$0xff] }
 0x50f   :  { %v7201_v15 = vpack.c.bf16 %v4258_v61, %v4257_v37 }
 0x510   :  { %6755 = vmatmul.mubr.msk.f32.gmra.mrb[94].mxu1 %vm2277_vm3, %v2981_v7 }
 0x511   :  { %4843 = vmatprep.mubr.f32.mxu1 %v11131_v40  ;;  %7202 = vmatprep.subr.bf16.mxu0 %v7201_v15 }
 0x512   :  { %7204 = vmatpush3.bf16.msra.mxu0 %v7201_v15 }
 0x513   :  { %7206 = vmatprep.subr.bf16.mxu0 %v7205_v24 }
 0x516   :  { %7208 = vmatpush3.bf16.msra.mxu0 %v7205_v24 }
 0x521   :  { %v2829_v31 = vpop.xlane.xlu1 %2828 }
 0x522   :  { %8011 = vrcp.f32 %v2829_v31 }
 0x527   :  { %v6579_v53 = vpop.f32.mrb[56].mxu1 }
 0x528   :  { %v3201_v8 = vpop.f32.mrb[57].mxu1 }
 0x529   :  { %v7605_v32 = vpack.i.bf16 %v6579_v53, %v3201_v8 }
 0x52b   :  { %7606 = vrot.lane.b32.xlu0 %v7605_v32, %s8114_s2  ;;  %v6582_v25 = vpop.f32.mrb[58].mxu1 }
 0x52c   :  { %v8012_v47 = vpop.eup %8011  ;;  %v3211_v34 = vpop.f32.mrb[59].mxu1 }
 0x52d   :  { %v2973_v59 = vmul.f32 %v8012_v47, %v10094_v54  ;;  %v7620_v42 = vpack.i.bf16 %v6582_v25, %v3211_v34  ;;  %v4262_v54 = vld [vmem:[%s10935_s4 + $0x38] sm:$0xff] }
 0x52e   :  { %v7209_v16 = vpack.c.bf16 %v4262_v54, %v4261_v30 }
 0x52f   :  { %6727 = vmatmul.mubr.msk.f32.gmra.mrb[78].mxu0 %vm2277_vm3, %v2973_v59 }
 0x530   :  { %7210 = vmatprep.subr.bf16.mxu0 %v7209_v16 }
 0x531   :  { %7212 = vmatpush3.bf16.msra.mxu0 %v7209_v16 }
 0x532   :  { %7214 = vmatprep.subr.bf16.mxu0 %v7213_v29 }
 0x535   :  { %7216 = vmatpush3.bf16.msra.mxu0 %v7213_v29 }
 0x536   :  { %v10199_v52 = vpop.f32.mrb[60].mxu1  ;;  %7218 = vmatprep.subr.bf16.mxu0 %v7217_v56 }
 0x537   :  { %v10201_v51 = vpop.f32.mrb[61].mxu1 }
 0x538   :  { %v7635_v36 = vpack.i.bf16 %v10199_v52, %v10201_v51 }
 0x539   :  { %7220 = vmatpush3.bf16.msra.mxu0 %v7217_v56 }
 0x53a   :  { %7222 = vmatprep.subr.bf16.mxu0 %v7221_v58 }
 0x53d   :  { %7224 = vmatpush3.bf16.msra.mxu0 %v7221_v58 }
 0x53e   :  { %7226 = vmatprep.subr.bf16.mxu0 %v7225_v6 }
 0x541   :  { %7228 = vmatpush3.bf16.msra.mxu0 %v7225_v6 }
 0x547   :  { %v6588_v41 = vpop.f32.mrb[62].mxu1 }
 0x548   :  { %v3231_v48 = vpop.f32.mrb[63].mxu1 }
 0x549   :  { %v7650_v13 = vpack.i.bf16 %v6588_v41, %v3231_v48 }
 0x54b   :  { %v6607_v39 = vpop.f32.mrb[64].mxu1 }
 0x54c   :  { %v3330_v4 = vpop.f32.mrb[65].mxu1 }
 0x54d   :  { %v7610_v46 = vpack.i.bf16 %v6607_v39, %v3330_v4 }
 0x54f   :  { %7611 = vrot.lane.b32.xlu0 %v7610_v46, %s8113_s1  ;;  %v6610_v60 = vpop.f32.mrb[66].mxu1 }
 0x550   :  { %v3340_v33 = vpop.f32.mrb[67].mxu1 }
 0x551   :  { %v7625_v19 = vpack.i.bf16 %v6610_v60, %v3340_v33 }
 0x553   :  { %7621 = vrot.lane.b32.xlu0 %v7620_v42, %s8114_s2  ;;  %v6613_v28 = vpop.f32.mrb[68].mxu1  ;;  %v10231_v50 = vpop.f32.mrb[64].mxu0 }
 0x554   :  { %v3350_v27 = vpop.f32.mrb[69].mxu1  ;;  %v10239_v0 = vpop.f32.mrb[65].mxu0 }
 0x555   :  { %v7640_v10 = vpack.i.bf16 %v6613_v28, %v3350_v27 }
 0x557   :  { %7626 = vrot.lane.b32.xlu0 %v7625_v19, %s8113_s1  ;;  %v6616_v9 = vpop.f32.mrb[70].mxu1 }
 0x558   :  { %v3360_v45 = vpop.f32.mrb[71].mxu1 }
 0x559   :  { %v7655_v26 = vpack.i.bf16 %v6616_v9, %v3360_v45 }
 0x55b   :  { %v6635_v63 = vpop.f32.mrb[72].mxu1  ;;  %v10242_v7 = vpop.f32.mrb[66].mxu0 }
 0x55c   :  { %v3459_v31 = vpop.f32.mrb[73].mxu1  ;;  %v10244_v14 = vpop.f32.mrb[67].mxu0 }
 0x55d   :  { %v7615_v12 = vpack.i.bf16 %v6635_v63, %v3459_v31 }
 0x55f   :  { %7616 = vrot.lane.b32.xlu1 %v7615_v12, %s8115_s28  ;;  %v6638_v37 = vpop.f32.mrb[74].mxu1 }
 0x560   :  { %v3469_v22 = vpop.f32.mrb[75].mxu1 }
 0x561   :  { %v7630_v61 = vpack.i.bf16 %v6638_v37, %v3469_v22 }
 0x563   :  { %7641 = vrot.lane.b32.xlu1 %v7640_v10, %s8113_s1  ;;  %7631 = vrot.lane.b32.xlu0 %v7630_v61, %s8115_s28  ;;  %v6641_v15 = vpop.f32.mrb[76].mxu1  ;;  %v10249_v3 = vpop.f32.mrb[68].mxu0 }
 0x564   :  { %v3479_v11 = vpop.f32.mrb[77].mxu1  ;;  %v10251_v24 = vpop.f32.mrb[69].mxu0 }
 0x565   :  { %v7645_v53 = vpack.i.bf16 %v6641_v15, %v3479_v11 }
 0x567   :  { %7651 = vrot.lane.b32.xlu1 %v7650_v13, %s8114_s2  ;;  %7636 = vrot.lane.b32.xlu0 %v7635_v36, %s8114_s2  ;;  %v6644_v8 = vpop.f32.mrb[78].mxu1 }
 0x568   :  { %v3489_v32 = vpop.f32.mrb[79].mxu1 }
 0x569   :  { %v7660_v47 = vpack.i.bf16 %v6644_v8, %v3489_v32 }
 0x56b   :  { %7646 = vrot.lane.b32.xlu0 %v7645_v53, %s8115_s28  ;;  %7661 = vrot.lane.b32.xlu1 %v7660_v47, %s8115_s28  ;;  %v10257_v25 = vpop.f32.mrb[70].mxu0 }
 0x56c   :  { %v10259_v59 = vpop.f32.mrb[71].mxu0 }
 0x56f   :  { %7656 = vrot.lane.b32.xlu0 %v7655_v26, %s8113_s1 }
 0x57d   :  { %v6691_v34 = vpop.f32.mrb[80].mxu1 }
 0x57e   :  { %v3717_v42 = vpop.f32.mrb[81].mxu1 }
 0x57f   :  { %v7665_v52 = vpack.i.bf16 %v6691_v34, %v3717_v42 }
 0x581   :  { %7666 = vrot.lane.b32.xlu0 %v7665_v52, %s8114_s2 }
 0x585   :  { %v6694_v51 = vpop.f32.mrb[82].mxu1 }
 0x586   :  { %v3727_v36 = vpop.f32.mrb[83].mxu1 }
 0x587   :  { %v7680_v30 = vpack.i.bf16 %v6694_v51, %v3727_v36 }
 0x591   :  { %v10263_v54 = vpop.f32.mrb[84].mxu1 }
 0x592   :  { %v3737_v16 = vpop.f32.mrb[85].mxu1 }
 0x593   :  { %v7695_v35 = vpack.i.bf16 %v10263_v54, %v3737_v16 }
 0x597   :  { %v10266_v49 = vpop.f32.mrb[86].mxu1 }
 0x598   :  { %v10268_v41 = vpop.f32.mrb[87].mxu1 }
 0x599   :  { %v7710_v29 = vpack.i.bf16 %v10266_v49, %v10268_v41  ;;  %v6719_v48 = vpop.f32.mrb[72].mxu0 }
 0x59a   :  { %v3846_v13 = vpop.f32.mrb[73].mxu0 }
 0x59b   :  { %v7670_v23 = vpack.i.bf16 %v6719_v48, %v3846_v13 }
 0x59d   :  { %7671 = vrot.lane.b32.xlu1 %v7670_v23, %s8113_s1  ;;  %v6722_v21 = vpop.f32.mrb[74].mxu0  ;;  %v7607_v38 = vpop.permute.xlu0 %7606 }
 0x59e   :  { %v3856_v39 = vpop.f32.mrb[75].mxu0  ;;  %v7609_v58 = vunpack.i.h.bf16 %v7607_v38  ;;  %v7608_v19 = vunpack.i.l.bf16 %v7607_v38 }
 0x59f   :  { %v7685_v56 = vpack.i.bf16 %v6722_v21, %v3856_v39 }
 0x5a0   :  { %v4207_v9 = vsel %vm1100_vm0, %v10137_v62, %v7609_v58  ;;  %v4206_v26 = vsel %vm1100_vm0, %v10140_v55, %v7608_v19 }
 0x5a1   :  { %7681 = vrot.lane.b32.xlu1 %v7680_v30, %s8114_s2  ;;  %v6725_v4 = vpop.f32.mrb[76].mxu0 }
 0x5a2   :  { %v3866_v46 = vpop.f32.mrb[77].mxu0 }
 0x5a3   :  { %v7700_v60 = vpack.i.bf16 %v6725_v4, %v3866_v46 }
 0x5c1   :  { %v7612_v17 = vpop.permute.xlu0 %7611 }
 0x5c2   :  { %v7614_v5 = vunpack.i.h.bf16 %v7612_v17  ;;  %v7613_v20 = vunpack.i.l.bf16 %v7612_v17 }
 0x5c4   :  { %v4223_v61 = vsel %vm2277_vm3, %v4207_v9, %v7614_v5  ;;  %v4222_v8 = vsel %vm2277_vm3, %v4206_v26, %v7613_v20 }
 0x5c5   :  { %v7622_v33 = vpop.permute.xlu0 %7621 }
 0x5c6   :  { %v7624_v63 = vunpack.i.h.bf16 %v7622_v33  ;;  %v7623_v31 = vunpack.i.l.bf16 %v7622_v33 }
 0x5c8   :  { %v4208_v51 = vsel %vm1100_vm0, %v10148_v2, %v7623_v31  ;;  %v4209_v36 = vsel %vm1100_vm0, %v10145_v18, %v7624_v63 }
 0x5c9   :  { %v7627_v6 = vpop.permute.xlu0 %7626 }
 0x5ca   :  { %v7629_v15 = vunpack.i.h.bf16 %v7627_v6  ;;  %v7628_v11 = vunpack.i.l.bf16 %v7627_v6 }
 0x5cc   :  { %v4224_v30 = vsel %vm2277_vm3, %v4208_v51, %v7628_v11  ;;  %v4225_v54 = vsel %vm2277_vm3, %v4209_v36, %v7629_v15 }
 0x5ce   :  { %v6747_v28 = vpop.f32.mrb[88].mxu1 }
 0x5cf   :  { %v3975_v27 = vpop.f32.mrb[89].mxu1 }
 0x5d0   :  { %v7675_v10 = vpack.i.bf16 %v6747_v28, %v3975_v27 }
 0x5d1   :  { %v7617_v45 = vpop.permute.xlu1 %7616 }
 0x5d2   :  { %7676 = vrot.lane.b32.xlu0 %v7675_v10, %s8115_s28  ;;  %v6750_v12 = vpop.f32.mrb[90].mxu1  ;;  %v7619_v37 = vunpack.i.h.bf16 %v7617_v45  ;;  %v7618_v22 = vunpack.i.l.bf16 %v7617_v45 }
 0x5d3   :  { %v3985_v53 = vpop.f32.mrb[91].mxu1 }
 0x5d4   :  { %v7690_v62 = vpack.i.bf16 %v6750_v12, %v3985_v53  ;;  %v4239_v32 = vsel %vm4238_vm11, %v4222_v8, %v7618_v22  ;;  %v4240_v55 = vsel %vm4238_vm11, %v4223_v61, %v7619_v37 }
 0x5d5   :  { %v7642_v47 = vpop.permute.xlu1 %7641  ;;  %v7632_v34 = vpop.permute.xlu0 %7631  ;;  %6789 = vmatprep.mubr.f32.mxu0 %v4239_v32 }
 0x5d6   :  { %7691 = vrot.lane.b32.xlu1 %v7690_v62, %s8115_s28  ;;  %7686 = vrot.lane.b32.xlu0 %v7685_v56, %s8113_s1  ;;  %v7634_v42 = vunpack.i.h.bf16 %v7632_v34  ;;  %v7633_v52 = vunpack.i.l.bf16 %v7632_v34  ;;  %v7644_v38 = vunpack.i.h.bf16 %v7642_v47  ;;  %v7643_v17 = vunpack.i.l.bf16 %v7642_v47 }
 0x5d7   :  { %6790 = vmatmul.mubr.f32.vlgmr.msra.gmra.mrb[80].mxu0 %v4240_v55 }
 0x5d8   :  { %v6753_v16 = vpop.f32.mrb[92].mxu1  ;;  %v4241_v48 = vsel %vm4238_vm11, %v4224_v30, %v7633_v52  ;;  %v4242_v13 = vsel %vm4238_vm11, %v4225_v54, %v7634_v42 }
 0x5d9   :  { %v3995_v23 = vpop.f32.mrb[93].mxu1  ;;  %6792 = vmatprep.mubr.f32.mxu0 %v4241_v48  ;;  %v7637_v21 = vpop.permute.xlu0 %7636 }
 0x5da   :  { %7696 = vrot.lane.b32.xlu0 %v7695_v35, %s8114_s2  ;;  %7701 = vrot.lane.b32.xlu1 %v7700_v60, %s8113_s1  ;;  %v7705_v2 = vpack.i.bf16 %v6753_v16, %v3995_v23  ;;  %v7652_v39 = vpop.permute.xlu1 %7651  ;;  %v7639_v18 = vunpack.i.h.bf16 %v7637_v21  ;;  %v7638_v56 = vunpack.i.l.bf16 %v7637_v21 }
 0x5db   :  { %6793 = vmatmul.mubr.f32.gmra.mrb[82].mxu0 %v4242_v13  ;;  %v7654_v58 = vunpack.i.h.bf16 %v7652_v39  ;;  %v7653_v19 = vunpack.i.l.bf16 %v7652_v39 }
 0x5dc   :  { %v4210_v4 = vsel %vm1100_vm0, %v10153_v44, %v7638_v56  ;;  %v4211_v46 = vsel %vm1100_vm0, %v10151_v57, %v7639_v18 }
 0x5dd   :  { %v7647_v35 = vpop.permute.xlu0 %7646  ;;  %v4226_v28 = vsel %vm2277_vm3, %v4210_v4, %v7643_v17  ;;  %v4227_v44 = vsel %vm2277_vm3, %v4211_v46, %v7644_v38  ;;  %v4212_v45 = vsel %vm1100_vm0, %v10157_v43, %v7653_v19  ;;  %v4213_v26 = vsel %vm1100_vm0, %v10155_v1, %v7654_v58 }
 0x5de   :  { %7706 = vrot.lane.b32.xlu0 %v7705_v2, %s8115_s28  ;;  %7711 = vrot.lane.b32.xlu1 %v7710_v29, %s8114_s2  ;;  %v7649_v60 = vunpack.i.h.bf16 %v7647_v35  ;;  %v7648_v33 = vunpack.i.l.bf16 %v7647_v35  ;;  %v7662_v5 = vpop.permute.xlu1 %7661 }
 0x5df   :  { %v7664_v41 = vunpack.i.h.bf16 %v7662_v5  ;;  %v7663_v29 = vunpack.i.l.bf16 %v7662_v5 }
 0x5e0   :  { %v4243_v57 = vsel %vm4238_vm11, %v4226_v28, %v7648_v33  ;;  %v4244_v20 = vsel %vm4238_vm11, %v4227_v44, %v7649_v60 }
 0x5e1   :  { %v7657_v27 = vpop.permute.xlu0 %7656  ;;  %6795 = vmatprep.mubr.f32.mxu0 %v4243_v57 }
 0x5e2   :  { %v7659_v6 = vunpack.i.h.bf16 %v7657_v27  ;;  %v7658_v10 = vunpack.i.l.bf16 %v7657_v27  ;;  %6796 = vmatmul.mubr.f32.gmra.mrb[84].mxu0 %v4244_v20 }
 0x5e3   :  { %v6756_v49 = vpop.f32.mrb[94].mxu1 }
 0x5e4   :  { %v4005_v9 = vpop.f32.mrb[95].mxu1  ;;  %v4228_v31 = vsel %vm2277_vm3, %v4212_v45, %v7658_v10  ;;  %v4229_v12 = vsel %vm2277_vm3, %v4213_v26, %v7659_v6 }
 0x5e5   :  { %v7720_v63 = vpack.i.bf16 %v6756_v49, %v4005_v9  ;;  %v4245_v37 = vsel %vm4238_vm11, %v4228_v31, %v7663_v29  ;;  %v4246_v22 = vsel %vm4238_vm11, %v4229_v12, %v7664_v41 }
 0x5e6   :  { %6798 = vmatprep.mubr.f32.mxu0 %v4245_v37 }
 0x5e7   :  { %7721 = vrot.lane.b32.xlu1 %v7720_v63, %s8115_s28  ;;  %6799 = vmatmul.mubr.f32.gmra.mrb[86].mxu0 %v4246_v22 }
 0x5f3   :  { %v7667_v1 = vpop.permute.xlu0 %7666 }
 0x5f4   :  { %v7669_v53 = vunpack.i.h.bf16 %v7667_v1  ;;  %v7668_v8 = vunpack.i.l.bf16 %v7667_v1 }
 0x5f6   :  { %v4214_v52 = vsel %vm1100_vm0, %v10239_v0, %v7668_v8  ;;  %v4215_v51 = vsel %vm1100_vm0, %v10231_v50, %v7669_v53  ;;  %v8045_v53 = vld [vmem:[%s10931_s0] sm:$0xff] }
 0x602   :  { %v6728_v61 = vpop.f32.mrb[78].mxu0 }
 0x603   :  { %v3876_v15 = vpop.f32.mrb[79].mxu0 }
 0x604   :  { %v7715_v11 = vpack.i.bf16 %v6728_v61, %v3876_v15 }
 0x606   :  { %7716 = vrot.lane.b32.xlu0 %v7715_v11, %s8113_s1  ;;  %v10354_v11 = vld [vmem:[%s10936_s5] ss:$0 sm:$0xff] }
 0x60f   :  { %v7672_v43 = vpop.permute.xlu1 %7671 }
 0x610   :  { %v7674_v62 = vunpack.i.h.bf16 %v7672_v43  ;;  %v7673_v32 = vunpack.i.l.bf16 %v7672_v43 }
 0x612   :  { %v4230_v54 = vsel %vm2277_vm3, %v4214_v52, %v7673_v32  ;;  %v4231_v16 = vsel %vm2277_vm3, %v4215_v51, %v7674_v62  ;;  %v8047_v51 = vld [vmem:[%s10931_s0 + $0x10] sm:$0xff] }
 0x613   :  { %v7682_v55 = vpop.permute.xlu1 %7681 }
 0x614   :  { %v7684_v36 = vunpack.i.h.bf16 %v7682_v55  ;;  %v7683_v30 = vunpack.i.l.bf16 %v7682_v55 }
 0x616   :  { %v4216_v50 = vsel %vm1100_vm0, %v10244_v14, %v7683_v30  ;;  %v4217_v56 = vsel %vm1100_vm0, %v10242_v7, %v7684_v36  ;;  %v8048_v30 = vld [vmem:[%s10931_s0 + $0x18] sm:$0xff] }
 0x644   :  { %v7677_v47 = vpop.permute.xlu0 %7676 }
 0x645   :  { %v7679_v34 = vunpack.i.h.bf16 %v7677_v47  ;;  %v7678_v42 = vunpack.i.l.bf16 %v7677_v47 }
 0x647   :  { %v4247_v48 = vsel %vm4238_vm11, %v4230_v54, %v7678_v42  ;;  %v4248_v13 = vsel %vm4238_vm11, %v4231_v16, %v7679_v34  ;;  %v8046_v42 = vld [vmem:[%s10931_s0 + $0x8] sm:$0xff] }
 0x648   :  { %v7692_v23 = vpop.permute.xlu1 %7691  ;;  %6801 = vmatprep.mubr.f32.mxu0 %v4247_v48  ;;  %v7687_v2 = vpop.permute.xlu0 %7686 }
 0x649   :  { %v7694_v21 = vunpack.i.h.bf16 %v7692_v23  ;;  %v7693_v39 = vunpack.i.l.bf16 %v7692_v23  ;;  %v7689_v18 = vunpack.i.h.bf16 %v7687_v2  ;;  %v7688_v0 = vunpack.i.l.bf16 %v7687_v2  ;;  %6802 = vmatmul.mubr.f32.gmra.mrb[88].mxu0 %v4248_v13  ;;  %v4694_v23 = vld [vmem:[%s10939_s8 + $0x8] sm:$0xff] }
 0x64a   :  { %v4698_v2 = vld [vmem:[%s10939_s8 + $0x28] sm:$0xff] }
 0x64b   :  { %v4232_v4 = vsel %vm2277_vm3, %v4216_v50, %v7688_v0  ;;  %v4233_v46 = vsel %vm2277_vm3, %v4217_v56, %v7689_v18  ;;  %v7229_v0 = vpack.c.bf16 %v4698_v2, %v4694_v23  ;;  %v4700_v50 = vld [vmem:[%s10939_s8 + $0x38] sm:$0xff] }
 0x64c   :  { %v7697_v38 = vpop.permute.xlu0 %7696  ;;  %v7702_v17 = vpop.permute.xlu1 %7701  ;;  %v4249_v35 = vsel %vm4238_vm11, %v4232_v4, %v7693_v39  ;;  %v4250_v60 = vsel %vm4238_vm11, %v4233_v46, %v7694_v21  ;;  %v4696_v21 = vld [vmem:[%s10939_s8 + $0x18] sm:$0xff] }
 0x64d   :  { %v7699_v33 = vunpack.i.h.bf16 %v7697_v38  ;;  %v7698_v58 = vunpack.i.l.bf16 %v7697_v38  ;;  %6804 = vmatprep.mubr.f32.mxu0 %v4249_v35  ;;  %v7704_v19 = vunpack.i.h.bf16 %v7702_v17  ;;  %v7703_v28 = vunpack.i.l.bf16 %v7702_v17  ;;  %v4693_v38 = vld [vmem:[%s10939_s8] sm:$0xff]  ;;  %v4695_v35 = vld [vmem:[%s10939_s8 + $0x10] sm:$0xff]  ;;  %7230 = vmatprep.subr.bf16.mxu1 %v7229_v0  ;;  %v4724_v2 = vld [vmem:[%s10939_s8 + $0xf8] sm:$0xff] }
 0x64e   :  { %6805 = vmatmul.mubr.f32.gmra.mrb[90].mxu0 %v4250_v60  ;;  %v7261_v46 = vpack.c.bf16 %v4700_v50, %v4696_v21  ;;  %v4697_v17 = vld [vmem:[%s10939_s8 + $0x20] sm:$0xff]  ;;  %v4719_v50 = vld [vmem:[%s10939_s8 + $0xd0] sm:$0xff] }
 0x64f   :  { %v4218_v14 = vsel %vm1100_vm0, %v10251_v24, %v7698_v58  ;;  %v4219_v7 = vsel %vm1100_vm0, %v10249_v3, %v7699_v33  ;;  %v7231_v60 = vpack.c.bf16 %v4697_v17, %v4693_v38  ;;  %v4699_v33 = vld [vmem:[%s10939_s8 + $0x30] sm:$0xff]  ;;  %v4702_v58 = vld [vmem:[%s10939_s8 + $0x48] sm:$0xff]  ;;  %v4717_v21 = vld [vmem:[%s10939_s8 + $0xc0] sm:$0xff] }
 0x650   :  { %v7707_v44 = vpop.permute.xlu0 %7706  ;;  %v4234_v20 = vsel %vm2277_vm3, %v4218_v14, %v7703_v28  ;;  %v4235_v27 = vsel %vm2277_vm3, %v4219_v7, %v7704_v19  ;;  %v7712_v49 = vpop.permute.xlu1 %7711  ;;  %v4706_v19 = vld [vmem:[%s10939_s8 + $0x68] sm:$0xff]  ;;  %v8049_v28 = vld [vmem:[%s10931_s0 + $0x20] sm:$0xff]  ;;  %7262 = vmatprep.subr.bf16.mxu0 %v7261_v46  ;;  %v7263_v7 = vpack.c.bf16 %v4699_v33, %v4695_v35  ;;  %v4728_v17 = vld [vmem:[%s10939_s8 + $0x118] sm:$0xff] }
 0x651   :  { %v7709_v5 = vunpack.i.h.bf16 %v7707_v44  ;;  %v7708_v57 = vunpack.i.l.bf16 %v7707_v44  ;;  %v7714_v41 = vunpack.i.h.bf16 %v7712_v49  ;;  %v7713_v29 = vunpack.i.l.bf16 %v7712_v49  ;;  %7232 = vmatpush1.bf16.msra.mxu1 %v7231_v60  ;;  %v4726_v46 = vld [vmem:[%s10939_s8 + $0x108] sm:$0xff]  ;;  %v4732_v33 = vld [vmem:[%s10939_s8 + $0x138] sm:$0xff] }
 0x652   :  { %v7233_v44 = vpack.c.bf16 %v4706_v19, %v4702_v58  ;;  %7264 = vmatpush1.bf16.msra.mxu0 %v7263_v7  ;;  %v4730_v38 = vld [vmem:[%s10939_s8 + $0x128] sm:$0xff]  ;;  %v4725_v58 = vld [vmem:[%s10939_s8 + $0x100] sm:$0xff] }
 0x653   :  { %v4251_v6 = vsel %vm4238_vm11, %v4234_v20, %v7708_v57  ;;  %v4252_v10 = vsel %vm4238_vm11, %v4235_v27, %v7709_v5  ;;  %v4220_v31 = vsel %vm1100_vm0, %v10259_v59, %v7713_v29  ;;  %v4221_v12 = vsel %vm1100_vm0, %v10257_v25, %v7714_v41  ;;  %v4704_v5 = vld [vmem:[%s10939_s8 + $0x58] sm:$0xff]  ;;  %v4701_v20 = vld [vmem:[%s10939_s8 + $0x40] sm:$0xff]  ;;  %v8050_v27 = vld [vmem:[%s10931_s0 + $0x28] sm:$0xff] }
 0x654   :  { %6807 = vmatprep.mubr.f32.mxu0 %v4251_v6  ;;  %v4708_v57 = vld [vmem:[%s10939_s8 + $0x78] sm:$0xff]  ;;  %v4705_v41 = vld [vmem:[%s10939_s8 + $0x60] sm:$0xff]  ;;  %v4703_v29 = vld [vmem:[%s10939_s8 + $0x50] sm:$0xff]  ;;  %7234 = vmatprep.subr.bf16.mxu1 %v7233_v44  ;;  %v7245_v60 = vpack.c.bf16 %v4730_v38, %v4726_v46 }
 0x655   :  { %6808 = vmatmul.mubr.f32.gmra.mrb[92].mxu0 %v4252_v10  ;;  %v7265_v49 = vpack.c.bf16 %v4708_v57, %v4704_v5  ;;  %v4729_v19 = vld [vmem:[%s10939_s8 + $0x120] sm:$0xff]  ;;  %v4727_v44 = vld [vmem:[%s10939_s8 + $0x110] sm:$0xff] }
 0x656   :  { %v7247_v7 = vpack.c.bf16 %v4729_v19, %v4725_v58  ;;  %v4731_v5 = vld [vmem:[%s10939_s8 + $0x130] sm:$0xff] }
 0x657   :  { %7266 = vmatprep.subr.bf16.mxu0 %v7265_v49  ;;  %v7279_v57 = vpack.c.bf16 %v4731_v5, %v4727_v44 }
 0x659   :  { %v7722_v24 = vpop.permute.xlu1 %7721 }
 0x65a   :  { %v7724_v26 = vunpack.i.h.bf16 %v7722_v24  ;;  %v7723_v63 = vunpack.i.l.bf16 %v7722_v24  ;;  %v4707_v24 = vld [vmem:[%s10939_s8 + $0x70] sm:$0xff] }
 0x678   :  { %v7717_v9 = vpop.permute.xlu0 %7716 }
 0x679   :  { %v7719_v45 = vunpack.i.h.bf16 %v7717_v9  ;;  %v7718_v3 = vunpack.i.l.bf16 %v7717_v9 }
 0x67b   :  { %v4236_v37 = vsel %vm2277_vm3, %v4220_v31, %v7718_v3  ;;  %v4237_v22 = vsel %vm2277_vm3, %v4221_v12, %v7719_v45  ;;  %v7235_v3 = vpack.c.bf16 %v4705_v41, %v4701_v20  ;;  %v4710_v12 = vld [vmem:[%s10939_s8 + $0x88] sm:$0xff]  ;;  %v4740_v41 = vld [vmem:[%s10939_s8 + $0x178] sm:$0xff] }
 0x67c   :  { %v4253_v61 = vsel %vm4238_vm11, %v4236_v37, %v7723_v63  ;;  %v4254_v15 = vsel %vm4238_vm11, %v4237_v22, %v7724_v26  ;;  %v7267_v63 = vpack.c.bf16 %v4707_v24, %v4703_v29  ;;  %v4714_v37 = vld [vmem:[%s10939_s8 + $0xa8] sm:$0xff]  ;;  %v4712_v22 = vld [vmem:[%s10939_s8 + $0x98] sm:$0xff]  ;;  %v4733_v29 = vld [vmem:[%s10939_s8 + $0x140] sm:$0xff] }
 0x67d   :  { %6810 = vmatprep.mubr.f32.mxu0 %v4253_v61  ;;  %7236 = vmatpush1.bf16.msra.mxu1 %v7235_v3  ;;  %v4734_v20 = vld [vmem:[%s10939_s8 + $0x148] sm:$0xff]  ;;  %v4737_v24 = vld [vmem:[%s10939_s8 + $0x160] sm:$0xff]  ;;  %v4735_v3 = vld [vmem:[%s10939_s8 + $0x150] sm:$0xff] }
 0x67e   :  { %6811 = vmatmul.mubr.f32.gmra.mrb[94].mxu0 %v4254_v15  ;;  %v8051_v15 = vld [vmem:[%s10931_s0 + $0x30] sm:$0xff] }
 0x67f   :  { %5004 = vmatprep.mubr.f32.mxu0 %v11131_v40  ;;  %7268 = vmatpush1.bf16.msra.mxu0 %v7267_v63 }
 0x6aa   :  { %v6791_v59 = vpop.f32.mrb[80].mxu0 }
 0x6ab   :  { %v4344_v43 = vpop.f32.mrb[81].mxu0  ;;  %v4350_v1 = vadd.f32 %v6791_v59, %v10354_v11 }
 0x6ac   :  { %v4345_v25 = vadd.f32 %v10354_v11, %v4344_v43  ;;  %v7237_v43 = vpack.c.bf16 %v4714_v37, %v4710_v12  ;;  %v4746_v12 = vld [vmem:[%s10939_s8 + $0x1a8] sm:$0xff]  ;;  %v4744_v37 = vld [vmem:[%s10939_s8 + $0x198] sm:$0xff] }
 0x6ad   :  { %v10371_v52 = vadd.f32 %v8046_v42, %v4350_v1  ;;  %v4709_v1 = vld [vmem:[%s10939_s8 + $0x80] sm:$0xff]  ;;  %v4718_v42 = vld [vmem:[%s10939_s8 + $0xc8] sm:$0xff] }
 0x6ae   :  { %v10361_v8 = vadd.f32 %v8045_v53, %v4345_v25  ;;  %v6794_v62 = vpop.f32.mrb[82].mxu0  ;;  %v4716_v25 = vld [vmem:[%s10939_s8 + $0xb8] sm:$0xff]  ;;  %v4713_v53 = vld [vmem:[%s10939_s8 + $0xa0] sm:$0xff]  ;;  %7238 = vmatprep.subr.bf16.mxu1 %v7237_v43 }
 0x6af   :  { %v4354_v32 = vpop.f32.mrb[83].mxu0  ;;  %v4360_v55 = vadd.f32 %v6794_v62, %v10354_v11  ;;  %v4490_v13 = vmul.f32 %v10371_v52, %v10371_v52  ;;  %v7269_v62 = vpack.c.bf16 %v4716_v25, %v4712_v22  ;;  %v4745_v43 = vld [vmem:[%s10939_s8 + $0x1a0] sm:$0xff] }
 0x6b0   :  { %v4355_v47 = vadd.f32 %v10354_v11, %v4354_v32  ;;  %4441 = vadd.xlane.f32.xlu0 %v10361_v8  ;;  %v4489_v34 = vmul.f32 %v10361_v8, %v10361_v8  ;;  %v7239_v32 = vpack.c.bf16 %v4713_v53, %v4709_v1  ;;  %v4743_v53 = vld [vmem:[%s10939_s8 + $0x190] sm:$0xff] }
 0x6b1   :  { %v10381_v54 = vadd.f32 %v8048_v30, %v4360_v55  ;;  %v4711_v55 = vld [vmem:[%s10939_s8 + $0x90] sm:$0xff]  ;;  %7270 = vmatprep.subr.bf16.mxu0 %v7269_v62  ;;  %v4720_v30 = vld [vmem:[%s10939_s8 + $0xd8] sm:$0xff] }
 0x6b2   :  { %v10376_v36 = vadd.f32 %v8047_v51, %v4355_v47  ;;  %4505 = vadd.xlane.f32.xlu1 %v4489_v34  ;;  %v4715_v47 = vld [vmem:[%s10939_s8 + $0xb0] sm:$0xff]  ;;  %7240 = vmatpush1.bf16.msra.mxu1 %v7239_v32  ;;  %v4722_v51 = vld [vmem:[%s10939_s8 + $0xe8] sm:$0xff] }
 0x6b3   :  { %v4492_v4 = vmul.f32 %v10381_v54, %v10381_v54  ;;  %v7271_v34 = vpack.c.bf16 %v4715_v47, %v4711_v55  ;;  %v7241_v23 = vpack.c.bf16 %v4722_v51, %v4718_v42  ;;  %v4747_v62 = vld [vmem:[%s10939_s8 + $0x1b0] sm:$0xff]  ;;  %v4750_v55 = vld [vmem:[%s10939_s8 + $0x1c8] sm:$0xff]  ;;  %v4756_v51 = vld [vmem:[%s10939_s8 + $0x1f8] sm:$0xff] }
 0x6b4   :  { %4443 = vadd.xlane.f32.xlu0 %v10371_v52  ;;  %v4491_v16 = vmul.f32 %v10376_v36, %v10376_v36  ;;  %v7287_v32 = vpack.c.bf16 %v4747_v62, %v4743_v53  ;;  %v4754_v47 = vld [vmem:[%s10939_s8 + $0x1e8] sm:$0xff] }
 0x6b5   :  { %v6797_v48 = vpop.f32.mrb[84].mxu0  ;;  %7272 = vmatpush1.bf16.msra.mxu0 %v7271_v34  ;;  %7242 = vmatprep.subr.bf16.mxu1 %v7241_v23  ;;  %v4752_v34 = vld [vmem:[%s10939_s8 + $0x1d8] sm:$0xff]  ;;  %v7257_v42 = vpack.c.bf16 %v4754_v47, %v4750_v55 }
 0x6b6   :  { %4509 = vadd.xlane.f32.xlu1 %v4491_v16  ;;  %v4370_v39 = vadd.f32 %v6797_v48, %v10354_v11  ;;  %v4364_v18 = vpop.f32.mrb[85].mxu0  ;;  %v8052_v16 = vld [vmem:[%s10931_s0 + $0x38] sm:$0xff] }
 0x6b7   :  { %v4365_v56 = vadd.f32 %v10354_v11, %v4364_v18  ;;  %v7273_v18 = vpack.c.bf16 %v4724_v2, %v4720_v30  ;;  %v4749_v30 = vld [vmem:[%s10939_s8 + $0x1c0] sm:$0xff]  ;;  %v4751_v2 = vld [vmem:[%s10939_s8 + $0x1d0] sm:$0xff] }
 0x6b8   :  { %4507 = vadd.xlane.f32.xlu0 %v4490_v13  ;;  %v10439_v6 = vadd.f32 %v8050_v27, %v4370_v39  ;;  %v4721_v39 = vld [vmem:[%s10939_s8 + $0xe0] sm:$0xff]  ;;  %v4738_v27 = vld [vmem:[%s10939_s8 + $0x168] sm:$0xff] }
 0x6b9   :  { %v10425_v14 = vadd.f32 %v8049_v28, %v4365_v56  ;;  %v7243_v0 = vpack.c.bf16 %v4721_v39, %v4717_v21  ;;  %v4723_v56 = vld [vmem:[%s10939_s8 + $0xf0] sm:$0xff]  ;;  %7274 = vmatprep.subr.bf16.mxu0 %v7273_v18  ;;  %v7277_v28 = vpack.c.bf16 %v4732_v33, %v4728_v17  ;;  %v7249_v49 = vpack.c.bf16 %v4738_v27, %v4734_v20  ;;  %v8054_v17 = vld [vmem:[%s10931_s0 + $0x48] sm:$0xff]  ;;  %v8056_v20 = vld [vmem:[%s10931_s0 + $0x58] sm:$0xff] }
 0x6ba   :  { %4511 = vadd.xlane.f32.xlu1 %v4492_v4  ;;  %v6800_v10 = vpop.f32.mrb[86].mxu0  ;;  %v4494_v31 = vmul.f32 %v10439_v6, %v10439_v6  ;;  %v7275_v4 = vpack.c.bf16 %v4723_v56, %v4719_v50  ;;  %v4755_v21 = vld [vmem:[%s10939_s8 + $0x1f0] sm:$0xff] }
 0x6bb   :  { %v4374_v9 = vpop.f32.mrb[87].mxu0  ;;  %v4493_v45 = vmul.f32 %v10425_v14, %v10425_v14  ;;  %v4380_v61 = vadd.f32 %v6800_v10, %v10354_v11  ;;  %7244 = vmatpush1.bf16.msra.mxu1 %v7243_v0  ;;  %v4736_v10 = vld [vmem:[%s10939_s8 + $0x158] sm:$0xff]  ;;  %v7291_v39 = vpack.c.bf16 %v4755_v21, %v4751_v2 }
 0x6bc   :  { %4445 = vadd.xlane.f32.xlu0 %v10376_v36  ;;  %v4375_v26 = vadd.f32 %v10354_v11, %v4374_v9  ;;  %7276 = vmatpush1.bf16.msra.mxu0 %v7275_v4  ;;  %v7281_v9 = vpack.c.bf16 %v4740_v41, %v4736_v10  ;;  %v8053_v4 = vld [vmem:[%s10931_s0 + $0x40] sm:$0xff] }
 0x6bd   :  { %v10499_v48 = vadd.f32 %v8052_v16, %v4380_v61  ;;  %7246 = vmatprep.subr.bf16.mxu1 %v7245_v60  ;;  %7278 = vmatprep.subr.bf16.mxu0 %v7277_v28  ;;  %v4748_v61 = vld [vmem:[%s10939_s8 + $0x1b8] sm:$0xff]  ;;  %v4753_v16 = vld [vmem:[%s10939_s8 + $0x1e0] sm:$0xff]  ;;  %v8055_v28 = vld [vmem:[%s10931_s0 + $0x50] sm:$0xff] }
 0x6be   :  { %4513 = vadd.xlane.f32.xlu1 %v4493_v45  ;;  %v10469_v59 = vadd.f32 %v8051_v15, %v4375_v26  ;;  %v7251_v45 = vpack.c.bf16 %v4737_v24, %v4733_v29  ;;  %v4739_v26 = vld [vmem:[%s10939_s8 + $0x170] sm:$0xff]  ;;  %v4741_v15 = vld [vmem:[%s10939_s8 + $0x180] sm:$0xff]  ;;  %v7285_v25 = vpack.c.bf16 %v4748_v61, %v4744_v37  ;;  %v7259_v23 = vpack.c.bf16 %v4753_v16, %v4749_v30 }
 0x6bf   :  { %v4496_v35 = vmul.f32 %v10499_v48, %v10499_v48  ;;  %7248 = vmatpush1.bf16.msra.mxu1 %v7247_v7  ;;  %v7283_v63 = vpack.c.bf16 %v4739_v26, %v4735_v3  ;;  %v7255_v1 = vpack.c.bf16 %v4745_v43, %v4741_v15  ;;  %v8057_v29 = vld [vmem:[%s10931_s0 + $0x60] sm:$0xff] }
 0x6c0   :  { %4447 = vadd.xlane.f32.xlu0 %v10381_v54  ;;  %v4495_v13 = vmul.f32 %v10469_v59, %v10469_v59  ;;  %7280 = vmatpush1.bf16.msra.mxu0 %v7279_v57 }
 0x6c1   :  { %7250 = vmatprep.subr.bf16.mxu1 %v7249_v49  ;;  %7282 = vmatprep.subr.bf16.mxu0 %v7281_v9 }
 0x6c2   :  { %4515 = vadd.xlane.f32.xlu1 %v4494_v31  ;;  %v4742_v31 = vld [vmem:[%s10939_s8 + $0x188] sm:$0xff] }
 0x6c3   :  { %7252 = vmatpush1.bf16.msra.mxu1 %v7251_v45  ;;  %v7253_v22 = vpack.c.bf16 %v4746_v12, %v4742_v31  ;;  %v8058_v45 = vld [vmem:[%s10931_s0 + $0x68] sm:$0xff] }
 0x6c4   :  { %4449 = vadd.xlane.f32.xlu0 %v10425_v14  ;;  %7284 = vmatpush1.bf16.msra.mxu0 %v7283_v63 }
 0x6c5   :  { %7254 = vmatprep.subr.bf16.mxu1 %v7253_v22  ;;  %7286 = vmatprep.subr.bf16.mxu0 %v7285_v25 }
 0x6c6   :  { %4517 = vadd.xlane.f32.xlu1 %v4495_v13  ;;  %v7289_v13 = vpack.c.bf16 %v4756_v51, %v4752_v34 }
 0x6c7   :  { %7256 = vmatpush1.bf16.msra.mxu1 %v7255_v1 }
 0x6c8   :  { %4451 = vadd.xlane.f32.xlu0 %v10439_v6  ;;  %7288 = vmatpush1.bf16.msra.mxu0 %v7287_v32 }
 0x6c9   :  { %7258 = vmatprep.subr.bf16.mxu1 %v7257_v42  ;;  %7290 = vmatprep.subr.bf16.mxu0 %v7289_v13 }
 0x6ca   :  { %4519 = vadd.xlane.f32.xlu1 %v4496_v35 }
 0x6cb   :  { %7260 = vmatpush1.bf16.msra.mxu1 %v7259_v23 }
 0x6cc   :  { %4453 = vadd.xlane.f32.xlu0 %v10469_v59  ;;  %7292 = vmatpush1.bf16.msra.mxu0 %v7291_v39 }
 0x6d0   :  { %4455 = vadd.xlane.f32.xlu0 %v10499_v48 }
 0x71c   :  { %v6803_v18 = vpop.f32.mrb[88].mxu0 }
 0x71d   :  { %v4384_v0 = vpop.f32.mrb[89].mxu0  ;;  %v4390_v50 = vadd.f32 %v6803_v18, %v10354_v11 }
 0x71e   :  { %v4385_v56 = vadd.f32 %v10354_v11, %v4384_v0 }
 0x71f   :  { %v10630_v35 = vadd.f32 %v8054_v17, %v4390_v50  ;;  %v10686_v17 = vld [vmem:[%s10937_s6] ss:$0 sm:$0xff] }
 0x720   :  { %v10625_v46 = vadd.f32 %v8053_v4, %v4385_v56 }
 0x721   :  { %v6806_v38 = vpop.f32.mrb[90].mxu0  ;;  %v4498_v44 = vmul.f32 %v10630_v35, %v10630_v35 }
 0x722   :  { %v4394_v60 = vpop.f32.mrb[91].mxu0  ;;  %4457 = vadd.xlane.f32.xlu0 %v10625_v46  ;;  %v4497_v33 = vmul.f32 %v10625_v46, %v10625_v46  ;;  %v4400_v19 = vadd.f32 %v6806_v38, %v10354_v11 }
 0x723   :  { %v4395_v58 = vadd.f32 %v10354_v11, %v4394_v60 }
 0x724   :  { %4521 = vadd.xlane.f32.xlu1 %v4497_v33  ;;  %v10648_v27 = vadd.f32 %v8056_v20, %v4400_v19 }
 0x725   :  { %v10640_v7 = vadd.f32 %v8055_v28, %v4395_v58 }
 0x726   :  { %4459 = vadd.xlane.f32.xlu0 %v10630_v35  ;;  %v4500_v9 = vmul.f32 %v10648_v27, %v10648_v27 }
 0x727   :  { %v4499_v49 = vmul.f32 %v10640_v7, %v10640_v7 }
 0x728   :  { %v6809_v5 = vpop.f32.mrb[92].mxu0  ;;  %4523 = vadd.xlane.f32.xlu1 %v4498_v44 }
 0x729   :  { %v4404_v57 = vpop.f32.mrb[93].mxu0  ;;  %v4410_v41 = vadd.f32 %v6809_v5, %v10354_v11  ;;  %v10693_v5 = vld [vmem:[%s10938_s7] ss:$0 sm:$0xff] }
 0x72a   :  { %v4405_v10 = vadd.f32 %v10354_v11, %v4404_v57  ;;  %4461 = vadd.xlane.f32.xlu0 %v10640_v7 }
 0x72b   :  { %v10666_v3 = vadd.f32 %v8058_v45, %v4410_v41  ;;  %v8059_v45 = vld [vmem:[%s10931_s0 + $0x70] sm:$0xff] }
 0x72c   :  { %4525 = vadd.xlane.f32.xlu1 %v4499_v49  ;;  %v10658_v24 = vadd.f32 %v8057_v29, %v4405_v10 }
 0x72d   :  { %v4502_v63 = vmul.f32 %v10666_v3, %v10666_v3 }
 0x72e   :  { %4463 = vadd.xlane.f32.xlu0 %v10648_v27  ;;  %v4501_v26 = vmul.f32 %v10658_v24, %v10658_v24 }
 0x730   :  { %4527 = vadd.xlane.f32.xlu1 %v4500_v9 }
 0x732   :  { %4465 = vadd.xlane.f32.xlu0 %v10658_v24 }
 0x734   :  { %4529 = vadd.xlane.f32.xlu1 %v4501_v26 }
 0x736   :  { %4467 = vadd.xlane.f32.xlu0 %v10666_v3 }
 0x738   :  { %4531 = vadd.xlane.f32.xlu1 %v4502_v63 }
 0x73d   :  { %v4442_v31 = vpop.xlane.xlu0 %4441 }
 0x73e   :  { %v4473_v12 = vmul.f32 0.0078125, %v4442_v31 }
 0x73f   :  { %v4506_v37 = vpop.xlane.xlu1 %4505 }
 0x740   :  { %v4553_v22 = vmul.f32 %v4473_v12, %v4473_v12  ;;  %v4537_v61 = vmul.f32 0.0078125, %v4506_v37  ;;  %v4585_v18 = vsub.f32 %v10361_v8, %v4473_v12 }
 0x741   :  { %v4444_v15 = vpop.xlane.xlu0 %4443 }
 0x742   :  { %v4569_v43 = vsub.f32 %v4537_v61, %v4553_v22  ;;  %v4474_v25 = vmul.f32 0.0078125, %v4444_v15  ;;  %v8060_v22 = vld [vmem:[%s10931_s0 + $0x78] sm:$0xff] }
 0x743   :  { %v4510_v1 = vpop.xlane.xlu1 %4509 }
 0x744   :  { %v4601_v53 = vadd.f32 1e-05, %v4569_v43  ;;  %v4554_v32 = vmul.f32 %v4474_v25, %v4474_v25  ;;  %v4539_v13 = vmul.f32 0.0078125, %v4510_v1  ;;  %v4586_v9 = vsub.f32 %v10371_v52, %v4474_v25 }
 0x745   :  { %v4508_v62 = vpop.xlane.xlu0 %4507 }
 0x746   :  { %8013 = vrsqrt.f32 %v4601_v53  ;;  %v4538_v55 = vmul.f32 0.0078125, %v4508_v62 }
 0x747   :  { %v4512_v47 = vpop.xlane.xlu1 %4511 }
 0x748   :  { %v4570_v34 = vsub.f32 %v4538_v55, %v4554_v32  ;;  %v4540_v50 = vmul.f32 0.0078125, %v4512_v47 }
 0x749   :  { %v4446_v42 = vpop.xlane.xlu0 %4445 }
 0x74a   :  { %v4602_v51 = vadd.f32 1e-05, %v4570_v34  ;;  %v10674_v30 = vmul.f32 0.0078125, %v4446_v42 }
 0x74b   :  { %v4514_v16 = vpop.xlane.xlu1 %4513 }
 0x74c   :  { %8015 = vrsqrt.f32 %v4602_v51  ;;  %v4555_v23 = vmul.f32 %v10674_v30, %v10674_v30  ;;  %v4541_v49 = vmul.f32 0.0078125, %v4514_v16  ;;  %v4587_v42 = vsub.f32 %v10376_v36, %v10674_v30 }
 0x74d   :  { %v4448_v2 = vpop.xlane.xlu0 %4447 }
 0x74e   :  { %v4571_v21 = vsub.f32 %v4539_v13, %v4555_v23  ;;  %v10678_v39 = vmul.f32 0.0078125, %v4448_v2 }
 0x74f   :  { %v4516_v38 = vpop.xlane.xlu1 %4515 }
 0x750   :  { %v8014_v0 = vpop.eup %8013  ;;  %v4603_v56 = vadd.f32 1e-05, %v4571_v21  ;;  %v4556_v4 = vmul.f32 %v10678_v39, %v10678_v39  ;;  %v4542_v1 = vmul.f32 0.0078125, %v4516_v38  ;;  %v4588_v30 = vsub.f32 %v10381_v54, %v10678_v39 }
 0x751   :  { %v4633_v60 = vmul.f32 %v8014_v0, %v4585_v18  ;;  %v6812_v33 = vpop.f32.mrb[94].mxu0  ;;  %v4450_v58 = vpop.xlane.xlu0 %4449 }
 0x752   :  { %8017 = vrsqrt.f32 %v4603_v56  ;;  %v4572_v19 = vsub.f32 %v4540_v50, %v4556_v4  ;;  %v4414_v28 = vpop.f32.mrb[95].mxu0  ;;  %v10688_v44 = vmul.f32 0.0078125, %v4450_v58  ;;  %v4420_v57 = vadd.f32 %v6812_v33, %v10354_v11 }
 0x753   :  { %v4415_v20 = vadd.f32 %v10354_v11, %v4414_v28  ;;  %v4655_v10 = vmul.f32 %v10686_v17, %v4633_v60  ;;  %v4518_v15 = vpop.xlane.xlu1 %4517 }
 0x754   :  { %v4604_v41 = vadd.f32 1e-05, %v4572_v19  ;;  %v4557_v29 = vmul.f32 %v10688_v44, %v10688_v44  ;;  %v10712_v61 = vadd.f32 %v8060_v22, %v4420_v57  ;;  %v4543_v23 = vmul.f32 0.0078125, %v4518_v15 }
 0x755   :  { %v10704_v26 = vadd.f32 %v8059_v45, %v4415_v20  ;;  %v4452_v63 = vpop.xlane.xlu0 %4451  ;;  %v4677_v31 = vadd.f32 %v10693_v5, %v4655_v10  ;;  %v4589_v10 = vsub.f32 %v10425_v14, %v10688_v44 }
 0x756   :  { %v8016_v12 = vpop.eup %8015  ;;  %8019 = vrsqrt.f32 %v4604_v41  ;;  %v4573_v11 = vsub.f32 %v4541_v49, %v4557_v29  ;;  %v10707_v37 = vmul.f32 0.0078125, %v4452_v63  ;;  %v4504_v51 = vmul.f32 %v10712_v61, %v10712_v61 }
 0x757   :  { %4469 = vadd.xlane.f32.xlu0 %v10704_v26  ;;  %4844 = vmatmul.mubr.f32.vlgmr.msra.gmra.mrb[96].mxu1 %v4677_v31  ;;  %v4503_v43 = vmul.f32 %v10704_v26, %v10704_v26  ;;  %v4634_v25 = vmul.f32 %v8016_v12, %v4586_v9  ;;  %v4520_v0 = vpop.xlane.xlu1 %4519 }
 0x758   :  { %v4605_v53 = vadd.f32 1e-05, %v4573_v11  ;;  %v4558_v62 = vmul.f32 %v10707_v37, %v10707_v37  ;;  %5005 = vmatmul.mubr.f32.vlgmr.msra.gmra.mrb[96].mxu0 %v4677_v31  ;;  %4849 = vmatprep.mubr.f32.mxu1 %v11131_v40  ;;  %v4544_v33 = vmul.f32 0.0078125, %v4520_v0  ;;  %v4590_v45 = vsub.f32 %v10439_v6, %v10707_v37  ;;  %v5197_v0 = vld [vmem:[#allocation2 + $0x100] sm:$0xff] }
 0x759   :  { %4533 = vadd.xlane.f32.xlu1 %v4503_v43  ;;  %v4454_v32 = vpop.xlane.xlu0 %4453  ;;  %5010 = vmatprep.mubr.f32.mxu0 %v11131_v40  ;;  %v4656_v55 = vmul.f32 %v10686_v17, %v4634_v25 }
 0x75a   :  { %8021 = vrsqrt.f32 %v4605_v53  ;;  %v4574_v47 = vsub.f32 %v4542_v1, %v4558_v62  ;;  %v4479_v34 = vmul.f32 0.0078125, %v4454_v32 }
 0x75b   :  { %4471 = vadd.xlane.f32.xlu0 %v10712_v61  ;;  %v4678_v16 = vadd.f32 %v10693_v5, %v4656_v55 }
 0x75c   :  { %v8018_v13 = vpop.eup %8017  ;;  %v4606_v2 = vadd.f32 1e-05, %v4574_v47  ;;  %v4559_v21 = vmul.f32 %v4479_v34, %v4479_v34  ;;  %v4591_v11 = vsub.f32 %v10469_v59, %v4479_v34  ;;  %v5181_v34 = vld [vmem:[#allocation2 + $0x80] sm:$0xff] }
 0x75d   :  { %v4635_v18 = vmul.f32 %v8018_v13, %v4587_v42  ;;  %4535 = vadd.xlane.f32.xlu1 %v4504_v51  ;;  %v4456_v50 = vpop.xlane.xlu0 %4455  ;;  %4850 = vmatmul.mubr.f32.gmra.mrb[98].mxu1 %v4678_v16  ;;  %v5182_v42 = vld [vmem:[#allocation2 + $0x88] sm:$0xff]  ;;  %v5213_v51 = vld [vmem:[#allocation2 + $0x180] sm:$0xff] }
 0x75e   :  { %8023 = vrsqrt.f32 %v4606_v2  ;;  %v4575_v56 = vsub.f32 %v4543_v23, %v4559_v21  ;;  %v4480_v4 = vmul.f32 0.0078125, %v4456_v50  ;;  %5011 = vmatmul.mubr.f32.gmra.mrb[98].mxu0 %v4678_v16  ;;  %4855 = vmatprep.mubr.f32.mxu1 %v11131_v40  ;;  %v7293_v16 = vpack.c.bf16 %v5182_v42, %v5181_v34  ;;  %v5214_v13 = vld [vmem:[#allocation2 + $0x188] sm:$0xff]  ;;  %v5165_v23 = vld [vmem:[#allocation2] sm:$0xff]  ;;  %v5204_v34 = vld [vmem:[#allocation2 + $0x138] sm:$0xff] }
 0x75f   :  { %5016 = vmatprep.mubr.f32.mxu0 %v11131_v40  ;;  %v4657_v38 = vmul.f32 %v10686_v17, %v4635_v18  ;;  %v5166_v2 = vld [vmem:[#allocation2 + $0x8] sm:$0xff]  ;;  %v7325_v21 = vpack.c.bf16 %v5214_v13, %v5213_v51  ;;  %v5189_v42 = vld [vmem:[#allocation2 + $0xc0] sm:$0xff] }
 0x760   :  { %v8020_v60 = vpop.eup %8019  ;;  %v4607_v58 = vadd.f32 1e-05, %v4575_v56  ;;  %v4560_v19 = vmul.f32 %v4480_v4, %v4480_v4  ;;  %v4592_v25 = vsub.f32 %v10499_v48, %v4480_v4  ;;  %v7295_v18 = vpack.c.bf16 %v5166_v2, %v5165_v23  ;;  %v5198_v50 = vld [vmem:[#allocation2 + $0x108] sm:$0xff]  ;;  %v5183_v56 = vld [vmem:[#allocation2 + $0x90] sm:$0xff]  ;;  %7294 = vmatprep.subr.bf16.mxu1 %v7293_v16  ;;  %v5221_v16 = vld [vmem:[#allocation2 + $0x1c0] sm:$0xff] }
 0x761   :  { %v4636_v28 = vmul.f32 %v8020_v60, %v4588_v30  ;;  %v4679_v57 = vadd.f32 %v10693_v5, %v4657_v38  ;;  %v7327_v4 = vpack.c.bf16 %v5198_v50, %v5197_v0  ;;  %v5184_v30 = vld [vmem:[#allocation2 + $0x98] sm:$0xff]  ;;  %v5215_v38 = vld [vmem:[#allocation2 + $0x190] sm:$0xff]  ;;  %7326 = vmatprep.subr.bf16.mxu0 %v7325_v21  ;;  %v5190_v51 = vld [vmem:[#allocation2 + $0xc8] sm:$0xff] }
 0x762   :  { %8025 = vrsqrt.f32 %v4607_v58  ;;  %v4576_v20 = vsub.f32 %v4544_v33, %v4560_v19  ;;  %v5216_v60 = vld [vmem:[#allocation2 + $0x198] sm:$0xff]  ;;  %7296 = vmatpush3.bf16.msra.mxu1 %v7295_v18  ;;  %v7297_v33 = vpack.c.bf16 %v5184_v30, %v5183_v56  ;;  %v5167_v19 = vld [vmem:[#allocation2 + $0x10] sm:$0xff]  ;;  %v5222_v13 = vld [vmem:[#allocation2 + $0x1c8] sm:$0xff]  ;;  %v7309_v21 = vpack.c.bf16 %v5190_v51, %v5189_v42 }
 0x763   :  { %4856 = vmatmul.mubr.f32.gmra.mrb[100].mxu1 %v4679_v57  ;;  %5017 = vmatmul.mubr.f32.gmra.mrb[100].mxu0 %v4679_v57  ;;  %v4658_v39 = vmul.f32 %v10686_v17, %v4636_v28  ;;  %v7329_v58 = vpack.c.bf16 %v5216_v60, %v5215_v38  ;;  %v5168_v28 = vld [vmem:[#allocation2 + $0x18] sm:$0xff]  ;;  %v5199_v57 = vld [vmem:[#allocation2 + $0x110] sm:$0xff]  ;;  %v5173_v18 = vld [vmem:[#allocation2 + $0x40] sm:$0xff]  ;;  %v7341_v56 = vpack.c.bf16 %v5222_v13, %v5221_v16 }
 0x764   :  { %v8022_v49 = vpop.eup %8021  ;;  %v4608_v41 = vadd.f32 1e-05, %v4576_v20  ;;  %4861 = vmatprep.mubr.f32.mxu1 %v11131_v40  ;;  %5022 = vmatprep.mubr.f32.mxu0 %v11131_v40  ;;  %v7299_v20 = vpack.c.bf16 %v5168_v28, %v5167_v19  ;;  %v5174_v0 = vld [vmem:[#allocation2 + $0x48] sm:$0xff]  ;;  %v5205_v50 = vld [vmem:[#allocation2 + $0x140] sm:$0xff]  ;;  %v5191_v30 = vld [vmem:[#allocation2 + $0xd0] sm:$0xff] }
 0x765   :  { %v4637_v29 = vmul.f32 %v8022_v49, %v4589_v10  ;;  %v4680_v9 = vadd.f32 %v10693_v5, %v4658_v39  ;;  %7328 = vmatpush3.bf16.msra.mxu0 %v7327_v4  ;;  %v5200_v10 = vld [vmem:[#allocation2 + $0x118] sm:$0xff]  ;;  %v5185_v39 = vld [vmem:[#allocation2 + $0xa0] sm:$0xff]  ;;  %v5186_v49 = vld [vmem:[#allocation2 + $0xa8] sm:$0xff]  ;;  %7298 = vmatprep.subr.bf16.mxu1 %v7297_v33 }
 0x766   :  { %8027 = vrsqrt.f32 %v4608_v41  ;;  %7330 = vmatprep.subr.bf16.mxu0 %v7329_v58  ;;  %v7331_v41 = vpack.c.bf16 %v5200_v10, %v5199_v57  ;;  %7300 = vmatpush3.bf16.msra.mxu1 %v7299_v20  ;;  %v5206_v4 = vld [vmem:[#allocation2 + $0x148] sm:$0xff]  ;;  %v5192_v38 = vld [vmem:[#allocation2 + $0xd8] sm:$0xff]  ;;  %v5223_v60 = vld [vmem:[#allocation2 + $0x1d0] sm:$0xff]  ;;  %v7311_v58 = vpack.c.bf16 %v5174_v0, %v5173_v18 }
 0x767   :  { %4862 = vmatmul.mubr.f32.gmra.mrb[102].mxu1 %v4680_v9  ;;  %5023 = vmatmul.mubr.f32.gmra.mrb[102].mxu0 %v4680_v9  ;;  %v4659_v44 = vmul.f32 %v10686_v17, %v4637_v29  ;;  %v7301_v29 = vpack.c.bf16 %v5186_v49, %v5185_v39  ;;  %v5217_v9 = vld [vmem:[#allocation2 + $0x1a0] sm:$0xff]  ;;  %v5224_v33 = vld [vmem:[#allocation2 + $0x1d8] sm:$0xff]  ;;  %v7343_v19 = vpack.c.bf16 %v5206_v4, %v5205_v50  ;;  %v5175_v57 = vld [vmem:[#allocation2 + $0x50] sm:$0xff] }
 0x768   :  { %v8024_v63 = vpop.eup %8023  ;;  %4867 = vmatprep.mubr.f32.mxu1 %v11131_v40  ;;  %5028 = vmatprep.mubr.f32.mxu0 %v11131_v40  ;;  %v7313_v28 = vpack.c.bf16 %v5192_v38, %v5191_v30  ;;  %v5176_v20 = vld [vmem:[#allocation2 + $0x58] sm:$0xff]  ;;  %v5207_v10 = vld [vmem:[#allocation2 + $0x150] sm:$0xff]  ;;  %v7345_v39 = vpack.c.bf16 %v5224_v33, %v5223_v60 }
 0x769   :  { %v4638_v31 = vmul.f32 %v8024_v63, %v4590_v45  ;;  %v4681_v12 = vadd.f32 %v10693_v5, %v4659_v44  ;;  %v5218_v45 = vld [vmem:[#allocation2 + $0x1a8] sm:$0xff]  ;;  %v5169_v44 = vld [vmem:[#allocation2 + $0x20] sm:$0xff]  ;;  %7332 = vmatpush3.bf16.msra.mxu0 %v7331_v41  ;;  %7302 = vmatprep.subr.bf16.mxu1 %v7301_v29  ;;  %v5208_v49 = vld [vmem:[#allocation2 + $0x158] sm:$0xff] }
 0x76a   :  { %v7333_v63 = vpack.c.bf16 %v5218_v45, %v5217_v9  ;;  %v5193_v41 = vld [vmem:[#allocation2 + $0xe0] sm:$0xff]  ;;  %v5194_v29 = vld [vmem:[#allocation2 + $0xe8] sm:$0xff]  ;;  %v5211_v13 = vld [vmem:[#allocation2 + $0x170] sm:$0xff] }
 0x76b   :  { %4868 = vmatmul.mubr.f32.gmra.mrb[104].mxu1 %v4681_v12  ;;  %5029 = vmatmul.mubr.f32.gmra.mrb[104].mxu0 %v4681_v12  ;;  %v4660_v22 = vmul.f32 %v10686_v17, %v4638_v31  ;;  %v5170_v31 = vld [vmem:[#allocation2 + $0x28] sm:$0xff]  ;;  %v5201_v12 = vld [vmem:[#allocation2 + $0x120] sm:$0xff] }
 0x76c   :  { %v8026_v15 = vpop.eup %8025  ;;  %4873 = vmatprep.mubr.f32.mxu1 %v11131_v40  ;;  %5034 = vmatprep.mubr.f32.mxu0 %v11131_v40  ;;  %v5225_v9 = vld [vmem:[#allocation2 + $0x1e0] sm:$0xff]  ;;  %v5226_v45 = vld [vmem:[#allocation2 + $0x1e8] sm:$0xff] }
 0x76d   :  { %v4639_v37 = vmul.f32 %v8026_v15, %v4591_v11  ;;  %v4682_v43 = vadd.f32 %v10693_v5, %v4660_v22  ;;  %v5202_v11 = vld [vmem:[#allocation2 + $0x128] sm:$0xff]  ;;  %v7303_v22 = vpack.c.bf16 %v5170_v31, %v5169_v44  ;;  %v5187_v15 = vld [vmem:[#allocation2 + $0xb0] sm:$0xff]  ;;  %7334 = vmatprep.subr.bf16.mxu0 %v7333_v63  ;;  %v7315_v44 = vpack.c.bf16 %v5176_v20, %v5175_v57 }
 0x76e   :  { %v7347_v63 = vpack.c.bf16 %v5208_v49, %v5207_v10  ;;  %v7317_v31 = vpack.c.bf16 %v5194_v29, %v5193_v41 }
 0x76f   :  { %4874 = vmatmul.mubr.f32.gmra.mrb[106].mxu1 %v4682_v43  ;;  %5035 = vmatmul.mubr.f32.gmra.mrb[106].mxu0 %v4682_v43  ;;  %v4661_v1 = vmul.f32 %v10686_v17, %v4639_v37  ;;  %v5188_v37 = vld [vmem:[#allocation2 + $0xb8] sm:$0xff]  ;;  %v5219_v43 = vld [vmem:[#allocation2 + $0x1b0] sm:$0xff] }
 0x770   :  { %v8028_v53 = vpop.eup %8027  ;;  %4879 = vmatprep.mubr.f32.mxu1 %v11131_v40  ;;  %5040 = vmatprep.mubr.f32.mxu0 %v11131_v40 }
 0x771   :  { %v4640_v62 = vmul.f32 %v8028_v53, %v4592_v25  ;;  %v4683_v32 = vadd.f32 %v10693_v5, %v4661_v1  ;;  %v7335_v25 = vpack.c.bf16 %v5202_v11, %v5201_v12  ;;  %v7305_v1 = vpack.c.bf16 %v5188_v37, %v5187_v15  ;;  %v5220_v53 = vld [vmem:[#allocation2 + $0x1b8] sm:$0xff]  ;;  %7304 = vmatpush3.bf16.msra.mxu1 %v7303_v22  ;;  %v5177_v11 = vld [vmem:[#allocation2 + $0x60] sm:$0xff]  ;;  %v5178_v22 = vld [vmem:[#allocation2 + $0x68] sm:$0xff] }
 0x772   :  { %v7349_v12 = vpack.c.bf16 %v5226_v45, %v5225_v9  ;;  %v5209_v15 = vld [vmem:[#allocation2 + $0x160] sm:$0xff]  ;;  %v7319_v37 = vpack.c.bf16 %v5178_v22, %v5177_v11 }
 0x773   :  { %4880 = vmatmul.mubr.f32.gmra.mrb[108].mxu1 %v4683_v32  ;;  %5041 = vmatmul.mubr.f32.gmra.mrb[108].mxu0 %v4683_v32  ;;  %v4662_v55 = vmul.f32 %v10686_v17, %v4640_v62  ;;  %v5171_v62 = vld [vmem:[#allocation2 + $0x30] sm:$0xff]  ;;  %v5172_v32 = vld [vmem:[#allocation2 + $0x38] sm:$0xff] }
 0x774   :  { %4885 = vmatprep.mubr.f32.mxu1 %v11131_v40  ;;  %5046 = vmatprep.mubr.f32.mxu0 %v11131_v40  ;;  %v7307_v23 = vpack.c.bf16 %v5172_v32, %v5171_v62  ;;  %v5227_v62 = vld [vmem:[#allocation2 + $0x1f0] sm:$0xff] }
 0x775   :  { %v4684_v47 = vadd.f32 %v10693_v5, %v4662_v55  ;;  %v7337_v55 = vpack.c.bf16 %v5220_v53, %v5219_v43  ;;  %7336 = vmatpush3.bf16.msra.mxu0 %v7335_v25  ;;  %7306 = vmatprep.subr.bf16.mxu1 %v7305_v1  ;;  %v5210_v43 = vld [vmem:[#allocation2 + $0x168] sm:$0xff]  ;;  %v5195_v1 = vld [vmem:[#allocation2 + $0xf0] sm:$0xff]  ;;  %v5196_v53 = vld [vmem:[#allocation2 + $0xf8] sm:$0xff] }
 0x776   :  { %7308 = vmatpush3.bf16.msra.mxu1 %v7307_v23  ;;  %v7351_v25 = vpack.c.bf16 %v5210_v43, %v5209_v15  ;;  %v7321_v32 = vpack.c.bf16 %v5196_v53, %v5195_v1  ;;  %v5212_v23 = vld [vmem:[#allocation2 + $0x178] sm:$0xff] }
 0x777   :  { %4886 = vmatmul.mubr.f32.gmra.mrb[110].mxu1 %v4684_v47  ;;  %5047 = vmatmul.mubr.f32.gmra.mrb[110].mxu0 %v4684_v47  ;;  %v5203_v47 = vld [vmem:[#allocation2 + $0x130] sm:$0xff] }
 0x778   :  { %4891 = vmatprep.mubr.f32.mxu1 %v11131_v40  ;;  %5052 = vmatprep.mubr.f32.mxu0 %v11131_v40  ;;  %v7339_v2 = vpack.c.bf16 %v5204_v34, %v5203_v47  ;;  %v5179_v47 = vld [vmem:[#allocation2 + $0x70] sm:$0xff]  ;;  %v5180_v34 = vld [vmem:[#allocation2 + $0x78] sm:$0xff] }
 0x779   :  { %7338 = vmatprep.subr.bf16.mxu0 %v7337_v55  ;;  %7310 = vmatprep.subr.bf16.mxu1 %v7309_v21  ;;  %v5228_v55 = vld [vmem:[#allocation2 + $0x1f8] sm:$0xff]  ;;  %v7323_v16 = vpack.c.bf16 %v5180_v34, %v5179_v47  ;;  %v7355_v21 = vpack.c.bf16 %v5212_v23, %v5211_v13 }
 0x77a   :  { %7340 = vmatpush3.bf16.msra.mxu0 %v7339_v2  ;;  %7312 = vmatpush3.bf16.msra.mxu1 %v7311_v58  ;;  %v7353_v51 = vpack.c.bf16 %v5228_v55, %v5227_v62 }
 0x77b   :  { %7342 = vmatprep.subr.bf16.mxu0 %v7341_v56  ;;  %7314 = vmatprep.subr.bf16.mxu1 %v7313_v28 }
 0x77e   :  { %7344 = vmatpush3.bf16.msra.mxu0 %v7343_v19  ;;  %7316 = vmatpush3.bf16.msra.mxu1 %v7315_v44 }
 0x77f   :  { %7346 = vmatprep.subr.bf16.mxu0 %v7345_v39  ;;  %7318 = vmatprep.subr.bf16.mxu1 %v7317_v31 }
 0x782   :  { %7348 = vmatpush3.bf16.msra.mxu0 %v7347_v63  ;;  %7320 = vmatpush3.bf16.msra.mxu1 %v7319_v37 }
 0x783   :  { %7350 = vmatprep.subr.bf16.mxu0 %v7349_v12  ;;  %7322 = vmatprep.subr.bf16.mxu1 %v7321_v32 }
 0x786   :  { %7352 = vmatpush3.bf16.msra.mxu0 %v7351_v25  ;;  %7324 = vmatpush3.bf16.msra.mxu1 %v7323_v16 }
 0x787   :  { %7354 = vmatprep.subr.bf16.mxu0 %v7353_v51 }
 0x78a   :  { %7356 = vmatpush3.bf16.msra.mxu0 %v7355_v21 }
 0x7af   :  { %v4458_v42 = vpop.xlane.xlu0 %4457 }
 0x7b0   :  { %v4481_v2 = vmul.f32 0.0078125, %v4458_v42 }
 0x7b1   :  { %v4522_v18 = vpop.xlane.xlu1 %4521 }
 0x7b2   :  { %v4561_v0 = vmul.f32 %v4481_v2, %v4481_v2  ;;  %v4545_v50 = vmul.f32 0.0078125, %v4522_v18  ;;  %v4593_v15 = vsub.f32 %v10625_v46, %v4481_v2 }
 0x7b3   :  { %v4460_v56 = vpop.xlane.xlu0 %4459 }
 0x7b4   :  { %v4577_v4 = vsub.f32 %v4545_v50, %v4561_v0  ;;  %v4482_v30 = vmul.f32 0.0078125, %v4460_v56 }
 0x7b5   :  { %v4524_v38 = vpop.xlane.xlu1 %4523 }
 0x7b6   :  { %v4609_v60 = vadd.f32 1e-05, %v4577_v4  ;;  %v4562_v33 = vmul.f32 %v4482_v30, %v4482_v30  ;;  %v4546_v58 = vmul.f32 0.0078125, %v4524_v38  ;;  %v4594_v34 = vsub.f32 %v10630_v35, %v4482_v30 }
 0x7b7   :  { %v4462_v19 = vpop.xlane.xlu0 %4461 }
 0x7b8   :  { %8029 = vrsqrt.f32 %v4609_v60  ;;  %v4578_v28 = vsub.f32 %v4546_v58, %v4562_v33  ;;  %v4483_v57 = vmul.f32 0.0078125, %v4462_v19 }
 0x7b9   :  { %v4526_v20 = vpop.xlane.xlu1 %4525 }
 0x7ba   :  { %v4610_v10 = vadd.f32 1e-05, %v4578_v28  ;;  %v4563_v39 = vmul.f32 %v4483_v57, %v4483_v57  ;;  %v4547_v49 = vmul.f32 0.0078125, %v4526_v20  ;;  %v4595_v50 = vsub.f32 %v10640_v7, %v4483_v57 }
 0x7bb   :  { %v4464_v41 = vpop.xlane.xlu0 %4463 }
 0x7bc   :  { %8031 = vrsqrt.f32 %v4610_v10  ;;  %v4579_v29 = vsub.f32 %v4547_v49, %v4563_v39  ;;  %v4484_v9 = vmul.f32 0.0078125, %v4464_v41 }
 0x7bd   :  { %v4528_v45 = vpop.xlane.xlu1 %4527 }
 0x7be   :  { %v4611_v44 = vadd.f32 1e-05, %v4579_v29  ;;  %v4564_v63 = vmul.f32 %v4484_v9, %v4484_v9  ;;  %v4548_v31 = vmul.f32 0.0078125, %v4528_v45  ;;  %v4596_v33 = vsub.f32 %v10648_v27, %v4484_v9 }
 0x7bf   :  { %v4466_v12 = vpop.xlane.xlu0 %4465 }
 0x7c0   :  { %8033 = vrsqrt.f32 %v4611_v44  ;;  %v4580_v11 = vsub.f32 %v4548_v31, %v4564_v63  ;;  %v4485_v22 = vmul.f32 0.0078125, %v4466_v12 }
 0x7c1   :  { %v4530_v37 = vpop.xlane.xlu1 %4529 }
 0x7c2   :  { %v8030_v43 = vpop.eup %8029  ;;  %v4612_v25 = vadd.f32 1e-05, %v4580_v11  ;;  %v4565_v1 = vmul.f32 %v4485_v22, %v4485_v22  ;;  %v4549_v53 = vmul.f32 0.0078125, %v4530_v37  ;;  %v4597_v20 = vsub.f32 %v10658_v24, %v4485_v22 }
 0x7c3   :  { %v4468_v62 = vpop.xlane.xlu0 %4467  ;;  %v4641_v32 = vmul.f32 %v8030_v43, %v4593_v15 }
 0x7c4   :  { %8035 = vrsqrt.f32 %v4612_v25  ;;  %v4581_v55 = vsub.f32 %v4549_v53, %v4565_v1  ;;  %v4486_v47 = vmul.f32 0.0078125, %v4468_v62 }
 0x7c5   :  { %v4532_v42 = vpop.xlane.xlu1 %4531  ;;  %v4663_v51 = vmul.f32 %v10686_v17, %v4641_v32 }
 0x7c6   :  { %v8032_v16 = vpop.eup %8031  ;;  %v4613_v13 = vadd.f32 1e-05, %v4581_v55  ;;  %v4566_v23 = vmul.f32 %v4486_v47, %v4486_v47  ;;  %v4550_v21 = vmul.f32 0.0078125, %v4532_v42  ;;  %v4598_v29 = vsub.f32 %v10666_v3, %v4486_v47 }
 0x7c7   :  { %v4685_v2 = vadd.f32 %v10693_v5, %v4663_v51  ;;  %v4642_v18 = vmul.f32 %v8032_v16, %v4594_v34 }
 0x7c8   :  { %8037 = vrsqrt.f32 %v4613_v13  ;;  %v4582_v0 = vsub.f32 %v4550_v21, %v4566_v23 }
 0x7c9   :  { %4892 = vmatmul.mubr.f32.gmra.mrb[112].mxu1 %v4685_v2  ;;  %5053 = vmatmul.mubr.f32.gmra.mrb[112].mxu0 %v4685_v2  ;;  %v4664_v56 = vmul.f32 %v10686_v17, %v4642_v18 }
 0x7ca   :  { %v8034_v4 = vpop.eup %8033  ;;  %v4614_v30 = vadd.f32 1e-05, %v4582_v0  ;;  %4897 = vmatprep.mubr.f32.mxu1 %v11131_v40  ;;  %5058 = vmatprep.mubr.f32.mxu0 %v11131_v40 }
 0x7cb   :  { %v4686_v38 = vadd.f32 %v10693_v5, %v4664_v56  ;;  %v4643_v60 = vmul.f32 %v8034_v4, %v4595_v50  ;;  %v11132_v4 = vld [vmem:[#allocation10_spill] sm:$0xff] }
 0x7cc   :  { %8039 = vrsqrt.f32 %v4614_v30  ;;  %v4761_v30 = vsub.s32 0, %v11132_v4 }
 0x7cd   :  { %4898 = vmatmul.mubr.f32.gmra.mrb[114].mxu1 %v4686_v38  ;;  %5059 = vmatmul.mubr.f32.gmra.mrb[114].mxu0 %v4686_v38  ;;  %v4665_v58 = vmul.f32 %v10686_v17, %v4643_v60  ;;  %v4757_v38 = vld [vmem:[%s10940_s9] sm:$0xf]  ;;  %v4765_v60 = vsub.s32 1, %v11132_v4 }
 0x7ce   :  { %v8036_v19 = vpop.eup %8035  ;;  %4903 = vmatprep.mubr.f32.mxu1 %v11131_v40  ;;  %5064 = vmatprep.mubr.f32.mxu0 %v11131_v40 }
 0x7cf   :  { %v4687_v28 = vadd.f32 %v10693_v5, %v4665_v58  ;;  %v4644_v57 = vmul.f32 %v8036_v19, %v4596_v33  ;;  %v4769_v33 = vsub.s32 2, %v11132_v4  ;;  %v10807_v58 = vrot.slane %v4757_v38, %v4761_v30 }
 0x7d0   :  { %v10809_v19 = vrot.slane %v4757_v38, %v4765_v60 }
 0x7d1   :  { %4904 = vmatmul.mubr.f32.gmra.mrb[116].mxu1 %v4687_v28  ;;  %5065 = vmatmul.mubr.f32.gmra.mrb[116].mxu0 %v4687_v28  ;;  %v4666_v10 = vmul.f32 %v10686_v17, %v4644_v57 }
 0x7d2   :  { %v8038_v39 = vpop.eup %8037  ;;  %4909 = vmatprep.mubr.f32.mxu1 %v11131_v40  ;;  %5070 = vmatprep.mubr.f32.mxu0 %v11131_v40 }
 0x7d3   :  { %v4688_v49 = vadd.f32 %v10693_v5, %v4666_v10  ;;  %v4645_v41 = vmul.f32 %v8038_v39, %v4597_v20 }
 0x7d5   :  { %4910 = vmatmul.mubr.f32.gmra.mrb[118].mxu1 %v4688_v49  ;;  %5071 = vmatmul.mubr.f32.gmra.mrb[118].mxu0 %v4688_v49  ;;  %v4667_v9 = vmul.f32 %v10686_v17, %v4645_v41 }
 0x7d6   :  { %v8040_v45 = vpop.eup %8039  ;;  %4915 = vmatprep.mubr.f32.mxu1 %v11131_v40  ;;  %5076 = vmatprep.mubr.f32.mxu0 %v11131_v40 }
 0x7d7   :  { %v4689_v44 = vadd.f32 %v10693_v5, %v4667_v9  ;;  %v4646_v63 = vmul.f32 %v8040_v45, %v4598_v29 }
 0x7d9   :  { %4916 = vmatmul.mubr.f32.gmra.mrb[120].mxu1 %v4689_v44  ;;  %5077 = vmatmul.mubr.f32.gmra.mrb[120].mxu0 %v4689_v44  ;;  %v4668_v31 = vmul.f32 %v10686_v17, %v4646_v63 }
 0x7da   :  { %4921 = vmatprep.mubr.f32.mxu1 %v11131_v40  ;;  %5082 = vmatprep.mubr.f32.mxu0 %v11131_v40 }
 0x7db   :  { %v4690_v12 = vadd.f32 %v10693_v5, %v4668_v31 }
 0x7dd   :  { %4922 = vmatmul.mubr.f32.gmra.mrb[122].mxu1 %v4690_v12  ;;  %5083 = vmatmul.mubr.f32.gmra.mrb[122].mxu0 %v4690_v12 }
 0x7de   :  { %4927 = vmatprep.mubr.f32.mxu1 %v11131_v40  ;;  %5088 = vmatprep.mubr.f32.mxu0 %v11131_v40 }
 0x7e4   :  { %v4470_v11 = vpop.xlane.xlu0 %4469 }
 0x7e5   :  { %v4487_v22 = vmul.f32 0.0078125, %v4470_v11 }
 0x7e6   :  { %v4534_v15 = vpop.xlane.xlu1 %4533 }
 0x7e7   :  { %v4567_v37 = vmul.f32 %v4487_v22, %v4487_v22  ;;  %v4551_v43 = vmul.f32 0.0078125, %v4534_v15  ;;  %v4599_v51 = vsub.f32 %v10704_v26, %v4487_v22 }
 0x7e8   :  { %v4472_v25 = vpop.xlane.xlu0 %4471 }
 0x7e9   :  { %v4583_v1 = vsub.f32 %v4551_v43, %v4567_v37  ;;  %v4488_v53 = vmul.f32 0.0078125, %v4472_v25 }
 0x7ea   :  { %v4536_v62 = vpop.xlane.xlu1 %4535 }
 0x7eb   :  { %v4615_v32 = vadd.f32 1e-05, %v4583_v1  ;;  %v4568_v55 = vmul.f32 %v4488_v53, %v4488_v53  ;;  %v4552_v47 = vmul.f32 0.0078125, %v4536_v62  ;;  %v4600_v23 = vsub.f32 %v10712_v61, %v4488_v53 }
 0x7ed   :  { %8041 = vrsqrt.f32 %v4615_v32  ;;  %v4584_v34 = vsub.f32 %v4552_v47, %v4568_v55 }
 0x7ef   :  { %v4616_v42 = vadd.f32 1e-05, %v4584_v34 }
 0x7f1   :  { %8043 = vrsqrt.f32 %v4616_v42 }
 0x7f7   :  { %v8042_v16 = vpop.eup %8041 }
 0x7f8   :  { %v4647_v13 = vmul.f32 %v8042_v16, %v4599_v51 }
 0x7fa   :  { %v4669_v21 = vmul.f32 %v10686_v17, %v4647_v13 }
 0x7fb   :  { %v8044_v2 = vpop.eup %8043 }
 0x7fc   :  { %v4691_v18 = vadd.f32 %v10693_v5, %v4669_v21  ;;  %v4648_v0 = vmul.f32 %v8044_v2, %v4600_v23 }
 0x7fe   :  { %4928 = vmatmul.mubr.f32.gmra.mrb[124].mxu1 %v4691_v18  ;;  %5089 = vmatmul.mubr.f32.gmra.mrb[124].mxu0 %v4691_v18  ;;  %v4670_v50 = vmul.f32 %v10686_v17, %v4648_v0  ;;  %v4773_v17 = vsub.s32 3, %v11132_v4 }
 0x7ff   :  { %4933 = vmatprep.mubr.f32.mxu1 %v11131_v40  ;;  %5094 = vmatprep.mubr.f32.mxu0 %v11131_v40  ;;  %v10811_v40 = vrot.slane %v4757_v38, %v4769_v33 }
 0x800   :  { %v4692_v56 = vadd.f32 %v10693_v5, %v4670_v50  ;;  %v10813_v5 = vrot.slane %v4757_v38, %v4773_v17 }
 0x802   :  { %4934 = vmatmul.mubr.f32.gmra.mrb[126].mxu1 %v4692_v56  ;;  %5095 = vmatmul.mubr.f32.gmra.mrb[126].mxu0 %v4692_v56 }
 0x82a   :  { %v4845_v28 = vpop.f32.mrb[96].mxu1 }
 0x82b   :  { %v4846_v57 = vadd.f32 %v4845_v28, %v10807_v58  ;;  %v5006_v20 = vpop.f32.mrb[96].mxu0  ;;  %v4847_v10 = vpop.f32.mrb[97].mxu1 }
 0x82c   :  { %v5007_v39 = vadd.f32 %v5006_v20, %v10811_v40  ;;  %v4848_v49 = vadd.f32 %v4847_v10, %v10809_v19  ;;  %v5008_v41 = vpop.f32.mrb[97].mxu0 }
 0x82d   :  { %v5009_v29 = vadd.f32 %v5008_v41, %v10813_v5  ;;  %v5101_v45 = vmax.f32 %v4846_v57, 0.0 }
 0x82e   :  { %v5102_v9 = vmax.f32 %v4848_v49, 0.0  ;;  %v5103_v63 = vmax.f32 %v5007_v39, 0.0 }
 0x82f   :  { %v5104_v44 = vmax.f32 %v5009_v29, 0.0 }
 0x830   :  { %v4851_v31 = vpop.f32.mrb[98].mxu1  ;;  %5300 = vmatprep.mubr.f32.mxu1 %v5102_v9 }
 0x831   :  { %v4852_v12 = vadd.f32 %v4851_v31, %v10807_v58  ;;  %v5012_v11 = vpop.f32.mrb[98].mxu0  ;;  %5445 = vmatprep.mubr.f32.mxu0 %v5104_v44  ;;  %v4853_v22 = vpop.f32.mrb[99].mxu1  ;;  %5301 = vmatmul.mubr.f32.vlgmr.msra.gmra.mrb[128].mxu1 %v5101_v45 }
 0x832   :  { %v5013_v15 = vadd.f32 %v5012_v11, %v10811_v40  ;;  %v4854_v37 = vadd.f32 %v4853_v22, %v10809_v19  ;;  %v5014_v43 = vpop.f32.mrb[99].mxu0  ;;  %5446 = vmatmul.mubr.f32.vlgmr.msra.gmra.mrb[128].mxu0 %v5103_v63 }
 0x833   :  { %v5015_v25 = vadd.f32 %v5014_v43, %v10813_v5  ;;  %v5105_v53 = vmax.f32 %v4852_v12, 0.0 }
 0x834   :  { %v5106_v1 = vmax.f32 %v4854_v37, 0.0  ;;  %v5107_v32 = vmax.f32 %v5013_v15, 0.0 }
 0x835   :  { %v5108_v62 = vmax.f32 %v5015_v25, 0.0 }
 0x836   :  { %v4857_v55 = vpop.f32.mrb[100].mxu1  ;;  %v5018_v47 = vpop.f32.mrb[100].mxu0  ;;  %5305 = vmatprep.mubr.f32.mxu1 %v5106_v1 }
 0x837   :  { %v4858_v34 = vadd.f32 %v4857_v55, %v10807_v58  ;;  %v5019_v42 = vadd.f32 %v5018_v47, %v10811_v40  ;;  %5450 = vmatprep.mubr.f32.mxu0 %v5108_v62  ;;  %v4859_v51 = vpop.f32.mrb[101].mxu1  ;;  %v5020_v16 = vpop.f32.mrb[101].mxu0  ;;  %5306 = vmatmul.mubr.f32.gmra.mrb[130].mxu1 %v5105_v53 }
 0x838   :  { %v4860_v13 = vadd.f32 %v4859_v51, %v10809_v19  ;;  %v5021_v23 = vadd.f32 %v5020_v16, %v10813_v5  ;;  %5451 = vmatmul.mubr.f32.gmra.mrb[130].mxu0 %v5107_v32 }
 0x839   :  { %v5109_v50 = vmax.f32 %v4858_v34, 0.0  ;;  %v5111_v56 = vmax.f32 %v5019_v42, 0.0 }
 0x83a   :  { %v5110_v21 = vmax.f32 %v4860_v13, 0.0  ;;  %v5112_v2 = vmax.f32 %v5021_v23, 0.0  ;;  %v4863_v18 = vpop.f32.mrb[102].mxu1  ;;  %v5024_v0 = vpop.f32.mrb[102].mxu0 }
 0x83b   :  { %v4864_v4 = vadd.f32 %v4863_v18, %v10807_v58  ;;  %v5025_v30 = vadd.f32 %v5024_v0, %v10811_v40  ;;  %v4865_v38 = vpop.f32.mrb[103].mxu1  ;;  %v5026_v60 = vpop.f32.mrb[103].mxu0 }
 0x83c   :  { %v4866_v33 = vadd.f32 %v4865_v38, %v10809_v19  ;;  %v5027_v17 = vadd.f32 %v5026_v60, %v10813_v5  ;;  %5310 = vmatprep.mubr.f32.mxu1 %v5110_v21  ;;  %5455 = vmatprep.mubr.f32.mxu0 %v5112_v2 }
 0x83d   :  { %5311 = vmatmul.mubr.f32.gmra.mrb[132].mxu1 %v5109_v50  ;;  %5456 = vmatmul.mubr.f32.gmra.mrb[132].mxu0 %v5111_v56  ;;  %v5113_v39 = vmax.f32 %v4864_v4, 0.0  ;;  %v5115_v49 = vmax.f32 %v5025_v30, 0.0 }
 0x83e   :  { %v5114_v28 = vmax.f32 %v4866_v33, 0.0  ;;  %v5116_v57 = vmax.f32 %v5027_v17, 0.0  ;;  %v4869_v20 = vpop.f32.mrb[104].mxu1  ;;  %v5030_v10 = vpop.f32.mrb[104].mxu0 }
 0x83f   :  { %v4870_v41 = vadd.f32 %v4869_v20, %v10807_v58  ;;  %v5031_v29 = vadd.f32 %v5030_v10, %v10811_v40  ;;  %v4871_v9 = vpop.f32.mrb[105].mxu1  ;;  %v5032_v45 = vpop.f32.mrb[105].mxu0 }
 0x840   :  { %v4872_v44 = vadd.f32 %v4871_v9, %v10809_v19  ;;  %v5033_v63 = vadd.f32 %v5032_v45, %v10813_v5  ;;  %5315 = vmatprep.mubr.f32.mxu1 %v5114_v28  ;;  %5460 = vmatprep.mubr.f32.mxu0 %v5116_v57 }
 0x841   :  { %5316 = vmatmul.mubr.f32.gmra.mrb[134].mxu1 %v5113_v39  ;;  %5461 = vmatmul.mubr.f32.gmra.mrb[134].mxu0 %v5115_v49  ;;  %v5117_v15 = vmax.f32 %v4870_v41, 0.0  ;;  %v5119_v37 = vmax.f32 %v5031_v29, 0.0 }
 0x842   :  { %v5118_v31 = vmax.f32 %v4872_v44, 0.0  ;;  %v5120_v12 = vmax.f32 %v5033_v63, 0.0  ;;  %v4875_v11 = vpop.f32.mrb[106].mxu1  ;;  %v5036_v22 = vpop.f32.mrb[106].mxu0 }
 0x843   :  { %v4876_v43 = vadd.f32 %v4875_v11, %v10807_v58  ;;  %v5037_v25 = vadd.f32 %v5036_v22, %v10811_v40  ;;  %v4877_v1 = vpop.f32.mrb[107].mxu1  ;;  %v5038_v53 = vpop.f32.mrb[107].mxu0 }
 0x844   :  { %v4878_v62 = vadd.f32 %v4877_v1, %v10809_v19  ;;  %v5039_v32 = vadd.f32 %v5038_v53, %v10813_v5  ;;  %5320 = vmatprep.mubr.f32.mxu1 %v5118_v31  ;;  %5465 = vmatprep.mubr.f32.mxu0 %v5120_v12 }
 0x845   :  { %5321 = vmatmul.mubr.f32.gmra.mrb[136].mxu1 %v5117_v15  ;;  %5466 = vmatmul.mubr.f32.gmra.mrb[136].mxu0 %v5119_v37  ;;  %v5121_v51 = vmax.f32 %v4876_v43, 0.0  ;;  %v5123_v16 = vmax.f32 %v5037_v25, 0.0 }
 0x846   :  { %v5122_v55 = vmax.f32 %v4878_v62, 0.0  ;;  %v5124_v47 = vmax.f32 %v5039_v32, 0.0  ;;  %v4881_v34 = vpop.f32.mrb[108].mxu1  ;;  %v5042_v42 = vpop.f32.mrb[108].mxu0 }
 0x847   :  { %v4882_v13 = vadd.f32 %v4881_v34, %v10807_v58  ;;  %v5043_v23 = vadd.f32 %v5042_v42, %v10811_v40  ;;  %v4883_v21 = vpop.f32.mrb[109].mxu1  ;;  %v5044_v2 = vpop.f32.mrb[109].mxu0 }
 0x848   :  { %v4884_v18 = vadd.f32 %v4883_v21, %v10809_v19  ;;  %v5045_v0 = vadd.f32 %v5044_v2, %v10813_v5  ;;  %5325 = vmatprep.mubr.f32.mxu1 %v5122_v55  ;;  %5470 = vmatprep.mubr.f32.mxu0 %v5124_v47 }
 0x849   :  { %5326 = vmatmul.mubr.f32.gmra.mrb[138].mxu1 %v5121_v51  ;;  %5471 = vmatmul.mubr.f32.gmra.mrb[138].mxu0 %v5123_v16  ;;  %v5125_v38 = vmax.f32 %v4882_v13, 0.0  ;;  %v5127_v60 = vmax.f32 %v5043_v23, 0.0 }
 0x84a   :  { %v5126_v50 = vmax.f32 %v4884_v18, 0.0  ;;  %v5128_v56 = vmax.f32 %v5045_v0, 0.0  ;;  %v4887_v4 = vpop.f32.mrb[110].mxu1  ;;  %v5048_v30 = vpop.f32.mrb[110].mxu0 }
 0x84b   :  { %v4888_v33 = vadd.f32 %v4887_v4, %v10807_v58  ;;  %v5049_v17 = vadd.f32 %v5048_v30, %v10811_v40  ;;  %v4889_v28 = vpop.f32.mrb[111].mxu1  ;;  %v5050_v57 = vpop.f32.mrb[111].mxu0 }
 0x84c   :  { %v4890_v20 = vadd.f32 %v4889_v28, %v10809_v19  ;;  %v5051_v10 = vadd.f32 %v5050_v57, %v10813_v5  ;;  %5330 = vmatprep.mubr.f32.mxu1 %v5126_v50  ;;  %5475 = vmatprep.mubr.f32.mxu0 %v5128_v56 }
 0x84d   :  { %5331 = vmatmul.mubr.f32.gmra.mrb[140].mxu1 %v5125_v38  ;;  %5476 = vmatmul.mubr.f32.gmra.mrb[140].mxu0 %v5127_v60  ;;  %v5129_v41 = vmax.f32 %v4888_v33, 0.0  ;;  %v5131_v29 = vmax.f32 %v5049_v17, 0.0 }
 0x84e   :  { %v5130_v39 = vmax.f32 %v4890_v20, 0.0  ;;  %v5132_v49 = vmax.f32 %v5051_v10, 0.0 }
 0x850   :  { %5335 = vmatprep.mubr.f32.mxu1 %v5130_v39  ;;  %5480 = vmatprep.mubr.f32.mxu0 %v5132_v49 }
 0x851   :  { %5336 = vmatmul.mubr.f32.gmra.mrb[142].mxu1 %v5129_v41  ;;  %5481 = vmatmul.mubr.f32.gmra.mrb[142].mxu0 %v5131_v29 }
 0x89c   :  { %v4893_v9 = vpop.f32.mrb[112].mxu1  ;;  %v5054_v45 = vpop.f32.mrb[112].mxu0 }
 0x89d   :  { %v4894_v44 = vadd.f32 %v4893_v9, %v10807_v58  ;;  %v5055_v63 = vadd.f32 %v5054_v45, %v10811_v40  ;;  %v4895_v31 = vpop.f32.mrb[113].mxu1  ;;  %v5056_v12 = vpop.f32.mrb[113].mxu0 }
 0x89e   :  { %v4896_v11 = vadd.f32 %v4895_v31, %v10809_v19  ;;  %v5057_v22 = vadd.f32 %v5056_v12, %v10813_v5 }
 0x89f   :  { %v5133_v1 = vmax.f32 %v4894_v44, 0.0  ;;  %v5135_v53 = vmax.f32 %v5055_v63, 0.0 }
 0x8a0   :  { %v5134_v15 = vmax.f32 %v4896_v11, 0.0  ;;  %v5136_v37 = vmax.f32 %v5057_v22, 0.0  ;;  %v4899_v43 = vpop.f32.mrb[114].mxu1  ;;  %v5060_v25 = vpop.f32.mrb[114].mxu0 }
 0x8a1   :  { %v4900_v62 = vadd.f32 %v4899_v43, %v10807_v58  ;;  %v5061_v32 = vadd.f32 %v5060_v25, %v10811_v40  ;;  %v4901_v55 = vpop.f32.mrb[115].mxu1  ;;  %v5062_v47 = vpop.f32.mrb[115].mxu0 }
 0x8a2   :  { %v4902_v34 = vadd.f32 %v4901_v55, %v10809_v19  ;;  %v5063_v42 = vadd.f32 %v5062_v47, %v10813_v5  ;;  %5340 = vmatprep.mubr.f32.mxu1 %v5134_v15  ;;  %5485 = vmatprep.mubr.f32.mxu0 %v5136_v37 }
 0x8a3   :  { %5341 = vmatmul.mubr.f32.gmra.mrb[144].mxu1 %v5133_v1  ;;  %5486 = vmatmul.mubr.f32.gmra.mrb[144].mxu0 %v5135_v53  ;;  %v5137_v21 = vmax.f32 %v4900_v62, 0.0  ;;  %v5139_v2 = vmax.f32 %v5061_v32, 0.0 }
 0x8a4   :  { %v5138_v51 = vmax.f32 %v4902_v34, 0.0  ;;  %v5140_v16 = vmax.f32 %v5063_v42, 0.0  ;;  %v4905_v13 = vpop.f32.mrb[116].mxu1  ;;  %v5066_v23 = vpop.f32.mrb[116].mxu0 }
 0x8a5   :  { %v4906_v18 = vadd.f32 %v4905_v13, %v10807_v58  ;;  %v5067_v0 = vadd.f32 %v5066_v23, %v10811_v40  ;;  %v4907_v50 = vpop.f32.mrb[117].mxu1  ;;  %v5068_v56 = vpop.f32.mrb[117].mxu0 }
 0x8a6   :  { %v4908_v4 = vadd.f32 %v4907_v50, %v10809_v19  ;;  %v5069_v30 = vadd.f32 %v5068_v56, %v10813_v5  ;;  %5345 = vmatprep.mubr.f32.mxu1 %v5138_v51  ;;  %5490 = vmatprep.mubr.f32.mxu0 %v5140_v16 }
 0x8a7   :  { %5346 = vmatmul.mubr.f32.gmra.mrb[146].mxu1 %v5137_v21  ;;  %5491 = vmatmul.mubr.f32.gmra.mrb[146].mxu0 %v5139_v2  ;;  %v5141_v28 = vmax.f32 %v4906_v18, 0.0  ;;  %v5143_v57 = vmax.f32 %v5067_v0, 0.0 }
 0x8a8   :  { %v5142_v38 = vmax.f32 %v4908_v4, 0.0  ;;  %v5144_v60 = vmax.f32 %v5069_v30, 0.0  ;;  %v4911_v33 = vpop.f32.mrb[118].mxu1  ;;  %v5072_v17 = vpop.f32.mrb[118].mxu0 }
 0x8a9   :  { %v4912_v20 = vadd.f32 %v4911_v33, %v10807_v58  ;;  %v5073_v10 = vadd.f32 %v5072_v17, %v10811_v40  ;;  %v4913_v39 = vpop.f32.mrb[119].mxu1  ;;  %v5074_v49 = vpop.f32.mrb[119].mxu0 }
 0x8aa   :  { %v4914_v41 = vadd.f32 %v4913_v39, %v10809_v19  ;;  %v5075_v29 = vadd.f32 %v5074_v49, %v10813_v5  ;;  %5350 = vmatprep.mubr.f32.mxu1 %v5142_v38  ;;  %5495 = vmatprep.mubr.f32.mxu0 %v5144_v60 }
 0x8ab   :  { %5351 = vmatmul.mubr.f32.gmra.mrb[148].mxu1 %v5141_v28  ;;  %5496 = vmatmul.mubr.f32.gmra.mrb[148].mxu0 %v5143_v57  ;;  %v5145_v31 = vmax.f32 %v4912_v20, 0.0  ;;  %v5147_v12 = vmax.f32 %v5073_v10, 0.0 }
 0x8ac   :  { %v5146_v9 = vmax.f32 %v4914_v41, 0.0  ;;  %v5148_v45 = vmax.f32 %v5075_v29, 0.0  ;;  %v4917_v44 = vpop.f32.mrb[120].mxu1  ;;  %v5078_v63 = vpop.f32.mrb[120].mxu0 }
 0x8ad   :  { %v4918_v11 = vadd.f32 %v4917_v44, %v10807_v58  ;;  %v5079_v22 = vadd.f32 %v5078_v63, %v10811_v40  ;;  %v4919_v15 = vpop.f32.mrb[121].mxu1  ;;  %v5080_v37 = vpop.f32.mrb[121].mxu0 }
 0x8ae   :  { %v4920_v43 = vadd.f32 %v4919_v15, %v10809_v19  ;;  %v5081_v25 = vadd.f32 %v5080_v37, %v10813_v5  ;;  %5355 = vmatprep.mubr.f32.mxu1 %v5146_v9  ;;  %5500 = vmatprep.mubr.f32.mxu0 %v5148_v45 }
 0x8af   :  { %5356 = vmatmul.mubr.f32.gmra.mrb[150].mxu1 %v5145_v31  ;;  %5501 = vmatmul.mubr.f32.gmra.mrb[150].mxu0 %v5147_v12  ;;  %v5149_v55 = vmax.f32 %v4918_v11, 0.0  ;;  %v5151_v47 = vmax.f32 %v5079_v22, 0.0 }
 0x8b0   :  { %v5150_v1 = vmax.f32 %v4920_v43, 0.0  ;;  %v5152_v53 = vmax.f32 %v5081_v25, 0.0  ;;  %v4923_v62 = vpop.f32.mrb[122].mxu1  ;;  %v5084_v32 = vpop.f32.mrb[122].mxu0 }
 0x8b1   :  { %v4924_v34 = vadd.f32 %v4923_v62, %v10807_v58  ;;  %v5085_v42 = vadd.f32 %v5084_v32, %v10811_v40  ;;  %v4925_v51 = vpop.f32.mrb[123].mxu1  ;;  %v5086_v16 = vpop.f32.mrb[123].mxu0 }
 0x8b2   :  { %v4926_v13 = vadd.f32 %v4925_v51, %v10809_v19  ;;  %v5087_v23 = vadd.f32 %v5086_v16, %v10813_v5  ;;  %5360 = vmatprep.mubr.f32.mxu1 %v5150_v1  ;;  %5505 = vmatprep.mubr.f32.mxu0 %v5152_v53 }
 0x8b3   :  { %5361 = vmatmul.mubr.f32.gmra.mrb[152].mxu1 %v5149_v55  ;;  %5506 = vmatmul.mubr.f32.gmra.mrb[152].mxu0 %v5151_v47  ;;  %v5153_v18 = vmax.f32 %v4924_v34, 0.0  ;;  %v5155_v0 = vmax.f32 %v5085_v42, 0.0 }
 0x8b4   :  { %v5154_v21 = vmax.f32 %v4926_v13, 0.0  ;;  %v5156_v2 = vmax.f32 %v5087_v23, 0.0 }
 0x8b6   :  { %5365 = vmatprep.mubr.f32.mxu1 %v5154_v21  ;;  %5510 = vmatprep.mubr.f32.mxu0 %v5156_v2 }
 0x8b7   :  { %5366 = vmatmul.mubr.f32.gmra.mrb[154].mxu1 %v5153_v18  ;;  %5511 = vmatmul.mubr.f32.gmra.mrb[154].mxu0 %v5155_v0 }
 0x8d1   :  { %v4929_v50 = vpop.f32.mrb[124].mxu1  ;;  %v5090_v56 = vpop.f32.mrb[124].mxu0 }
 0x8d2   :  { %v4930_v4 = vadd.f32 %v4929_v50, %v10807_v58  ;;  %v5091_v30 = vadd.f32 %v5090_v56, %v10811_v40  ;;  %v4931_v38 = vpop.f32.mrb[125].mxu1  ;;  %v5092_v60 = vpop.f32.mrb[125].mxu0 }
 0x8d3   :  { %v4932_v33 = vadd.f32 %v4931_v38, %v10809_v19  ;;  %v5093_v17 = vadd.f32 %v5092_v60, %v10813_v5 }
 0x8d4   :  { %v5157_v39 = vmax.f32 %v4930_v4, 0.0  ;;  %v5159_v49 = vmax.f32 %v5091_v30, 0.0 }
 0x8d5   :  { %v5158_v28 = vmax.f32 %v4932_v33, 0.0  ;;  %v5160_v57 = vmax.f32 %v5093_v17, 0.0  ;;  %v4935_v20 = vpop.f32.mrb[126].mxu1  ;;  %v5096_v10 = vpop.f32.mrb[126].mxu0 }
 0x8d6   :  { %v4936_v41 = vadd.f32 %v4935_v20, %v10807_v58  ;;  %v5097_v29 = vadd.f32 %v5096_v10, %v10811_v40  ;;  %v4937_v9 = vpop.f32.mrb[127].mxu1  ;;  %v5098_v45 = vpop.f32.mrb[127].mxu0 }
 0x8d7   :  { %v4938_v44 = vadd.f32 %v4937_v9, %v10809_v19  ;;  %v5099_v63 = vadd.f32 %v5098_v45, %v10813_v5  ;;  %5370 = vmatprep.mubr.f32.mxu1 %v5158_v28  ;;  %5515 = vmatprep.mubr.f32.mxu0 %v5160_v57  ;;  %v10882_v19 = vld [vmem:[%s10942_s11] ss:$0 sm:$0xff]  ;;  %s8116_s11 = smov [#allocation5]  }
 0x8d8   :  { %5371 = vmatmul.mubr.f32.gmra.mrb[156].mxu1 %v5157_v39  ;;  %5516 = vmatmul.mubr.f32.gmra.mrb[156].mxu0 %v5159_v49  ;;  %v5161_v11 = vmax.f32 %v4936_v41, 0.0  ;;  %v5163_v22 = vmax.f32 %v5097_v29, 0.0  ;;  %s5563_s17 = sshll.u32 %s8116_s11, 4  ;;  %s5564_s17 = int_to_ptr.vmem [resolvable:$true] %s5563_s17 }
 0x8d9   :  { %v5162_v31 = vmax.f32 %v4938_v44, 0.0  ;;  %v5164_v12 = vmax.f32 %v5099_v63, 0.0  ;;  %s8083_s18 = scalar_lea.vmem %s5564_s17, 2048  ;;  %p8088_p9 = scmp.lt.s32.totalorder %s5564_s17, %s5564_s17 }
 0x8da   :  { %p8084_p8 = scmp.ne.s32.totalorder %s5564_s17, %s8083_s18  ;;  %p8089_p10 = scmp.lt.s32.totalorder %s8083_s18, %s8083_s18 }
 0x8db   :  { %5375 = vmatprep.mubr.f32.mxu1 %v5162_v31  ;;  %5520 = vmatprep.mubr.f32.mxu0 %v5164_v12 }
 0x8dc   :  { %5376 = vmatmul.mubr.f32.gmra.mrb[158].mxu1 %v5161_v11  ;;  %5521 = vmatmul.mubr.f32.gmra.mrb[158].mxu0 %v5163_v22  ;;  %p8090_p11 = por %p8089_p10, %p8088_p9 }
 0x8de   :  { %p8091_p12 = pnand %p8090_p11, %p8084_p8 }
 0x904   :  { %v6125_v58 = vpop.f32.mrb[128].mxu1 }
 0x905   :  { %v6205_v40 = vpop.f32.mrb[128].mxu0  ;;  %v6126_v5 = vpop.f32.mrb[129].mxu1 }
 0x906   :  { %v6127_v15 = vadd.f32 %v6126_v5, %v6125_v58  ;;  %v6206_v37 = vpop.f32.mrb[129].mxu0 }
 0x907   :  { %v6207_v43 = vadd.f32 %v6206_v37, %v6205_v40 }
 0x908   :  { %v5303_v25 = vadd.f32 %v6127_v15, %v10882_v19 }
 0x90a   :  { %v5448_v1 = vadd.f32 %v6207_v43, %v5303_v25  ;;  %v6128_v53 = vpop.f32.mrb[130].mxu1 }
 0x90b   :  { %v6208_v62 = vpop.f32.mrb[130].mxu0  ;;  %v6129_v32 = vpop.f32.mrb[131].mxu1 }
 0x90c   :  { %v5526_v55 = vadd.f32 %v5448_v1, %v10361_v8  ;;  %v6130_v47 = vadd.f32 %v6129_v32, %v6128_v53  ;;  %v6209_v34 = vpop.f32.mrb[131].mxu0 }
 0x90d   :  { %v6210_v42 = vadd.f32 %v6209_v34, %v6208_v62 }
 0x90e   :  { %5542 = vst [vmem:[#allocation5] sm:$0xff] %v5526_v55  ;;  %v5308_v51 = vadd.f32 %v6130_v47, %v10882_v19 }
 0x910   :  { %v5453_v16 = vadd.f32 %v6210_v42, %v5308_v51  ;;  %v6131_v13 = vpop.f32.mrb[132].mxu1  ;;  %v6211_v23 = vpop.f32.mrb[132].mxu0 }
 0x911   :  { %v6132_v21 = vpop.f32.mrb[133].mxu1  ;;  %v6212_v2 = vpop.f32.mrb[133].mxu0 }
 0x912   :  { %v5527_v18 = vadd.f32 %v5453_v16, %v10371_v52  ;;  %v6133_v0 = vadd.f32 %v6132_v21, %v6131_v13  ;;  %v6213_v50 = vadd.f32 %v6212_v2, %v6211_v23 }
 0x914   :  { %5543 = vst [vmem:[#allocation5 + $0x8] sm:$0xff] %v5527_v18  ;;  %v5313_v56 = vadd.f32 %v6133_v0, %v10882_v19  ;;  %v6134_v4 = vpop.f32.mrb[134].mxu1  ;;  %v6214_v8 = vpop.f32.mrb[134].mxu0 }
 0x915   :  { %v6135_v30 = vpop.f32.mrb[135].mxu1  ;;  %v6215_v38 = vpop.f32.mrb[135].mxu0 }
 0x916   :  { %v5458_v60 = vadd.f32 %v6213_v50, %v5313_v56  ;;  %v6136_v33 = vadd.f32 %v6135_v30, %v6134_v4  ;;  %v6216_v17 = vadd.f32 %v6215_v38, %v6214_v8 }
 0x918   :  { %v5528_v28 = vadd.f32 %v5458_v60, %v10376_v36  ;;  %v5318_v57 = vadd.f32 %v6136_v33, %v10882_v19  ;;  %v6137_v20 = vpop.f32.mrb[136].mxu1  ;;  %v6217_v10 = vpop.f32.mrb[136].mxu0 }
 0x919   :  { %v6138_v39 = vpop.f32.mrb[137].mxu1  ;;  %v6218_v52 = vpop.f32.mrb[137].mxu0 }
 0x91a   :  { %5544 = vst [vmem:[#allocation5 + $0x10] sm:$0xff] %v5528_v28  ;;  %v5463_v49 = vadd.f32 %v6216_v17, %v5318_v57  ;;  %v6139_v41 = vadd.f32 %v6138_v39, %v6137_v20  ;;  %v6219_v29 = vadd.f32 %v6218_v52, %v6217_v10 }
 0x91c   :  { %v5529_v9 = vadd.f32 %v5463_v49, %v10381_v54  ;;  %v5323_v45 = vadd.f32 %v6139_v41, %v10882_v19  ;;  %v6140_v44 = vpop.f32.mrb[138].mxu1  ;;  %v6220_v63 = vpop.f32.mrb[138].mxu0 }
 0x91d   :  { %v6141_v31 = vpop.f32.mrb[139].mxu1  ;;  %v6221_v12 = vpop.f32.mrb[139].mxu0 }
 0x91e   :  { %5545 = vst [vmem:[#allocation5 + $0x18] sm:$0xff] %v5529_v9  ;;  %v5468_v36 = vadd.f32 %v6219_v29, %v5323_v45  ;;  %v6142_v11 = vadd.f32 %v6141_v31, %v6140_v44  ;;  %v6222_v22 = vadd.f32 %v6221_v12, %v6220_v63 }
 0x920   :  { %v5530_v58 = vadd.f32 %v5468_v36, %v10425_v14  ;;  %v5328_v40 = vadd.f32 %v6142_v11, %v10882_v19  ;;  %v6143_v5 = vpop.f32.mrb[140].mxu1  ;;  %v6223_v15 = vpop.f32.mrb[140].mxu0 }
 0x921   :  { %v6144_v37 = vpop.f32.mrb[141].mxu1  ;;  %v6224_v43 = vpop.f32.mrb[141].mxu0 }
 0x922   :  { %5546 = vst [vmem:[#allocation5 + $0x20] sm:$0xff] %v5530_v58  ;;  %v5473_v54 = vadd.f32 %v6222_v22, %v5328_v40  ;;  %v6145_v25 = vadd.f32 %v6144_v37, %v6143_v5  ;;  %v6225_v1 = vadd.f32 %v6224_v43, %v6223_v15 }
 0x924   :  { %v5531_v53 = vadd.f32 %v5473_v54, %v10439_v6  ;;  %v5333_v62 = vadd.f32 %v6145_v25, %v10882_v19  ;;  %v6146_v32 = vpop.f32.mrb[142].mxu1  ;;  %v6226_v55 = vpop.f32.mrb[142].mxu0 }
 0x925   :  { %v6147_v47 = vpop.f32.mrb[143].mxu1  ;;  %v6227_v34 = vpop.f32.mrb[143].mxu0 }
 0x926   :  { %5547 = vst [vmem:[#allocation5 + $0x28] sm:$0xff] %v5531_v53  ;;  %v5478_v14 = vadd.f32 %v6225_v1, %v5333_v62  ;;  %v6148_v42 = vadd.f32 %v6147_v47, %v6146_v32  ;;  %v6228_v51 = vadd.f32 %v6227_v34, %v6226_v55 }
 0x928   :  { %v5532_v16 = vadd.f32 %v5478_v14, %v10469_v59  ;;  %v5338_v13 = vadd.f32 %v6148_v42, %v10882_v19 }
 0x92a   :  { %5548 = vst [vmem:[#allocation5 + $0x30] sm:$0xff] %v5532_v16  ;;  %v5483_v23 = vadd.f32 %v6228_v51, %v5338_v13 }
 0x92c   :  { %v5533_v21 = vadd.f32 %v5483_v23, %v10499_v48 }
 0x92e   :  { %5549 = vst [vmem:[#allocation5 + $0x38] sm:$0xff] %v5533_v21 }
 0x976   :  { %v6149_v6 = vpop.f32.mrb[144].mxu1  ;;  %v6229_v2 = vpop.f32.mrb[144].mxu0 }
 0x977   :  { %v6150_v18 = vpop.f32.mrb[145].mxu1  ;;  %v6230_v0 = vpop.f32.mrb[145].mxu0 }
 0x978   :  { %v6151_v50 = vadd.f32 %v6150_v18, %v6149_v6  ;;  %v6231_v56 = vadd.f32 %v6230_v0, %v6229_v2 }
 0x97a   :  { %v5343_v4 = vadd.f32 %v6151_v50, %v10882_v19  ;;  %v6152_v8 = vpop.f32.mrb[146].mxu1  ;;  %v6232_v30 = vpop.f32.mrb[146].mxu0 }
 0x97b   :  { %v6153_v38 = vpop.f32.mrb[147].mxu1  ;;  %v6233_v60 = vpop.f32.mrb[147].mxu0 }
 0x97c   :  { %v5488_v59 = vadd.f32 %v6231_v56, %v5343_v4  ;;  %v6154_v33 = vadd.f32 %v6153_v38, %v6152_v8  ;;  %v6234_v17 = vadd.f32 %v6233_v60, %v6232_v30 }
 0x97e   :  { %v5534_v28 = vadd.f32 %v5488_v59, %v10625_v46  ;;  %v5348_v48 = vadd.f32 %v6154_v33, %v10882_v19  ;;  %v6155_v57 = vpop.f32.mrb[148].mxu1  ;;  %v6235_v20 = vpop.f32.mrb[148].mxu0 }
 0x97f   :  { %v6156_v10 = vpop.f32.mrb[149].mxu1  ;;  %v6236_v39 = vpop.f32.mrb[149].mxu0 }
 0x980   :  { %5550 = vst [vmem:[#allocation5 + $0x40] sm:$0xff] %v5534_v28  ;;  %v5493_v52 = vadd.f32 %v6234_v17, %v5348_v48  ;;  %v6157_v49 = vadd.f32 %v6156_v10, %v6155_v57  ;;  %v6237_v41 = vadd.f32 %v6236_v39, %v6235_v20 }
 0x982   :  { %v5535_v29 = vadd.f32 %v5493_v52, %v10630_v35  ;;  %v5353_v9 = vadd.f32 %v6157_v49, %v10882_v19  ;;  %v6158_v45 = vpop.f32.mrb[150].mxu1  ;;  %v6238_v44 = vpop.f32.mrb[150].mxu0 }
 0x983   :  { %v6159_v63 = vpop.f32.mrb[151].mxu1  ;;  %v6239_v31 = vpop.f32.mrb[151].mxu0 }
 0x984   :  { %5551 = vst [vmem:[#allocation5 + $0x48] sm:$0xff] %v5535_v29  ;;  %v5498_v46 = vadd.f32 %v6237_v41, %v5353_v9  ;;  %v6160_v12 = vadd.f32 %v6159_v63, %v6158_v45  ;;  %v6240_v36 = vadd.f32 %v6239_v31, %v6238_v44 }
 0x986   :  { %v5536_v11 = vadd.f32 %v5498_v46, %v10640_v7  ;;  %v5358_v22 = vadd.f32 %v6160_v12, %v10882_v19  ;;  %v6161_v58 = vpop.f32.mrb[152].mxu1  ;;  %v6241_v40 = vpop.f32.mrb[152].mxu0 }
 0x987   :  { %v6162_v5 = vpop.f32.mrb[153].mxu1  ;;  %v6242_v15 = vpop.f32.mrb[153].mxu0 }
 0x988   :  { %5552 = vst [vmem:[#allocation5 + $0x50] sm:$0xff] %v5536_v11  ;;  %v5503_v35 = vadd.f32 %v6240_v36, %v5358_v22  ;;  %v6163_v37 = vadd.f32 %v6162_v5, %v6161_v58  ;;  %v6243_v43 = vadd.f32 %v6242_v15, %v6241_v40 }
 0x98a   :  { %v5537_v54 = vadd.f32 %v5503_v35, %v10648_v27  ;;  %v5363_v25 = vadd.f32 %v6163_v37, %v10882_v19  ;;  %v6164_v1 = vpop.f32.mrb[154].mxu1  ;;  %v6244_v53 = vpop.f32.mrb[154].mxu0 }
 0x98b   :  { %v6165_v62 = vpop.f32.mrb[155].mxu1  ;;  %v6245_v32 = vpop.f32.mrb[155].mxu0 }
 0x98c   :  { %5553 = vst [vmem:[#allocation5 + $0x58] sm:$0xff] %v5537_v54  ;;  %v5508_v7 = vadd.f32 %v6243_v43, %v5363_v25  ;;  %v6166_v55 = vadd.f32 %v6165_v62, %v6164_v1  ;;  %v6246_v47 = vadd.f32 %v6245_v32, %v6244_v53 }
 0x98e   :  { %v5538_v34 = vadd.f32 %v5508_v7, %v10658_v24  ;;  %v5368_v14 = vadd.f32 %v6166_v55, %v10882_v19 }
 0x990   :  { %5554 = vst [vmem:[#allocation5 + $0x60] sm:$0xff] %v5538_v34  ;;  %v5513_v42 = vadd.f32 %v6246_v47, %v5368_v14 }
 0x992   :  { %v5539_v51 = vadd.f32 %v5513_v42, %v10666_v3 }
 0x994   :  { %5555 = vst [vmem:[#allocation5 + $0x68] sm:$0xff] %v5539_v51 }
 0x9ab   :  { %v6167_v27 = vpop.f32.mrb[156].mxu1  ;;  %v6247_v16 = vpop.f32.mrb[156].mxu0 }
 0x9ac   :  { %v6168_v13 = vpop.f32.mrb[157].mxu1  ;;  %v6248_v23 = vpop.f32.mrb[157].mxu0 }
 0x9ad   :  { %v6169_v21 = vadd.f32 %v6168_v13, %v6167_v27  ;;  %v6249_v6 = vadd.f32 %v6248_v23, %v6247_v16 }
 0x9af   :  { %v5373_v2 = vadd.f32 %v6169_v21, %v10882_v19  ;;  %v6170_v18 = vpop.f32.mrb[158].mxu1  ;;  %v6250_v0 = vpop.f32.mrb[158].mxu0 }
 0x9b0   :  { %v6171_v50 = vpop.f32.mrb[159].mxu1  ;;  %v6251_v56 = vpop.f32.mrb[159].mxu0 }
 0x9b1   :  { %v5518_v24 = vadd.f32 %v6249_v6, %v5373_v2  ;;  %v6172_v4 = vadd.f32 %v6171_v50, %v6170_v18  ;;  %v6252_v8 = vadd.f32 %v6251_v56, %v6250_v0 }
 0x9b3   :  { %v5540_v30 = vadd.f32 %v5518_v24, %v10704_v26  ;;  %v5378_v3 = vadd.f32 %v6172_v4, %v10882_v19 }
 0x9b5   :  { %5556 = vst [vmem:[#allocation5 + $0x70] sm:$0xff] %v5540_v30  ;;  %v5523_v38 = vadd.f32 %v6252_v8, %v5378_v3 }
 0x9b7   :  { %v5541_v60 = vadd.f32 %v5523_v38, %v10712_v61 }
 0x9b9   :  { %5557 = vst [vmem:[#allocation5 + $0x78] sm:$0xff] %v5541_v60 }
 0x9ba   :  { %8094 = shalt.err (!%p8091_p12)
}
 0x9bb   :  { %s8095_s20 = scalar_lea.hbm %s10943_s12, 2048 }
 0x9bc   :  { %p8096_p13 = scmp.ne.s32.totalorder %s10943_s12, %s8095_s20  ;;  %p8099_p0 = scmp.lt.u32.totalorder %s8095_s20, %s10943_s12 }
 0x9be   :  { %p8101_p1 = pnand %p8099_p0, %p8096_p13 }
 0x9c0   :  { %8104 = shalt.err (!%p8101_p1)
}
 0x9c1   :  { %5569 = dma.vmem_to_hbm [thread:$0]  %s5564_s17, 2048, %s10943_s12, [#allocation4], %s8110_s13, %s8110_s13, %s8111_s14  }
 0x9c2   :  { %8107 = dma.done.wait [#allocation4], 2048  }
 0x9c3   :  { %8108 = vsyncadd [#allocation4], 4294965248 }
 0x9c4   :  { %5573 = vsyncpa [#allocation3], 1 }
 0x9c5   :  { %5574 = vsyncpa [#allocation4], 1 }

</bundles_post_ra>
